<compile_context>
chip_gen: v6e
topology: v6e:2x2x1
jax: 0.10.0
libtpu: 0.0.40
codegen_flags: <defaults>
</compile_context>

<pallas_src>
import math
import functools

import jax
import jax.numpy as jnp
from jax.experimental import pallas as pl
from jax.experimental.pallas import tpu as pltpu


def _gelu_tanh(x):
    # nn.GELU(approximate='tanh')
    c = math.sqrt(2.0 / math.pi)
    return 0.5 * x * (1.0 + jnp.tanh(c * (x + 0.044715 * x * x * x)))


def _vmem_capacity_bytes():
    try:
        return int(pltpu.get_tpu_info().vmem_capacity_bytes)
    except Exception:
        return 64 * 1024 * 1024


def _has_bf16_eup():
    # bf16 exp only pays off (and is only enabled) on v6e / v7x.
    try:
        kind = jax.devices()[0].device_kind.lower()
    except Exception:
        return False
    return ("v6" in kind) or ("v7" in kind)


def _pick_mlp_chunk(D, want):
    # Largest multiple-of-128 divisor of D not exceeding `want` (no ragged
    # final chunk -> fc1 output slab stays lane-dense).
    if D <= want:
        return D
    c = (want // 128) * 128
    while c >= 128:
        if D % c == 0:
            return c
        c -= 128
    return D


def dit_block_kernel(x_ref, q_ref, kv_ref, mods_ref,
                     w_proj_ref, b_proj_ref,
                     w_fc1_ref, b_fc1_ref,
                     w_fc2_ref, b_fc2_ref,
                     o_ref,
                     m_scr, l_scr, acc_scr, oh_scr,
                     *, num_heads, mlp_chunk, exp_in_bf16):
    f32 = jnp.float32
    bf16 = jnp.bfloat16

    k_idx = pl.program_id(2)
    n_kv = pl.num_programs(2)

    tN, H = q_ref.shape[1], q_ref.shape[2]
    hd = H // num_heads
    scale = 1.0 / math.sqrt(hd)

    # ---- init online-softmax state at the first KV tile -------------------
    @pl.when(k_idx == 0)
    def _init():
        m_scr[...] = jnp.full(m_scr.shape, -jnp.inf, f32)
        l_scr[...] = jnp.zeros(l_scr.shape, f32)
        acc_scr[...] = jnp.zeros(acc_scr.shape, f32)

    # ---- flash-attention update for this KV tile --------------------------
    q_all = (q_ref[0].astype(f32) * scale).astype(bf16)       # (tN, H)
    kv = kv_ref[0]                                            # (tK, 2H) bf16

    for h in range(num_heads):
        q_h = q_all[:, h * hd:(h + 1) * hd]                   # (tN, hd)
        k_h = kv[:, h * hd:(h + 1) * hd]                      # (tK, hd)
        v_h = kv[:, H + h * hd:H + (h + 1) * hd]              # (tK, hd)

        s = jax.lax.dot_general(q_h, k_h, (((1,), (1,)), ((), ())),
                                preferred_element_type=f32)    # (tN, tK)

        m_prev = m_scr[h]                                      # (tN, 1)
        m_new = jnp.maximum(m_prev, jnp.max(s, axis=-1, keepdims=True))
        corr = jnp.exp(m_prev - m_new)

        s_shift = s - m_new
        if exp_in_bf16:
            p = jnp.exp(s_shift.astype(bf16))                  # bf16 EUP path
            p_sum = jnp.sum(p.astype(f32), axis=-1, keepdims=True)
        else:
            p32 = jnp.exp(s_shift)
            p = p32.astype(bf16)
            p_sum = jnp.sum(p32, axis=-1, keepdims=True)

        l_scr[h] = corr * l_scr[h] + p_sum
        pv = jnp.dot(p, v_h, preferred_element_type=f32)       # (tN, hd)
        acc_scr[:, h * hd:(h + 1) * hd] = (
            corr * acc_scr[:, h * hd:(h + 1) * hd] + pv)
        m_scr[h] = m_new

    # ---- finalize: out-proj + residual + modulated MLP ---------------------
    @pl.when(k_idx == n_kv - 1)
    def _finalize():
        mods = mods_ref[0].astype(f32)                         # (1, 4H)
        alpha1 = mods[:, 0 * H:1 * H]
        gamma2 = mods[:, 1 * H:2 * H]
        beta2 = mods[:, 2 * H:3 * H]
        alpha2 = mods[:, 3 * H:4 * H]

        # Normalize each head into a (tN, H) bf16 buffer, then ONE K=H matmul.
        for h in range(num_heads):
            inv_l = pl.reciprocal(l_scr[h], approx=True)       # (tN, 1)
            oh_scr[:, h * hd:(h + 1) * hd] = (
                acc_scr[:, h * hd:(h + 1) * hd] * inv_l).astype(bf16)
        attn = jnp.dot(oh_scr[...], w_proj_ref[...],
                       preferred_element_type=f32) + b_proj_ref[...]

        x1 = x_ref[0].astype(f32) + attn * alpha1

        # LayerNorm(eps=1e-6, no affine) + modulate
        mu = jnp.mean(x1, axis=-1, keepdims=True)
        var = jnp.mean((x1 - mu) ** 2, axis=-1, keepdims=True)
        m2 = ((x1 - mu) * jax.lax.rsqrt(var + 1e-6)) * (1.0 + beta2) + gamma2
        m2_bf = m2.astype(bf16)

        D = w_fc1_ref.shape[1]
        mlp = jnp.zeros((tN, H), f32)
        for c0 in range(0, D, mlp_chunk):                      # hidden-dim chunks
            c1 = min(c0 + mlp_chunk, D)
            f = jnp.dot(m2_bf, w_fc1_ref[:, c0:c1],
                        preferred_element_type=f32) + b_fc1_ref[:, c0:c1]
            g = _gelu_tanh(f)
            mlp = mlp + jnp.dot(g.astype(bf16), w_fc2_ref[c0:c1, :],
                                preferred_element_type=f32)
        mlp = mlp + b_fc2_ref[...]

        o_ref[0] = (x1 + mlp * alpha2).astype(o_ref.dtype)


def dit_block(x, cond, w_ada, b_ada, w_qkv, b_qkv, w_proj, b_proj,
              w_fc1, b_fc1, w_fc2, b_fc2, *, num_heads,
              q_tile=None, kv_tile=256, mlp_chunk=512):
    B, N, H = x.shape
    D = w_fc1.shape[1]
    assert H % num_heads == 0
    f32, bf16 = jnp.float32, jnp.bfloat16

    vmem_cap = _vmem_capacity_bytes()
    if q_tile is None:
        # Bigger query tiles on 128 MiB-VMEM parts (v5e/v6e), smaller on v7x.
        q_tile = 512 if vmem_cap > (96 << 20) else 256

    tN = min(q_tile, N)
    if N % tN != 0:
        tN = N
    tK = min(kv_tile, N)
    if N % tK != 0:
        tK = N
    n_q, n_kv = N // tN, N // tK
    mchunk = _pick_mlp_chunk(D, mlp_chunk)

    # ---- hoisted adaLN: SiLU -> Linear(H, 6H) (tiny, terrible MXU fill) ----
    cond32 = cond.astype(f32)
    silu = cond32 * jax.nn.sigmoid(cond32)
    c6 = silu @ w_ada.astype(f32) + b_ada.astype(f32)[0]            # (B, 6H)
    gamma1, beta1, alpha1, gamma2, beta2, alpha2 = jnp.split(c6, 6, axis=-1)

    # ---- hoisted LN1 + modulate + QKV projection (computed exactly once) --
    x32 = x.astype(f32)
    mu = x32.mean(-1, keepdims=True)
    var = ((x32 - mu) ** 2).mean(-1, keepdims=True)
    m1 = (x32 - mu) * jax.lax.rsqrt(var + 1e-6)
    m1 = m1 * (1.0 + beta1[:, None, :]) + gamma1[:, None, :]
    qkv = m1 @ w_qkv.astype(f32) + b_qkv.astype(f32)[0]             # (B, N, 3H)
    q_bf = qkv[..., :H].astype(bf16)                                # (B, N, H)
    kv_bf = qkv[..., H:].astype(bf16)                               # (B, N, 2H)

    mods = jnp.concatenate([alpha1, gamma2, beta2, alpha2],
                           axis=-1)[:, None, :]                     # (B, 1, 4H)

    w_proj_b = w_proj.astype(bf16); b_proj_f = b_proj.astype(f32)
    w_fc1_b = w_fc1.astype(bf16);   b_fc1_f = b_fc1.astype(f32)
    w_fc2_b = w_fc2.astype(bf16);   b_fc2_f = b_fc2.astype(f32)

    kernel = functools.partial(dit_block_kernel, num_heads=num_heads,
                               mlp_chunk=mchunk, exp_in_bf16=_has_bf16_eup())

    # Cost estimate for the kernel itself (QKV/adaLN happen in the wrapper).
    flops = int(B * (4 * N * N * H + 2 * N * H * H + 4 * N * H * D))
    transcendentals = int(B * (num_heads * N * N + N * D + 2 * N))
    bytes_accessed = int(
        x.size * x.dtype.itemsize
        + q_bf.size * 2 + kv_bf.size * 2 * n_q                       # KV re-streamed per q tile
        + mods.size * 4
        + (w_proj.size + w_fc1.size + w_fc2.size) * 2
        + (b_proj.size + b_fc1.size + b_fc2.size) * 4
        + x.size * x.dtype.itemsize)

    vmem_limit = int(min(max(vmem_cap * 7 // 8, 32 << 20), 112 << 20))

    def _call(single_buffer_weights):
        wkw = {}
        if single_buffer_weights and hasattr(pl, "Buffered"):
            # Weights have constant index_maps; avoid double-buffering them.
            wkw = dict(pipeline_mode=pl.Buffered(1))

        def wspec(a):
            return pl.BlockSpec(a.shape, lambda b, q, k: (0, 0), **wkw)

        return pl.pallas_call(
            kernel,
            out_shape=jax.ShapeDtypeStruct((B, N, H), x.dtype),
            grid=(B, n_q, n_kv),
            in_specs=[
                pl.BlockSpec((1, tN, H), lambda b, q, k: (b, q, 0)),      # x (residual)
                pl.BlockSpec((1, tN, H), lambda b, q, k: (b, q, 0)),      # q (bf16)
                pl.BlockSpec((1, tK, 2 * H), lambda b, q, k: (b, k, 0)),  # kv slab (bf16, streamed)
                pl.BlockSpec((1, 1, 4 * H), lambda b, q, k: (b, 0, 0)),   # modulation vectors
                wspec(w_proj_b), wspec(b_proj_f),
                # TODO(synk): on v7x, stream w_fc1/w_fc2 chunks through the
                # pipeline (or fp8-quantize) if they crowd the 64 MiB VMEM.
                wspec(w_fc1_b), wspec(b_fc1_f),
                wspec(w_fc2_b), wspec(b_fc2_f),
            ],
            out_specs=pl.BlockSpec((1, tN, H), lambda b, q, k: (b, q, 0)),
            scratch_shapes=[
                pltpu.VMEM((num_heads, tN, 1), jnp.float32),   # running max
                pltpu.VMEM((num_heads, tN, 1), jnp.float32),   # running denom
                pltpu.VMEM((tN, H), jnp.float32),              # attention accumulator
                pltpu.VMEM((tN, H), jnp.bfloat16),             # normalized head outputs
            ],
            compiler_params=pltpu.CompilerParams(
                dimension_semantics=("parallel", "parallel", "arbitrary"),
                vmem_limit_bytes=vmem_limit),
            cost_estimate=pl.CostEstimate(flops=flops,
                                          transcendentals=transcendentals,
                                          bytes_accessed=bytes_accessed),
        )(x, q_bf, kv_bf, mods, w_proj_b, b_proj_f,
          w_fc1_b, b_fc1_f, w_fc2_b, b_fc2_f)

    try:
        return _call(True)
    except Exception:
        # pl.Buffered(1) not supported on this JAX/Mosaic build -> default buffering.
        return _call(False)


def dit_block_ref(x, cond, w_ada, b_ada, w_qkv, b_qkv, w_proj, b_proj,
                  w_fc1, b_fc1, w_fc2, b_fc2, *, num_heads):
    # Pure-JAX f32 reference mirroring the PyTorch forward semantics.
    B, N, H = x.shape
    hd = H // num_heads

    def ln(t):
        mu = t.mean(-1, keepdims=True)
        var = ((t - mu) ** 2).mean(-1, keepdims=True)
        return (t - mu) / jnp.sqrt(var + 1e-6)

    silu = cond * jax.nn.sigmoid(cond)
    c6 = silu @ w_ada + b_ada[0]
    gamma1, beta1, alpha1, gamma2, beta2, alpha2 = jnp.split(c6, 6, axis=1)

    m1 = ln(x) * (1.0 + beta1[:, None, :]) + gamma1[:, None, :]
    qkv = m1 @ w_qkv + b_qkv[0]
    q, k, v = jnp.split(qkv, 3, axis=-1)
    q = q.reshape(B, N, num_heads, hd).transpose(0, 2, 1, 3)
    k = k.reshape(B, N, num_heads, hd).transpose(0, 2, 1, 3)
    v = v.reshape(B, N, num_heads, hd).transpose(0, 2, 1, 3)
    s = (q @ k.transpose(0, 1, 3, 2)) / math.sqrt(hd)
    p = jax.nn.softmax(s, axis=-1)
    a = (p @ v).transpose(0, 2, 1, 3).reshape(B, N, H)
    a = a @ w_proj + b_proj[0]
    x1 = x + a * alpha1[:, None, :]

    m2 = ln(x1) * (1.0 + beta2[:, None, :]) + gamma2[:, None, :]
    f = jax.nn.gelu(m2 @ w_fc1 + b_fc1[0], approximate=True)
    f = f @ w_fc2 + b_fc2[0]
    return x1 + f * alpha2[:, None, :]


if __name__ == "__main__":
    B, N, H, num_heads = 2, 8, 32, 4
    mlp_hidden = int(H * 4.0)

    key = jax.random.PRNGKey(0)
    keys = jax.random.split(key, 12)

    def nrm(k, shape, s=0.05):
        return jax.random.normal(k, shape, jnp.float32) * s

    x = jax.random.normal(keys[0], (B, N, H), jnp.float32)
    cond = jax.random.normal(keys[1], (B, H), jnp.float32)

    w_ada = nrm(keys[2], (H, 6 * H));        b_ada = nrm(keys[3], (1, 6 * H))
    w_qkv = nrm(keys[4], (H, 3 * H));        b_qkv = nrm(keys[5], (1, 3 * H))
    w_proj = nrm(keys[6], (H, H));           b_proj = nrm(keys[7], (1, H))
    w_fc1 = nrm(keys[8], (H, mlp_hidden));   b_fc1 = nrm(keys[9], (1, mlp_hidden))
    w_fc2 = nrm(keys[10], (mlp_hidden, H));  b_fc2 = nrm(keys[11], (1, H))

    out = dit_block(x, cond, w_ada, b_ada, w_qkv, b_qkv, w_proj, b_proj,
                    w_fc1, b_fc1, w_fc2, b_fc2, num_heads=num_heads)
    out = jax.block_until_ready(out)

    ref = dit_block_ref(x, cond, w_ada, b_ada, w_qkv, b_qkv, w_proj, b_proj,
                        w_fc1, b_fc1, w_fc2, b_fc2, num_heads=num_heads)
    assert out.shape == (B, N, H)
    max_err = float(jnp.max(jnp.abs(out - ref)))
    # bf16 matmul operands + (optional) bf16 exp + approx reciprocal.
    assert jnp.allclose(out, ref, rtol=2e-2, atol=2e-2), max_err

    print("KERNEL_OK")
</pallas_src>

<mosaic_0001>
module attributes {stable_mosaic.version = 11 : i64} {
  func.func @dit_block_kernel(%arg0: i32, %arg1: i32, %arg2: i32, %arg3: memref<1x8x32xf32, #tpu.memory_space<vmem>>, %arg4: memref<1x8x32xbf16, #tpu.memory_space<vmem>>, %arg5: memref<1x8x64xbf16, #tpu.memory_space<vmem>>, %arg6: memref<1x1x128xf32, #tpu.memory_space<vmem>>, %arg7: memref<32x32xbf16, #tpu.memory_space<vmem>>, %arg8: memref<1x32xf32, #tpu.memory_space<vmem>>, %arg9: memref<32x128xbf16, #tpu.memory_space<vmem>>, %arg10: memref<1x128xf32, #tpu.memory_space<vmem>>, %arg11: memref<128x32xbf16, #tpu.memory_space<vmem>>, %arg12: memref<1x32xf32, #tpu.memory_space<vmem>>, %arg13: memref<1x8x32xf32, #tpu.memory_space<vmem>>, %arg14: memref<4x8x1xf32, #tpu.memory_space<vmem>>, %arg15: memref<4x8x1xf32, #tpu.memory_space<vmem>>, %arg16: memref<8x32xf32, #tpu.memory_space<vmem>>, %arg17: memref<8x32xbf16, #tpu.memory_space<vmem>>) attributes {dimension_semantics = [#tpu.dimension_semantics<parallel>, #tpu.dimension_semantics<parallel>, #tpu.dimension_semantics<arbitrary>], iteration_bounds = array<i64: 2, 1, 1>, scalar_prefetch = 0 : i64, scratch_operands = 4 : i64, tpu.core_type = #tpu.core_type<tc>, window_params = [{transform_indices = @transform_0, window_bounds = array<i64: 1, 8, 32>}, {transform_indices = @transform_1, window_bounds = array<i64: 1, 8, 32>}, {transform_indices = @transform_2, window_bounds = array<i64: 1, 8, 64>}, {transform_indices = @transform_3, window_bounds = array<i64: 1, 1, 128>}, {pipeline_mode = #tpu.pipeline_mode<synchronous>, transform_indices = @transform_4, window_bounds = array<i64: 32, 32>}, {pipeline_mode = #tpu.pipeline_mode<synchronous>, transform_indices = @transform_5, window_bounds = array<i64: 1, 32>}, {pipeline_mode = #tpu.pipeline_mode<synchronous>, transform_indices = @transform_6, window_bounds = array<i64: 32, 128>}, {pipeline_mode = #tpu.pipeline_mode<synchronous>, transform_indices = @transform_7, window_bounds = array<i64: 1, 128>}, {pipeline_mode = #tpu.pipeline_mode<synchronous>, transform_indices = @transform_8, window_bounds = array<i64: 128, 32>}, {pipeline_mode = #tpu.pipeline_mode<synchronous>, transform_indices = @transform_9, window_bounds = array<i64: 1, 32>}, {transform_indices = @transform_10, window_bounds = array<i64: 1, 8, 32>}]} {
    %c0_i32 = arith.constant 0 : i32
    %0 = arith.cmpi eq, %arg2, %c0_i32 : i32
    %1 = arith.extui %0 : i1 to i32
    %c0_i32_0 = arith.constant 0 : i32
    %2 = arith.cmpi ne, %1, %c0_i32_0 : i32
    scf.if %2 {
      %cst_82 = arith.constant 0xFF800000 : f32
      %146 = vector.broadcast %cst_82 : f32 to vector<4x8x1xf32>
      %c0_83 = arith.constant 0 : index
      %c0_84 = arith.constant 0 : index
      %c0_85 = arith.constant 0 : index
      %147 = vector.load %arg14[%c0_83, %c0_84, %c0_85] : memref<4x8x1xf32, #tpu.memory_space<vmem>>, vector<4x8x1xf32>
      tpu.vector_store %arg14[%c0_83, %c0_84, %c0_85], %146 {strides = array<i32>} : memref<4x8x1xf32, #tpu.memory_space<vmem>>, vector<4x8x1xf32>,
      %cst_86 = arith.constant 0.000000e+00 : f32
      %148 = vector.broadcast %cst_86 : f32 to vector<4x8x1xf32>
      %c0_87 = arith.constant 0 : index
      %c0_88 = arith.constant 0 : index
      %c0_89 = arith.constant 0 : index
      %149 = vector.load %arg15[%c0_87, %c0_88, %c0_89] : memref<4x8x1xf32, #tpu.memory_space<vmem>>, vector<4x8x1xf32>
      tpu.vector_store %arg15[%c0_87, %c0_88, %c0_89], %148 {strides = array<i32>} : memref<4x8x1xf32, #tpu.memory_space<vmem>>, vector<4x8x1xf32>,
      %cst_90 = arith.constant 0.000000e+00 : f32
      %150 = vector.broadcast %cst_90 : f32 to vector<8x32xf32>
      %c0_91 = arith.constant 0 : index
      %c0_92 = arith.constant 0 : index
      %151 = vector.load %arg16[%c0_91, %c0_92] : memref<8x32xf32, #tpu.memory_space<vmem>>, vector<8x32xf32>
      tpu.vector_store %arg16[%c0_91, %c0_92], %150 {strides = array<i32>} : memref<8x32xf32, #tpu.memory_space<vmem>>, vector<8x32xf32>,
    } else {
    }
    %c0 = arith.constant 0 : index
    %c0_1 = arith.constant 0 : index
    %c0_2 = arith.constant 0 : index
    %3 = vector.load %arg4[%c0, %c0_1, %c0_2] : memref<1x8x32xbf16, #tpu.memory_space<vmem>>, vector<1x8x32xbf16>
    %4 = vector.shape_cast %3 : vector<1x8x32xbf16> to vector<8x32xbf16>
    %5 = arith.extf %4 : vector<8x32xbf16> to vector<8x32xf32>
    %cst = arith.constant 0.353553385 : f32
    %6 = vector.broadcast %cst : f32 to vector<8x32xf32>
    %7 = arith.mulf %5, %6 : vector<8x32xf32>
    %8 = arith.truncf %7 : vector<8x32xf32> to vector<8x32xbf16>
    %c0_3 = arith.constant 0 : index
    %c0_4 = arith.constant 0 : index
    %c0_5 = arith.constant 0 : index
    %9 = vector.load %arg5[%c0_3, %c0_4, %c0_5] : memref<1x8x64xbf16, #tpu.memory_space<vmem>>, vector<1x8x64xbf16>
    %10 = vector.shape_cast %9 : vector<1x8x64xbf16> to vector<8x64xbf16>
    %11 = vector.extract_strided_slice %8 {offsets = [0, 0], sizes = [8, 8], strides = [1, 1]} : vector<8x32xbf16> to vector<8x8xbf16>
    %12 = vector.extract_strided_slice %10 {offsets = [0, 0], sizes = [8, 8], strides = [1, 1]} : vector<8x64xbf16> to vector<8x8xbf16>
    %13 = vector.extract_strided_slice %10 {offsets = [0, 32], sizes = [8, 8], strides = [1, 1]} : vector<8x64xbf16> to vector<8x8xbf16>
    %cst_6 = arith.constant dense<0.000000e+00> : vector<8x8xf32>
    %14 = tpu.matmul %11, %12, %cst_6 {dimension_numbers = #tpu.dot_dimension_numbers<[1], [1], [0], [0], [0, 0, 1, 0], [], []>} : vector<8x8xbf16>, vector<8x8xbf16>, vector<8x8xf32> -> vector<8x8xf32>
    %c0_7 = arith.constant 0 : index
    %c0_8 = arith.constant 0 : index
    %c0_9 = arith.constant 0 : index
    %15 = vector.load %arg14[%c0_7, %c0_8, %c0_9] : memref<4x8x1xf32, #tpu.memory_space<vmem>>, vector<1x8x1xf32>
    %16 = vector.shape_cast %15 : vector<1x8x1xf32> to vector<8x1xf32>
    %cst_10 = arith.constant dense<0xFF800000> : vector<8xf32>
    %17 = vector.multi_reduction <maximumf>, %14, %cst_10 [1] : vector<8x8xf32> to vector<8xf32>
    %18 = vector.shape_cast %17 : vector<8xf32> to vector<8x1xf32>
    %19 = arith.maximumf %16, %18 : vector<8x1xf32>
    %20 = arith.subf %16, %19 : vector<8x1xf32>
    %21 = math.exp %20 : vector<8x1xf32>
    %22 = vector.broadcast %19 : vector<8x1xf32> to vector<8x8xf32>
    %23 = arith.subf %14, %22 : vector<8x8xf32>
    %24 = math.exp %23 : vector<8x8xf32>
    %25 = arith.truncf %24 : vector<8x8xf32> to vector<8x8xbf16>
    %cst_11 = arith.constant dense<0.000000e+00> : vector<8xf32>
    %26 = vector.multi_reduction <add>, %24, %cst_11 [1] : vector<8x8xf32> to vector<8xf32>
    %27 = vector.shape_cast %26 : vector<8xf32> to vector<8x1xf32>
    %c0_12 = arith.constant 0 : index
    %c0_13 = arith.constant 0 : index
    %c0_14 = arith.constant 0 : index
    %28 = vector.load %arg15[%c0_12, %c0_13, %c0_14] : memref<4x8x1xf32, #tpu.memory_space<vmem>>, vector<1x8x1xf32>
    %29 = vector.shape_cast %28 : vector<1x8x1xf32> to vector<8x1xf32>
    %30 = arith.mulf %21, %29 : vector<8x1xf32>
    %31 = arith.addf %30, %27 : vector<8x1xf32>
    %c0_15 = arith.constant 0 : index
    %c0_16 = arith.constant 0 : index
    %c0_17 = arith.constant 0 : index
    %32 = vector.load %arg15[%c0_15, %c0_16, %c0_17] : memref<4x8x1xf32, #tpu.memory_space<vmem>>, vector<1x8x1xf32>
    %33 = vector.shape_cast %32 : vector<1x8x1xf32> to vector<8x1xf32>
    %34 = vector.shape_cast %31 : vector<8x1xf32> to vector<1x8x1xf32>
    tpu.vector_store %arg15[%c0_15, %c0_16, %c0_17], %34 {strides = array<i32>} : memref<4x8x1xf32, #tpu.memory_space<vmem>>, vector<1x8x1xf32>,
    %cst_18 = arith.constant dense<0.000000e+00> : vector<8x8xf32>
    %35 = tpu.matmul %25, %13, %cst_18 {dimension_numbers = #tpu.dot_dimension_numbers<[1], [0], [0], [1], [0, 0, 1, 1], [], []>} : vector<8x8xbf16>, vector<8x8xbf16>, vector<8x8xf32> -> vector<8x8xf32>
    %c0_19 = arith.constant 0 : index
    %c0_20 = arith.constant 0 : index
    %36 = vector.load %arg16[%c0_19, %c0_20] : memref<8x32xf32, #tpu.memory_space<vmem>>, vector<8x8xf32>
    %37 = vector.broadcast %21 : vector<8x1xf32> to vector<8x8xf32>
    %38 = arith.mulf %37, %36 : vector<8x8xf32>
    %39 = arith.addf %38, %35 : vector<8x8xf32>
    %c0_21 = arith.constant 0 : index
    %c0_22 = arith.constant 0 : index
    %40 = vector.load %arg16[%c0_21, %c0_22] : memref<8x32xf32, #tpu.memory_space<vmem>>, vector<8x8xf32>
    tpu.vector_store %arg16[%c0_21, %c0_22], %39 {strides = array<i32>} : memref<8x32xf32, #tpu.memory_space<vmem>>, vector<8x8xf32>,
    %c0_23 = arith.constant 0 : index
    %c0_24 = arith.constant 0 : index
    %c0_25 = arith.constant 0 : index
    %41 = vector.load %arg14[%c0_23, %c0_24, %c0_25] : memref<4x8x1xf32, #tpu.memory_space<vmem>>, vector<1x8x1xf32>
    %42 = vector.shape_cast %41 : vector<1x8x1xf32> to vector<8x1xf32>
    %43 = vector.shape_cast %19 : vector<8x1xf32> to vector<1x8x1xf32>
    tpu.vector_store %arg14[%c0_23, %c0_24, %c0_25], %43 {strides = array<i32>} : memref<4x8x1xf32, #tpu.memory_space<vmem>>, vector<1x8x1xf32>,
    %44 = vector.extract_strided_slice %8 {offsets = [0, 8], sizes = [8, 8], strides = [1, 1]} : vector<8x32xbf16> to vector<8x8xbf16>
    %45 = vector.extract_strided_slice %10 {offsets = [0, 8], sizes = [8, 8], strides = [1, 1]} : vector<8x64xbf16> to vector<8x8xbf16>
    %46 = vector.extract_strided_slice %10 {offsets = [0, 40], sizes = [8, 8], strides = [1, 1]} : vector<8x64xbf16> to vector<8x8xbf16>
    %cst_26 = arith.constant dense<0.000000e+00> : vector<8x8xf32>
    %47 = tpu.matmul %44, %45, %cst_26 {dimension_numbers = #tpu.dot_dimension_numbers<[1], [1], [0], [0], [0, 0, 1, 0], [], []>} : vector<8x8xbf16>, vector<8x8xbf16>, vector<8x8xf32> -> vector<8x8xf32>
    %c1 = arith.constant 1 : index
    %c0_27 = arith.constant 0 : index
    %c0_28 = arith.constant 0 : index
    %48 = vector.load %arg14[%c1, %c0_27, %c0_28] : memref<4x8x1xf32, #tpu.memory_space<vmem>>, vector<1x8x1xf32>
    %49 = vector.shape_cast %48 : vector<1x8x1xf32> to vector<8x1xf32>
    %cst_29 = arith.constant dense<0xFF800000> : vector<8xf32>
    %50 = vector.multi_reduction <maximumf>, %47, %cst_29 [1] : vector<8x8xf32> to vector<8xf32>
    %51 = vector.shape_cast %50 : vector<8xf32> to vector<8x1xf32>
    %52 = arith.maximumf %49, %51 : vector<8x1xf32>
    %53 = arith.subf %49, %52 : vector<8x1xf32>
    %54 = math.exp %53 : vector<8x1xf32>
    %55 = vector.broadcast %52 : vector<8x1xf32> to vector<8x8xf32>
    %56 = arith.subf %47, %55 : vector<8x8xf32>
    %57 = math.exp %56 : vector<8x8xf32>
    %58 = arith.truncf %57 : vector<8x8xf32> to vector<8x8xbf16>
    %cst_30 = arith.constant dense<0.000000e+00> : vector<8xf32>
    %59 = vector.multi_reduction <add>, %57, %cst_30 [1] : vector<8x8xf32> to vector<8xf32>
    %60 = vector.shape_cast %59 : vector<8xf32> to vector<8x1xf32>
    %c1_31 = arith.constant 1 : index
    %c0_32 = arith.constant 0 : index
    %c0_33 = arith.constant 0 : index
    %61 = vector.load %arg15[%c1_31, %c0_32, %c0_33] : memref<4x8x1xf32, #tpu.memory_space<vmem>>, vector<1x8x1xf32>
    %62 = vector.shape_cast %61 : vector<1x8x1xf32> to vector<8x1xf32>
    %63 = arith.mulf %54, %62 : vector<8x1xf32>
    %64 = arith.addf %63, %60 : vector<8x1xf32>
    %c1_34 = arith.constant 1 : index
    %c0_35 = arith.constant 0 : index
    %c0_36 = arith.constant 0 : index
    %65 = vector.load %arg15[%c1_34, %c0_35, %c0_36] : memref<4x8x1xf32, #tpu.memory_space<vmem>>, vector<1x8x1xf32>
    %66 = vector.shape_cast %65 : vector<1x8x1xf32> to vector<8x1xf32>
    %67 = vector.shape_cast %64 : vector<8x1xf32> to vector<1x8x1xf32>
    tpu.vector_store %arg15[%c1_34, %c0_35, %c0_36], %67 {strides = array<i32>} : memref<4x8x1xf32, #tpu.memory_space<vmem>>, vector<1x8x1xf32>,
    %cst_37 = arith.constant dense<0.000000e+00> : vector<8x8xf32>
    %68 = tpu.matmul %58, %46, %cst_37 {dimension_numbers = #tpu.dot_dimension_numbers<[1], [0], [0], [1], [0, 0, 1, 1], [], []>} : vector<8x8xbf16>, vector<8x8xbf16>, vector<8x8xf32> -> vector<8x8xf32>
    %c0_38 = arith.constant 0 : index
    %c8 = arith.constant 8 : index
    %69 = vector.load %arg16[%c0_38, %c8] : memref<8x32xf32, #tpu.memory_space<vmem>>, vector<8x8xf32>
    %70 = vector.broadcast %54 : vector<8x1xf32> to vector<8x8xf32>
    %71 = arith.mulf %70, %69 : vector<8x8xf32>
    %72 = arith.addf %71, %68 : vector<8x8xf32>
    %c0_39 = arith.constant 0 : index
    %c8_40 = arith.constant 8 : index
    %73 = vector.load %arg16[%c0_39, %c8_40] : memref<8x32xf32, #tpu.memory_space<vmem>>, vector<8x8xf32>
    tpu.vector_store %arg16[%c0_39, %c8_40], %72 {strides = array<i32>} : memref<8x32xf32, #tpu.memory_space<vmem>>, vector<8x8xf32>,
    %c1_41 = arith.constant 1 : index
    %c0_42 = arith.constant 0 : index
    %c0_43 = arith.constant 0 : index
    %74 = vector.load %arg14[%c1_41, %c0_42, %c0_43] : memref<4x8x1xf32, #tpu.memory_space<vmem>>, vector<1x8x1xf32>
    %75 = vector.shape_cast %74 : vector<1x8x1xf32> to vector<8x1xf32>
    %76 = vector.shape_cast %52 : vector<8x1xf32> to vector<1x8x1xf32>
    tpu.vector_store %arg14[%c1_41, %c0_42, %c0_43], %76 {strides = array<i32>} : memref<4x8x1xf32, #tpu.memory_space<vmem>>, vector<1x8x1xf32>,
    %77 = vector.extract_strided_slice %8 {offsets = [0, 16], sizes = [8, 8], strides = [1, 1]} : vector<8x32xbf16> to vector<8x8xbf16>
    %78 = vector.extract_strided_slice %10 {offsets = [0, 16], sizes = [8, 8], strides = [1, 1]} : vector<8x64xbf16> to vector<8x8xbf16>
    %79 = vector.extract_strided_slice %10 {offsets = [0, 48], sizes = [8, 8], strides = [1, 1]} : vector<8x64xbf16> to vector<8x8xbf16>
    %cst_44 = arith.constant dense<0.000000e+00> : vector<8x8xf32>
    %80 = tpu.matmul %77, %78, %cst_44 {dimension_numbers = #tpu.dot_dimension_numbers<[1], [1], [0], [0], [0, 0, 1, 0], [], []>} : vector<8x8xbf16>, vector<8x8xbf16>, vector<8x8xf32> -> vector<8x8xf32>
    %c2 = arith.constant 2 : index
    %c0_45 = arith.constant 0 : index
    %c0_46 = arith.constant 0 : index
    %81 = vector.load %arg14[%c2, %c0_45, %c0_46] : memref<4x8x1xf32, #tpu.memory_space<vmem>>, vector<1x8x1xf32>
    %82 = vector.shape_cast %81 : vector<1x8x1xf32> to vector<8x1xf32>
    %cst_47 = arith.constant dense<0xFF800000> : vector<8xf32>
    %83 = vector.multi_reduction <maximumf>, %80, %cst_47 [1] : vector<8x8xf32> to vector<8xf32>
    %84 = vector.shape_cast %83 : vector<8xf32> to vector<8x1xf32>
    %85 = arith.maximumf %82, %84 : vector<8x1xf32>
    %86 = arith.subf %82, %85 : vector<8x1xf32>
    %87 = math.exp %86 : vector<8x1xf32>
    %88 = vector.broadcast %85 : vector<8x1xf32> to vector<8x8xf32>
    %89 = arith.subf %80, %88 : vector<8x8xf32>
    %90 = math.exp %89 : vector<8x8xf32>
    %91 = arith.truncf %90 : vector<8x8xf32> to vector<8x8xbf16>
    %cst_48 = arith.constant dense<0.000000e+00> : vector<8xf32>
    %92 = vector.multi_reduction <add>, %90, %cst_48 [1] : vector<8x8xf32> to vector<8xf32>
    %93 = vector.shape_cast %92 : vector<8xf32> to vector<8x1xf32>
    %c2_49 = arith.constant 2 : index
    %c0_50 = arith.constant 0 : index
    %c0_51 = arith.constant 0 : index
    %94 = vector.load %arg15[%c2_49, %c0_50, %c0_51] : memref<4x8x1xf32, #tpu.memory_space<vmem>>, vector<1x8x1xf32>
    %95 = vector.shape_cast %94 : vector<1x8x1xf32> to vector<8x1xf32>
    %96 = arith.mulf %87, %95 : vector<8x1xf32>
    %97 = arith.addf %96, %93 : vector<8x1xf32>
    %c2_52 = arith.constant 2 : index
    %c0_53 = arith.constant 0 : index
    %c0_54 = arith.constant 0 : index
    %98 = vector.load %arg15[%c2_52, %c0_53, %c0_54] : memref<4x8x1xf32, #tpu.memory_space<vmem>>, vector<1x8x1xf32>
    %99 = vector.shape_cast %98 : vector<1x8x1xf32> to vector<8x1xf32>
    %100 = vector.shape_cast %97 : vector<8x1xf32> to vector<1x8x1xf32>
    tpu.vector_store %arg15[%c2_52, %c0_53, %c0_54], %100 {strides = array<i32>} : memref<4x8x1xf32, #tpu.memory_space<vmem>>, vector<1x8x1xf32>,
    %cst_55 = arith.constant dense<0.000000e+00> : vector<8x8xf32>
    %101 = tpu.matmul %91, %79, %cst_55 {dimension_numbers = #tpu.dot_dimension_numbers<[1], [0], [0], [1], [0, 0, 1, 1], [], []>} : vector<8x8xbf16>, vector<8x8xbf16>, vector<8x8xf32> -> vector<8x8xf32>
    %c0_56 = arith.constant 0 : index
    %c16 = arith.constant 16 : index
    %102 = vector.load %arg16[%c0_56, %c16] : memref<8x32xf32, #tpu.memory_space<vmem>>, vector<8x8xf32>
    %103 = vector.broadcast %87 : vector<8x1xf32> to vector<8x8xf32>
    %104 = arith.mulf %103, %102 : vector<8x8xf32>
    %105 = arith.addf %104, %101 : vector<8x8xf32>
    %c0_57 = arith.constant 0 : index
    %c16_58 = arith.constant 16 : index
    %106 = vector.load %arg16[%c0_57, %c16_58] : memref<8x32xf32, #tpu.memory_space<vmem>>, vector<8x8xf32>
    tpu.vector_store %arg16[%c0_57, %c16_58], %105 {strides = array<i32>} : memref<8x32xf32, #tpu.memory_space<vmem>>, vector<8x8xf32>,
    %c2_59 = arith.constant 2 : index
    %c0_60 = arith.constant 0 : index
    %c0_61 = arith.constant 0 : index
    %107 = vector.load %arg14[%c2_59, %c0_60, %c0_61] : memref<4x8x1xf32, #tpu.memory_space<vmem>>, vector<1x8x1xf32>
    %108 = vector.shape_cast %107 : vector<1x8x1xf32> to vector<8x1xf32>
    %109 = vector.shape_cast %85 : vector<8x1xf32> to vector<1x8x1xf32>
    tpu.vector_store %arg14[%c2_59, %c0_60, %c0_61], %109 {strides = array<i32>} : memref<4x8x1xf32, #tpu.memory_space<vmem>>, vector<1x8x1xf32>,
    %110 = vector.extract_strided_slice %8 {offsets = [0, 24], sizes = [8, 8], strides = [1, 1]} : vector<8x32xbf16> to vector<8x8xbf16>
    %111 = vector.extract_strided_slice %10 {offsets = [0, 24], sizes = [8, 8], strides = [1, 1]} : vector<8x64xbf16> to vector<8x8xbf16>
    %112 = vector.extract_strided_slice %10 {offsets = [0, 56], sizes = [8, 8], strides = [1, 1]} : vector<8x64xbf16> to vector<8x8xbf16>
    %cst_62 = arith.constant dense<0.000000e+00> : vector<8x8xf32>
    %113 = tpu.matmul %110, %111, %cst_62 {dimension_numbers = #tpu.dot_dimension_numbers<[1], [1], [0], [0], [0, 0, 1, 0], [], []>} : vector<8x8xbf16>, vector<8x8xbf16>, vector<8x8xf32> -> vector<8x8xf32>
    %c3 = arith.constant 3 : index
    %c0_63 = arith.constant 0 : index
    %c0_64 = arith.constant 0 : index
    %114 = vector.load %arg14[%c3, %c0_63, %c0_64] : memref<4x8x1xf32, #tpu.memory_space<vmem>>, vector<1x8x1xf32>
    %115 = vector.shape_cast %114 : vector<1x8x1xf32> to vector<8x1xf32>
    %cst_65 = arith.constant dense<0xFF800000> : vector<8xf32>
    %116 = vector.multi_reduction <maximumf>, %113, %cst_65 [1] : vector<8x8xf32> to vector<8xf32>
    %117 = vector.shape_cast %116 : vector<8xf32> to vector<8x1xf32>
    %118 = arith.maximumf %115, %117 : vector<8x1xf32>
    %119 = arith.subf %115, %118 : vector<8x1xf32>
    %120 = math.exp %119 : vector<8x1xf32>
    %121 = vector.broadcast %118 : vector<8x1xf32> to vector<8x8xf32>
    %122 = arith.subf %113, %121 : vector<8x8xf32>
    %123 = math.exp %122 : vector<8x8xf32>
    %124 = arith.truncf %123 : vector<8x8xf32> to vector<8x8xbf16>
    %cst_66 = arith.constant dense<0.000000e+00> : vector<8xf32>
    %125 = vector.multi_reduction <add>, %123, %cst_66 [1] : vector<8x8xf32> to vector<8xf32>
    %126 = vector.shape_cast %125 : vector<8xf32> to vector<8x1xf32>
    %c3_67 = arith.constant 3 : index
    %c0_68 = arith.constant 0 : index
    %c0_69 = arith.constant 0 : index
    %127 = vector.load %arg15[%c3_67, %c0_68, %c0_69] : memref<4x8x1xf32, #tpu.memory_space<vmem>>, vector<1x8x1xf32>
    %128 = vector.shape_cast %127 : vector<1x8x1xf32> to vector<8x1xf32>
    %129 = arith.mulf %120, %128 : vector<8x1xf32>
    %130 = arith.addf %129, %126 : vector<8x1xf32>
    %c3_70 = arith.constant 3 : index
    %c0_71 = arith.constant 0 : index
    %c0_72 = arith.constant 0 : index
    %131 = vector.load %arg15[%c3_70, %c0_71, %c0_72] : memref<4x8x1xf32, #tpu.memory_space<vmem>>, vector<1x8x1xf32>
    %132 = vector.shape_cast %131 : vector<1x8x1xf32> to vector<8x1xf32>
    %133 = vector.shape_cast %130 : vector<8x1xf32> to vector<1x8x1xf32>
    tpu.vector_store %arg15[%c3_70, %c0_71, %c0_72], %133 {strides = array<i32>} : memref<4x8x1xf32, #tpu.memory_space<vmem>>, vector<1x8x1xf32>,
    %cst_73 = arith.constant dense<0.000000e+00> : vector<8x8xf32>
    %134 = tpu.matmul %124, %112, %cst_73 {dimension_numbers = #tpu.dot_dimension_numbers<[1], [0], [0], [1], [0, 0, 1, 1], [], []>} : vector<8x8xbf16>, vector<8x8xbf16>, vector<8x8xf32> -> vector<8x8xf32>
    %c0_74 = arith.constant 0 : index
    %c24 = arith.constant 24 : index
    %135 = vector.load %arg16[%c0_74, %c24] : memref<8x32xf32, #tpu.memory_space<vmem>>, vector<8x8xf32>
    %136 = vector.broadcast %120 : vector<8x1xf32> to vector<8x8xf32>
    %137 = arith.mulf %136, %135 : vector<8x8xf32>
    %138 = arith.addf %137, %134 : vector<8x8xf32>
    %c0_75 = arith.constant 0 : index
    %c24_76 = arith.constant 24 : index
    %139 = vector.load %arg16[%c0_75, %c24_76] : memref<8x32xf32, #tpu.memory_space<vmem>>, vector<8x8xf32>
    tpu.vector_store %arg16[%c0_75, %c24_76], %138 {strides = array<i32>} : memref<8x32xf32, #tpu.memory_space<vmem>>, vector<8x8xf32>,
    %c3_77 = arith.constant 3 : index
    %c0_78 = arith.constant 0 : index
    %c0_79 = arith.constant 0 : index
    %140 = vector.load %arg14[%c3_77, %c0_78, %c0_79] : memref<4x8x1xf32, #tpu.memory_space<vmem>>, vector<1x8x1xf32>
    %141 = vector.shape_cast %140 : vector<1x8x1xf32> to vector<8x1xf32>
    %142 = vector.shape_cast %118 : vector<8x1xf32> to vector<1x8x1xf32>
    tpu.vector_store %arg14[%c3_77, %c0_78, %c0_79], %142 {strides = array<i32>} : memref<4x8x1xf32, #tpu.memory_space<vmem>>, vector<1x8x1xf32>,
    %c0_i32_80 = arith.constant 0 : i32
    %143 = arith.cmpi eq, %arg2, %c0_i32_80 : i32
    %144 = arith.extui %143 : i1 to i32
    %c0_i32_81 = arith.constant 0 : i32
    %145 = arith.cmpi ne, %144, %c0_i32_81 : i32
    scf.if %145 {
      %c0_82 = arith.constant 0 : index
      %c0_83 = arith.constant 0 : index
      %c0_84 = arith.constant 0 : index
      %146 = vector.load %arg6[%c0_82, %c0_83, %c0_84] : memref<1x1x128xf32, #tpu.memory_space<vmem>>, vector<1x1x128xf32>
      %147 = vector.shape_cast %146 : vector<1x1x128xf32> to vector<1x128xf32>
      %148 = vector.extract_strided_slice %147 {offsets = [0, 0], sizes = [1, 32], strides = [1, 1]} : vector<1x128xf32> to vector<1x32xf32>
      %149 = vector.extract_strided_slice %147 {offsets = [0, 32], sizes = [1, 32], strides = [1, 1]} : vector<1x128xf32> to vector<1x32xf32>
      %150 = vector.extract_strided_slice %147 {offsets = [0, 64], sizes = [1, 32], strides = [1, 1]} : vector<1x128xf32> to vector<1x32xf32>
      %151 = vector.extract_strided_slice %147 {offsets = [0, 96], sizes = [1, 32], strides = [1, 1]} : vector<1x128xf32> to vector<1x32xf32>
      %c0_85 = arith.constant 0 : index
      %c0_86 = arith.constant 0 : index
      %c0_87 = arith.constant 0 : index
      %152 = vector.load %arg15[%c0_85, %c0_86, %c0_87] : memref<4x8x1xf32, #tpu.memory_space<vmem>>, vector<1x8x1xf32>
      %153 = vector.shape_cast %152 : vector<1x8x1xf32> to vector<8x1xf32>
      %154 = tpu.reciprocal %153 {approx = true} : vector<8x1xf32> -> vector<8x1xf32>
      %c0_88 = arith.constant 0 : index
      %c0_89 = arith.constant 0 : index
      %155 = vector.load %arg16[%c0_88, %c0_89] : memref<8x32xf32, #tpu.memory_space<vmem>>, vector<8x8xf32>
      %156 = vector.broadcast %154 : vector<8x1xf32> to vector<8x8xf32>
      %157 = arith.mulf %155, %156 : vector<8x8xf32>
      %158 = arith.truncf %157 : vector<8x8xf32> to vector<8x8xbf16>
      %c0_90 = arith.constant 0 : index
      %c0_91 = arith.constant 0 : index
      %159 = vector.load %arg17[%c0_90, %c0_91] : memref<8x32xbf16, #tpu.memory_space<vmem>>, vector<8x8xbf16>
      tpu.vector_store %arg17[%c0_90, %c0_91], %158 {strides = array<i32>} : memref<8x32xbf16, #tpu.memory_space<vmem>>, vector<8x8xbf16>,
      %c1_92 = arith.constant 1 : index
      %c0_93 = arith.constant 0 : index
      %c0_94 = arith.constant 0 : index
      %160 = vector.load %arg15[%c1_92, %c0_93, %c0_94] : memref<4x8x1xf32, #tpu.memory_space<vmem>>, vector<1x8x1xf32>
      %161 = vector.shape_cast %160 : vector<1x8x1xf32> to vector<8x1xf32>
      %162 = tpu.reciprocal %161 {approx = true} : vector<8x1xf32> -> vector<8x1xf32>
      %c0_95 = arith.constant 0 : index
      %c8_96 = arith.constant 8 : index
      %163 = vector.load %arg16[%c0_95, %c8_96] : memref<8x32xf32, #tpu.memory_space<vmem>>, vector<8x8xf32>
      %164 = vector.broadcast %162 : vector<8x1xf32> to vector<8x8xf32>
      %165 = arith.mulf %163, %164 : vector<8x8xf32>
      %166 = arith.truncf %165 : vector<8x8xf32> to vector<8x8xbf16>
      %c0_97 = arith.constant 0 : index
      %c8_98 = arith.constant 8 : index
      %167 = vector.load %arg17[%c0_97, %c8_98] : memref<8x32xbf16, #tpu.memory_space<vmem>>, vector<8x8xbf16>
      tpu.vector_store %arg17[%c0_97, %c8_98], %166 {strides = array<i32>} : memref<8x32xbf16, #tpu.memory_space<vmem>>, vector<8x8xbf16>,
      %c2_99 = arith.constant 2 : index
      %c0_100 = arith.constant 0 : index
      %c0_101 = arith.constant 0 : index
      %168 = vector.load %arg15[%c2_99, %c0_100, %c0_101] : memref<4x8x1xf32, #tpu.memory_space<vmem>>, vector<1x8x1xf32>
      %169 = vector.shape_cast %168 : vector<1x8x1xf32> to vector<8x1xf32>
      %170 = tpu.reciprocal %169 {approx = true} : vector<8x1xf32> -> vector<8x1xf32>
      %c0_102 = arith.constant 0 : index
      %c16_103 = arith.constant 16 : index
      %171 = vector.load %arg16[%c0_102, %c16_103] : memref<8x32xf32, #tpu.memory_space<vmem>>, vector<8x8xf32>
      %172 = vector.broadcast %170 : vector<8x1xf32> to vector<8x8xf32>
      %173 = arith.mulf %171, %172 : vector<8x8xf32>
      %174 = arith.truncf %173 : vector<8x8xf32> to vector<8x8xbf16>
      %c0_104 = arith.constant 0 : index
      %c16_105 = arith.constant 16 : index
      %175 = vector.load %arg17[%c0_104, %c16_105] : memref<8x32xbf16, #tpu.memory_space<vmem>>, vector<8x8xbf16>
      tpu.vector_store %arg17[%c0_104, %c16_105], %174 {strides = array<i32>} : memref<8x32xbf16, #tpu.memory_space<vmem>>, vector<8x8xbf16>,
      %c3_106 = arith.constant 3 : index
      %c0_107 = arith.constant 0 : index
      %c0_108 = arith.constant 0 : index
      %176 = vector.load %arg15[%c3_106, %c0_107, %c0_108] : memref<4x8x1xf32, #tpu.memory_space<vmem>>, vector<1x8x1xf32>
      %177 = vector.shape_cast %176 : vector<1x8x1xf32> to vector<8x1xf32>
      %178 = tpu.reciprocal %177 {approx = true} : vector<8x1xf32> -> vector<8x1xf32>
      %c0_109 = arith.constant 0 : index
      %c24_110 = arith.constant 24 : index
      %179 = vector.load %arg16[%c0_109, %c24_110] : memref<8x32xf32, #tpu.memory_space<vmem>>, vector<8x8xf32>
      %180 = vector.broadcast %178 : vector<8x1xf32> to vector<8x8xf32>
      %181 = arith.mulf %179, %180 : vector<8x8xf32>
      %182 = arith.truncf %181 : vector<8x8xf32> to vector<8x8xbf16>
      %c0_111 = arith.constant 0 : index
      %c24_112 = arith.constant 24 : index
      %183 = vector.load %arg17[%c0_111, %c24_112] : memref<8x32xbf16, #tpu.memory_space<vmem>>, vector<8x8xbf16>
      tpu.vector_store %arg17[%c0_111, %c24_112], %182 {strides = array<i32>} : memref<8x32xbf16, #tpu.memory_space<vmem>>, vector<8x8xbf16>,
      %c0_113 = arith.constant 0 : index
      %c0_114 = arith.constant 0 : index
      %184 = vector.load %arg17[%c0_113, %c0_114] : memref<8x32xbf16, #tpu.memory_space<vmem>>, vector<8x32xbf16>
      %c0_115 = arith.constant 0 : index
      %c0_116 = arith.constant 0 : index
      %185 = vector.load %arg7[%c0_115, %c0_116] : memref<32x32xbf16, #tpu.memory_space<vmem>>, vector<32x32xbf16>
      %cst_117 = arith.constant dense<0.000000e+00> : vector<8x32xf32>
      %186 = tpu.matmul %184, %185, %cst_117 {dimension_numbers = #tpu.dot_dimension_numbers<[1], [0], [0], [1], [0, 0, 1, 1], [], []>} : vector<8x32xbf16>, vector<32x32xbf16>, vector<8x32xf32> -> vector<8x32xf32>
      %c0_118 = arith.constant 0 : index
      %c0_119 = arith.constant 0 : index
      %187 = vector.load %arg8[%c0_118, %c0_119] : memref<1x32xf32, #tpu.memory_space<vmem>>, vector<1x32xf32>
      %188 = vector.broadcast %187 : vector<1x32xf32> to vector<8x32xf32>
      %189 = arith.addf %186, %188 : vector<8x32xf32>
      %c0_120 = arith.constant 0 : index
      %c0_121 = arith.constant 0 : index
      %c0_122 = arith.constant 0 : index
      %190 = vector.load %arg3[%c0_120, %c0_121, %c0_122] : memref<1x8x32xf32, #tpu.memory_space<vmem>>, vector<1x8x32xf32>
      %191 = vector.shape_cast %190 : vector<1x8x32xf32> to vector<8x32xf32>
      %192 = vector.broadcast %148 : vector<1x32xf32> to vector<8x32xf32>
      %193 = arith.mulf %189, %192 : vector<8x32xf32>
      %194 = arith.addf %191, %193 : vector<8x32xf32>
      %cst_123 = arith.constant dense<0.000000e+00> : vector<8xf32>
      %195 = vector.multi_reduction <add>, %194, %cst_123 [1] : vector<8x32xf32> to vector<8xf32>
      %196 = vector.shape_cast %195 : vector<8xf32> to vector<8x1xf32>
      %cst_124 = arith.constant 3.200000e+01 : f32
      %197 = vector.broadcast %cst_124 : f32 to vector<8x1xf32>
      %198 = arith.divf %196, %197 : vector<8x1xf32>
      %199 = vector.broadcast %198 : vector<8x1xf32> to vector<8x32xf32>
      %200 = arith.subf %194, %199 : vector<8x32xf32>
      %201 = arith.mulf %200, %200 : vector<8x32xf32>
      %cst_125 = arith.constant dense<0.000000e+00> : vector<8xf32>
      %202 = vector.multi_reduction <add>, %201, %cst_125 [1] : vector<8x32xf32> to vector<8xf32>
      %203 = vector.shape_cast %202 : vector<8xf32> to vector<8x1xf32>
      %cst_126 = arith.constant 3.200000e+01 : f32
      %204 = vector.broadcast %cst_126 : f32 to vector<8x1xf32>
      %205 = arith.divf %203, %204 : vector<8x1xf32>
      %206 = vector.broadcast %198 : vector<8x1xf32> to vector<8x32xf32>
      %207 = arith.subf %194, %206 : vector<8x32xf32>
      %cst_127 = arith.constant 9.99999997E-7 : f32
      %208 = vector.broadcast %cst_127 : f32 to vector<8x1xf32>
      %209 = arith.addf %205, %208 : vector<8x1xf32>
      %210 = math.rsqrt %209 : vector<8x1xf32>
      %211 = vector.broadcast %210 : vector<8x1xf32> to vector<8x32xf32>
      %212 = arith.mulf %207, %211 : vector<8x32xf32>
      %cst_128 = arith.constant 1.000000e+00 : f32
      %213 = vector.broadcast %cst_128 : f32 to vector<1x32xf32>
      %214 = arith.addf %213, %150 : vector<1x32xf32>
      %215 = vector.broadcast %214 : vector<1x32xf32> to vector<8x32xf32>
      %216 = arith.mulf %212, %215 : vector<8x32xf32>
      %217 = vector.broadcast %149 : vector<1x32xf32> to vector<8x32xf32>
      %218 = arith.addf %216, %217 : vector<8x32xf32>
      %219 = arith.truncf %218 : vector<8x32xf32> to vector<8x32xbf16>
      %cst_129 = arith.constant 0.000000e+00 : f32
      %220 = vector.broadcast %cst_129 : f32 to vector<8x32xf32>
      %c0_130 = arith.constant 0 : index
      %c0_131 = arith.constant 0 : index
      %221 = vector.load %arg9[%c0_130, %c0_131] : memref<32x128xbf16, #tpu.memory_space<vmem>>, vector<32x128xbf16>
      %cst_132 = arith.constant dense<0.000000e+00> : vector<8x128xf32>
      %222 = tpu.matmul %219, %221, %cst_132 {dimension_numbers = #tpu.dot_dimension_numbers<[1], [0], [0], [1], [0, 0, 1, 1], [], []>} : vector<8x32xbf16>, vector<32x128xbf16>, vector<8x128xf32> -> vector<8x128xf32>
      %c0_133 = arith.constant 0 : index
      %c0_134 = arith.constant 0 : index
      %223 = vector.load %arg10[%c0_133, %c0_134] : memref<1x128xf32, #tpu.memory_space<vmem>>, vector<1x128xf32>
      %224 = vector.broadcast %223 : vector<1x128xf32> to vector<8x128xf32>
      %225 = arith.addf %222, %224 : vector<8x128xf32>
      %cst_135 = arith.constant 5.000000e-01 : f32
      %226 = vector.broadcast %cst_135 : f32 to vector<8x128xf32>
      %227 = arith.mulf %226, %225 : vector<8x128xf32>
      %cst_136 = arith.constant 4.471500e-02 : f32
      %228 = vector.broadcast %cst_136 : f32 to vector<8x128xf32>
      %229 = arith.mulf %228, %225 : vector<8x128xf32>
      %230 = arith.mulf %229, %225 : vector<8x128xf32>
      %231 = arith.mulf %230, %225 : vector<8x128xf32>
      %232 = arith.addf %225, %231 : vector<8x128xf32>
      %cst_137 = arith.constant 0.797884583 : f32
      %233 = vector.broadcast %cst_137 : f32 to vector<8x128xf32>
      %234 = arith.mulf %233, %232 : vector<8x128xf32>
      %235 = math.tanh %234 : vector<8x128xf32>
      %cst_138 = arith.constant 1.000000e+00 : f32
      %236 = vector.broadcast %cst_138 : f32 to vector<8x128xf32>
      %237 = arith.addf %236, %235 : vector<8x128xf32>
      %238 = arith.mulf %227, %237 : vector<8x128xf32>
      %239 = arith.truncf %238 : vector<8x128xf32> to vector<8x128xbf16>
      %c0_139 = arith.constant 0 : index
      %c0_140 = arith.constant 0 : index
      %240 = vector.load %arg11[%c0_139, %c0_140] : memref<128x32xbf16, #tpu.memory_space<vmem>>, vector<128x32xbf16>
      %cst_141 = arith.constant dense<0.000000e+00> : vector<8x32xf32>
      %241 = tpu.matmul %239, %240, %cst_141 {dimension_numbers = #tpu.dot_dimension_numbers<[1], [0], [0], [1], [0, 0, 1, 1], [], []>} : vector<8x128xbf16>, vector<128x32xbf16>, vector<8x32xf32> -> vector<8x32xf32>
      %242 = arith.addf %220, %241 : vector<8x32xf32>
      %c0_142 = arith.constant 0 : index
      %c0_143 = arith.constant 0 : index
      %243 = vector.load %arg12[%c0_142, %c0_143] : memref<1x32xf32, #tpu.memory_space<vmem>>, vector<1x32xf32>
      %244 = vector.broadcast %243 : vector<1x32xf32> to vector<8x32xf32>
      %245 = arith.addf %242, %244 : vector<8x32xf32>
      %246 = vector.broadcast %151 : vector<1x32xf32> to vector<8x32xf32>
      %247 = arith.mulf %245, %246 : vector<8x32xf32>
      %248 = arith.addf %194, %247 : vector<8x32xf32>
      %c0_144 = arith.constant 0 : index
      %c0_145 = arith.constant 0 : index
      %c0_146 = arith.constant 0 : index
      %249 = vector.load %arg13[%c0_144, %c0_145, %c0_146] : memref<1x8x32xf32, #tpu.memory_space<vmem>>, vector<1x8x32xf32>
      %250 = vector.shape_cast %249 : vector<1x8x32xf32> to vector<8x32xf32>
      %251 = vector.shape_cast %248 : vector<8x32xf32> to vector<1x8x32xf32>
      tpu.vector_store %arg13[%c0_144, %c0_145, %c0_146], %251 {strides = array<i32>} : memref<1x8x32xf32, #tpu.memory_space<vmem>>, vector<1x8x32xf32>,
    } else {
    }
    return
  }
  func.func @transform_0(%arg0: i32, %arg1: i32, %arg2: i32) -> (i32, i32, i32) {
    %c0_i32 = arith.constant 0 : i32
    %c0_i32_0 = arith.constant 0 : i32
    return %arg0, %arg1, %c0_i32 : i32, i32, i32
  }
  func.func @transform_1(%arg0: i32, %arg1: i32, %arg2: i32) -> (i32, i32, i32) {
    %c0_i32 = arith.constant 0 : i32
    %c0_i32_0 = arith.constant 0 : i32
    return %arg0, %arg1, %c0_i32 : i32, i32, i32
  }
  func.func @transform_2(%arg0: i32, %arg1: i32, %arg2: i32) -> (i32, i32, i32) {
    %c0_i32 = arith.constant 0 : i32
    %c0_i32_0 = arith.constant 0 : i32
    return %arg0, %arg2, %c0_i32 : i32, i32, i32
  }
  func.func @transform_3(%arg0: i32, %arg1: i32, %arg2: i32) -> (i32, i32, i32) {
    %c0_i32 = arith.constant 0 : i32
    %c0_i32_0 = arith.constant 0 : i32
    %c0_i32_1 = arith.constant 0 : i32
    return %arg0, %c0_i32, %c0_i32_0 : i32, i32, i32
  }
  func.func @transform_4(%arg0: i32, %arg1: i32, %arg2: i32) -> (i32, i32) {
    %c0_i32 = arith.constant 0 : i32
    %c0_i32_0 = arith.constant 0 : i32
    %c0_i32_1 = arith.constant 0 : i32
    return %c0_i32, %c0_i32_0 : i32, i32
  }
  func.func @transform_5(%arg0: i32, %arg1: i32, %arg2: i32) -> (i32, i32) {
    %c0_i32 = arith.constant 0 : i32
    %c0_i32_0 = arith.constant 0 : i32
    %c0_i32_1 = arith.constant 0 : i32
    return %c0_i32, %c0_i32_0 : i32, i32
  }
  func.func @transform_6(%arg0: i32, %arg1: i32, %arg2: i32) -> (i32, i32) {
    %c0_i32 = arith.constant 0 : i32
    %c0_i32_0 = arith.constant 0 : i32
    %c0_i32_1 = arith.constant 0 : i32
    return %c0_i32, %c0_i32_0 : i32, i32
  }
  func.func @transform_7(%arg0: i32, %arg1: i32, %arg2: i32) -> (i32, i32) {
    %c0_i32 = arith.constant 0 : i32
    %c0_i32_0 = arith.constant 0 : i32
    %c0_i32_1 = arith.constant 0 : i32
    return %c0_i32, %c0_i32_0 : i32, i32
  }
  func.func @transform_8(%arg0: i32, %arg1: i32, %arg2: i32) -> (i32, i32) {
    %c0_i32 = arith.constant 0 : i32
    %c0_i32_0 = arith.constant 0 : i32
    %c0_i32_1 = arith.constant 0 : i32
    return %c0_i32, %c0_i32_0 : i32, i32
  }
  func.func @transform_9(%arg0: i32, %arg1: i32, %arg2: i32) -> (i32, i32) {
    %c0_i32 = arith.constant 0 : i32
    %c0_i32_0 = arith.constant 0 : i32
    %c0_i32_1 = arith.constant 0 : i32
    return %c0_i32, %c0_i32_0 : i32, i32
  }
  func.func @transform_10(%arg0: i32, %arg1: i32, %arg2: i32) -> (i32, i32, i32) {
    %c0_i32 = arith.constant 0 : i32
    %c0_i32_0 = arith.constant 0 : i32
    return %arg0, %arg1, %c0_i32 : i32, i32, i32
  }
}

module attributes {stable_mosaic.version = 11 : i64} {
  func.func @dit_block_kernel(%arg0: i32, %arg1: i32, %arg2: i32, %arg3: memref<1x8x32xf32, #tpu.memory_space<vmem>>, %arg4: memref<1x8x32xbf16, #tpu.memory_space<vmem>>, %arg5: memref<1x8x64xbf16, #tpu.memory_space<vmem>>, %arg6: memref<1x1x128xf32, #tpu.memory_space<vmem>>, %arg7: memref<32x32xbf16, #tpu.memory_space<vmem>>, %arg8: memref<1x32xf32, #tpu.memory_space<vmem>>, %arg9: memref<32x128xbf16, #tpu.memory_space<vmem>>, %arg10: memref<1x128xf32, #tpu.memory_space<vmem>>, %arg11: memref<128x32xbf16, #tpu.memory_space<vmem>>, %arg12: memref<1x32xf32, #tpu.memory_space<vmem>>, %arg13: memref<1x8x32xf32, #tpu.memory_space<vmem>>, %arg14: memref<4x8x1xf32, #tpu.memory_space<vmem>>, %arg15: memref<4x8x1xf32, #tpu.memory_space<vmem>>, %arg16: memref<8x32xf32, #tpu.memory_space<vmem>>, %arg17: memref<8x32xbf16, #tpu.memory_space<vmem>>) attributes {dimension_semantics = [#tpu.dimension_semantics<parallel>, #tpu.dimension_semantics<parallel>, #tpu.dimension_semantics<arbitrary>], iteration_bounds = array<i64: 2, 1, 1>, scalar_prefetch = 0 : i64, scratch_operands = 4 : i64, tpu.core_type = #tpu.core_type<tc>, window_params = [{transform_indices = @transform_0, window_bounds = array<i64: 1, 8, 32>}, {transform_indices = @transform_1, window_bounds = array<i64: 1, 8, 32>}, {transform_indices = @transform_2, window_bounds = array<i64: 1, 8, 64>}, {transform_indices = @transform_3, window_bounds = array<i64: 1, 1, 128>}, {pipeline_mode = #tpu.pipeline_mode<synchronous>, transform_indices = @transform_4, window_bounds = array<i64: 32, 32>}, {pipeline_mode = #tpu.pipeline_mode<synchronous>, transform_indices = @transform_5, window_bounds = array<i64: 1, 32>}, {pipeline_mode = #tpu.pipeline_mode<synchronous>, transform_indices = @transform_6, window_bounds = array<i64: 32, 128>}, {pipeline_mode = #tpu.pipeline_mode<synchronous>, transform_indices = @transform_7, window_bounds = array<i64: 1, 128>}, {pipeline_mode = #tpu.pipeline_mode<synchronous>, transform_indices = @transform_8, window_bounds = array<i64: 128, 32>}, {pipeline_mode = #tpu.pipeline_mode<synchronous>, transform_indices = @transform_9, window_bounds = array<i64: 1, 32>}, {transform_indices = @transform_10, window_bounds = array<i64: 1, 8, 32>}]} {
    %c0_i32 = arith.constant 0 : i32
    %0 = arith.cmpi eq, %arg2, %c0_i32 : i32
    %1 = arith.extui %0 : i1 to i32
    %c0_i32_0 = arith.constant 0 : i32
    %2 = arith.cmpi ne, %1, %c0_i32_0 : i32
    scf.if %2 {
      %cst_82 = arith.constant 0xFF800000 : f32
      %146 = vector.broadcast %cst_82 : f32 to vector<4x8x1xf32>
      %c0_83 = arith.constant 0 : index
      %c0_84 = arith.constant 0 : index
      %c0_85 = arith.constant 0 : index
      %147 = vector.load %arg14[%c0_83, %c0_84, %c0_85] : memref<4x8x1xf32, #tpu.memory_space<vmem>>, vector<4x8x1xf32>
      tpu.vector_store %arg14[%c0_83, %c0_84, %c0_85], %146 {strides = array<i32>} : memref<4x8x1xf32, #tpu.memory_space<vmem>>, vector<4x8x1xf32>,
      %cst_86 = arith.constant 0.000000e+00 : f32
      %148 = vector.broadcast %cst_86 : f32 to vector<4x8x1xf32>
      %c0_87 = arith.constant 0 : index
      %c0_88 = arith.constant 0 : index
      %c0_89 = arith.constant 0 : index
      %149 = vector.load %arg15[%c0_87, %c0_88, %c0_89] : memref<4x8x1xf32, #tpu.memory_space<vmem>>, vector<4x8x1xf32>
      tpu.vector_store %arg15[%c0_87, %c0_88, %c0_89], %148 {strides = array<i32>} : memref<4x8x1xf32, #tpu.memory_space<vmem>>, vector<4x8x1xf32>,
      %cst_90 = arith.constant 0.000000e+00 : f32
      %150 = vector.broadcast %cst_90 : f32 to vector<8x32xf32>
      %c0_91 = arith.constant 0 : index
      %c0_92 = arith.constant 0 : index
      %151 = vector.load %arg16[%c0_91, %c0_92] : memref<8x32xf32, #tpu.memory_space<vmem>>, vector<8x32xf32>
      tpu.vector_store %arg16[%c0_91, %c0_92], %150 {strides = array<i32>} : memref<8x32xf32, #tpu.memory_space<vmem>>, vector<8x32xf32>,
    } else {
    }
    %c0 = arith.constant 0 : index
    %c0_1 = arith.constant 0 : index
    %c0_2 = arith.constant 0 : index
    %3 = vector.load %arg4[%c0, %c0_1, %c0_2] : memref<1x8x32xbf16, #tpu.memory_space<vmem>>, vector<1x8x32xbf16>
    %4 = vector.shape_cast %3 : vector<1x8x32xbf16> to vector<8x32xbf16>
    %5 = arith.extf %4 : vector<8x32xbf16> to vector<8x32xf32>
    %cst = arith.constant 0.353553385 : f32
    %6 = vector.broadcast %cst : f32 to vector<8x32xf32>
    %7 = arith.mulf %5, %6 : vector<8x32xf32>
    %8 = arith.truncf %7 : vector<8x32xf32> to vector<8x32xbf16>
    %c0_3 = arith.constant 0 : index
    %c0_4 = arith.constant 0 : index
    %c0_5 = arith.constant 0 : index
    %9 = vector.load %arg5[%c0_3, %c0_4, %c0_5] : memref<1x8x64xbf16, #tpu.memory_space<vmem>>, vector<1x8x64xbf16>
    %10 = vector.shape_cast %9 : vector<1x8x64xbf16> to vector<8x64xbf16>
    %11 = vector.extract_strided_slice %8 {offsets = [0, 0], sizes = [8, 8], strides = [1, 1]} : vector<8x32xbf16> to vector<8x8xbf16>
    %12 = vector.extract_strided_slice %10 {offsets = [0, 0], sizes = [8, 8], strides = [1, 1]} : vector<8x64xbf16> to vector<8x8xbf16>
    %13 = vector.extract_strided_slice %10 {offsets = [0, 32], sizes = [8, 8], strides = [1, 1]} : vector<8x64xbf16> to vector<8x8xbf16>
    %cst_6 = arith.constant dense<0.000000e+00> : vector<8x8xf32>
    %14 = tpu.matmul %11, %12, %cst_6 {dimension_numbers = #tpu.dot_dimension_numbers<[1], [1], [0], [0], [0, 0, 1, 0], [], []>} : vector<8x8xbf16>, vector<8x8xbf16>, vector<8x8xf32> -> vector<8x8xf32>
    %c0_7 = arith.constant 0 : index
    %c0_8 = arith.constant 0 : index
    %c0_9 = arith.constant 0 : index
    %15 = vector.load %arg14[%c0_7, %c0_8, %c0_9] : memref<4x8x1xf32, #tpu.memory_space<vmem>>, vector<1x8x1xf32>
    %16 = vector.shape_cast %15 : vector<1x8x1xf32> to vector<8x1xf32>
    %cst_10 = arith.constant dense<0xFF800000> : vector<8xf32>
    %17 = vector.multi_reduction <maximumf>, %14, %cst_10 [1] : vector<8x8xf32> to vector<8xf32>
    %18 = vector.shape_cast %17 : vector<8xf32> to vector<8x1xf32>
    %19 = arith.maximumf %16, %18 : vector<8x1xf32>
    %20 = arith.subf %16, %19 : vector<8x1xf32>
    %21 = math.exp %20 : vector<8x1xf32>
    %22 = vector.broadcast %19 : vector<8x1xf32> to vector<8x8xf32>
    %23 = arith.subf %14, %22 : vector<8x8xf32>
    %24 = math.exp %23 : vector<8x8xf32>
    %25 = arith.truncf %24 : vector<8x8xf32> to vector<8x8xbf16>
    %cst_11 = arith.constant dense<0.000000e+00> : vector<8xf32>
    %26 = vector.multi_reduction <add>, %24, %cst_11 [1] : vector<8x8xf32> to vector<8xf32>
    %27 = vector.shape_cast %26 : vector<8xf32> to vector<8x1xf32>
    %c0_12 = arith.constant 0 : index
    %c0_13 = arith.constant 0 : index
    %c0_14 = arith.constant 0 : index
    %28 = vector.load %arg15[%c0_12, %c0_13, %c0_14] : memref<4x8x1xf32, #tpu.memory_space<vmem>>, vector<1x8x1xf32>
    %29 = vector.shape_cast %28 : vector<1x8x1xf32> to vector<8x1xf32>
    %30 = arith.mulf %21, %29 : vector<8x1xf32>
    %31 = arith.addf %30, %27 : vector<8x1xf32>
    %c0_15 = arith.constant 0 : index
    %c0_16 = arith.constant 0 : index
    %c0_17 = arith.constant 0 : index
    %32 = vector.load %arg15[%c0_15, %c0_16, %c0_17] : memref<4x8x1xf32, #tpu.memory_space<vmem>>, vector<1x8x1xf32>
    %33 = vector.shape_cast %32 : vector<1x8x1xf32> to vector<8x1xf32>
    %34 = vector.shape_cast %31 : vector<8x1xf32> to vector<1x8x1xf32>
    tpu.vector_store %arg15[%c0_15, %c0_16, %c0_17], %34 {strides = array<i32>} : memref<4x8x1xf32, #tpu.memory_space<vmem>>, vector<1x8x1xf32>,
    %cst_18 = arith.constant dense<0.000000e+00> : vector<8x8xf32>
    %35 = tpu.matmul %25, %13, %cst_18 {dimension_numbers = #tpu.dot_dimension_numbers<[1], [0], [0], [1], [0, 0, 1, 1], [], []>} : vector<8x8xbf16>, vector<8x8xbf16>, vector<8x8xf32> -> vector<8x8xf32>
    %c0_19 = arith.constant 0 : index
    %c0_20 = arith.constant 0 : index
    %36 = vector.load %arg16[%c0_19, %c0_20] : memref<8x32xf32, #tpu.memory_space<vmem>>, vector<8x8xf32>
    %37 = vector.broadcast %21 : vector<8x1xf32> to vector<8x8xf32>
    %38 = arith.mulf %37, %36 : vector<8x8xf32>
    %39 = arith.addf %38, %35 : vector<8x8xf32>
    %c0_21 = arith.constant 0 : index
    %c0_22 = arith.constant 0 : index
    %40 = vector.load %arg16[%c0_21, %c0_22] : memref<8x32xf32, #tpu.memory_space<vmem>>, vector<8x8xf32>
    tpu.vector_store %arg16[%c0_21, %c0_22], %39 {strides = array<i32>} : memref<8x32xf32, #tpu.memory_space<vmem>>, vector<8x8xf32>,
    %c0_23 = arith.constant 0 : index
    %c0_24 = arith.constant 0 : index
    %c0_25 = arith.constant 0 : index
    %41 = vector.load %arg14[%c0_23, %c0_24, %c0_25] : memref<4x8x1xf32, #tpu.memory_space<vmem>>, vector<1x8x1xf32>
    %42 = vector.shape_cast %41 : vector<1x8x1xf32> to vector<8x1xf32>
    %43 = vector.shape_cast %19 : vector<8x1xf32> to vector<1x8x1xf32>
    tpu.vector_store %arg14[%c0_23, %c0_24, %c0_25], %43 {strides = array<i32>} : memref<4x8x1xf32, #tpu.memory_space<vmem>>, vector<1x8x1xf32>,
    %44 = vector.extract_strided_slice %8 {offsets = [0, 8], sizes = [8, 8], strides = [1, 1]} : vector<8x32xbf16> to vector<8x8xbf16>
    %45 = vector.extract_strided_slice %10 {offsets = [0, 8], sizes = [8, 8], strides = [1, 1]} : vector<8x64xbf16> to vector<8x8xbf16>
    %46 = vector.extract_strided_slice %10 {offsets = [0, 40], sizes = [8, 8], strides = [1, 1]} : vector<8x64xbf16> to vector<8x8xbf16>
    %cst_26 = arith.constant dense<0.000000e+00> : vector<8x8xf32>
    %47 = tpu.matmul %44, %45, %cst_26 {dimension_numbers = #tpu.dot_dimension_numbers<[1], [1], [0], [0], [0, 0, 1, 0], [], []>} : vector<8x8xbf16>, vector<8x8xbf16>, vector<8x8xf32> -> vector<8x8xf32>
    %c1 = arith.constant 1 : index
    %c0_27 = arith.constant 0 : index
    %c0_28 = arith.constant 0 : index
    %48 = vector.load %arg14[%c1, %c0_27, %c0_28] : memref<4x8x1xf32, #tpu.memory_space<vmem>>, vector<1x8x1xf32>
    %49 = vector.shape_cast %48 : vector<1x8x1xf32> to vector<8x1xf32>
    %cst_29 = arith.constant dense<0xFF800000> : vector<8xf32>
    %50 = vector.multi_reduction <maximumf>, %47, %cst_29 [1] : vector<8x8xf32> to vector<8xf32>
    %51 = vector.shape_cast %50 : vector<8xf32> to vector<8x1xf32>
    %52 = arith.maximumf %49, %51 : vector<8x1xf32>
    %53 = arith.subf %49, %52 : vector<8x1xf32>
    %54 = math.exp %53 : vector<8x1xf32>
    %55 = vector.broadcast %52 : vector<8x1xf32> to vector<8x8xf32>
    %56 = arith.subf %47, %55 : vector<8x8xf32>
    %57 = math.exp %56 : vector<8x8xf32>
    %58 = arith.truncf %57 : vector<8x8xf32> to vector<8x8xbf16>
    %cst_30 = arith.constant dense<0.000000e+00> : vector<8xf32>
    %59 = vector.multi_reduction <add>, %57, %cst_30 [1] : vector<8x8xf32> to vector<8xf32>
    %60 = vector.shape_cast %59 : vector<8xf32> to vector<8x1xf32>
    %c1_31 = arith.constant 1 : index
    %c0_32 = arith.constant 0 : index
    %c0_33 = arith.constant 0 : index
    %61 = vector.load %arg15[%c1_31, %c0_32, %c0_33] : memref<4x8x1xf32, #tpu.memory_space<vmem>>, vector<1x8x1xf32>
    %62 = vector.shape_cast %61 : vector<1x8x1xf32> to vector<8x1xf32>
    %63 = arith.mulf %54, %62 : vector<8x1xf32>
    %64 = arith.addf %63, %60 : vector<8x1xf32>
    %c1_34 = arith.constant 1 : index
    %c0_35 = arith.constant 0 : index
    %c0_36 = arith.constant 0 : index
    %65 = vector.load %arg15[%c1_34, %c0_35, %c0_36] : memref<4x8x1xf32, #tpu.memory_space<vmem>>, vector<1x8x1xf32>
    %66 = vector.shape_cast %65 : vector<1x8x1xf32> to vector<8x1xf32>
    %67 = vector.shape_cast %64 : vector<8x1xf32> to vector<1x8x1xf32>
    tpu.vector_store %arg15[%c1_34, %c0_35, %c0_36], %67 {strides = array<i32>} : memref<4x8x1xf32, #tpu.memory_space<vmem>>, vector<1x8x1xf32>,
    %cst_37 = arith.constant dense<0.000000e+00> : vector<8x8xf32>
    %68 = tpu.matmul %58, %46, %cst_37 {dimension_numbers = #tpu.dot_dimension_numbers<[1], [0], [0], [1], [0, 0, 1, 1], [], []>} : vector<8x8xbf16>, vector<8x8xbf16>, vector<8x8xf32> -> vector<8x8xf32>
    %c0_38 = arith.constant 0 : index
    %c8 = arith.constant 8 : index
    %69 = vector.load %arg16[%c0_38, %c8] : memref<8x32xf32, #tpu.memory_space<vmem>>, vector<8x8xf32>
    %70 = vector.broadcast %54 : vector<8x1xf32> to vector<8x8xf32>
    %71 = arith.mulf %70, %69 : vector<8x8xf32>
    %72 = arith.addf %71, %68 : vector<8x8xf32>
    %c0_39 = arith.constant 0 : index
    %c8_40 = arith.constant 8 : index
    %73 = vector.load %arg16[%c0_39, %c8_40] : memref<8x32xf32, #tpu.memory_space<vmem>>, vector<8x8xf32>
    tpu.vector_store %arg16[%c0_39, %c8_40], %72 {strides = array<i32>} : memref<8x32xf32, #tpu.memory_space<vmem>>, vector<8x8xf32>,
    %c1_41 = arith.constant 1 : index
    %c0_42 = arith.constant 0 : index
    %c0_43 = arith.constant 0 : index
    %74 = vector.load %arg14[%c1_41, %c0_42, %c0_43] : memref<4x8x1xf32, #tpu.memory_space<vmem>>, vector<1x8x1xf32>
    %75 = vector.shape_cast %74 : vector<1x8x1xf32> to vector<8x1xf32>
    %76 = vector.shape_cast %52 : vector<8x1xf32> to vector<1x8x1xf32>
    tpu.vector_store %arg14[%c1_41, %c0_42, %c0_43], %76 {strides = array<i32>} : memref<4x8x1xf32, #tpu.memory_space<vmem>>, vector<1x8x1xf32>,
    %77 = vector.extract_strided_slice %8 {offsets = [0, 16], sizes = [8, 8], strides = [1, 1]} : vector<8x32xbf16> to vector<8x8xbf16>
    %78 = vector.extract_strided_slice %10 {offsets = [0, 16], sizes = [8, 8], strides = [1, 1]} : vector<8x64xbf16> to vector<8x8xbf16>
    %79 = vector.extract_strided_slice %10 {offsets = [0, 48], sizes = [8, 8], strides = [1, 1]} : vector<8x64xbf16> to vector<8x8xbf16>
    %cst_44 = arith.constant dense<0.000000e+00> : vector<8x8xf32>
    %80 = tpu.matmul %77, %78, %cst_44 {dimension_numbers = #tpu.dot_dimension_numbers<[1], [1], [0], [0], [0, 0, 1, 0], [], []>} : vector<8x8xbf16>, vector<8x8xbf16>, vector<8x8xf32> -> vector<8x8xf32>
    %c2 = arith.constant 2 : index
    %c0_45 = arith.constant 0 : index
    %c0_46 = arith.constant 0 : index
    %81 = vector.load %arg14[%c2, %c0_45, %c0_46] : memref<4x8x1xf32, #tpu.memory_space<vmem>>, vector<1x8x1xf32>
    %82 = vector.shape_cast %81 : vector<1x8x1xf32> to vector<8x1xf32>
    %cst_47 = arith.constant dense<0xFF800000> : vector<8xf32>
    %83 = vector.multi_reduction <maximumf>, %80, %cst_47 [1] : vector<8x8xf32> to vector<8xf32>
    %84 = vector.shape_cast %83 : vector<8xf32> to vector<8x1xf32>
    %85 = arith.maximumf %82, %84 : vector<8x1xf32>
    %86 = arith.subf %82, %85 : vector<8x1xf32>
    %87 = math.exp %86 : vector<8x1xf32>
    %88 = vector.broadcast %85 : vector<8x1xf32> to vector<8x8xf32>
    %89 = arith.subf %80, %88 : vector<8x8xf32>
    %90 = math.exp %89 : vector<8x8xf32>
    %91 = arith.truncf %90 : vector<8x8xf32> to vector<8x8xbf16>
    %cst_48 = arith.constant dense<0.000000e+00> : vector<8xf32>
    %92 = vector.multi_reduction <add>, %90, %cst_48 [1] : vector<8x8xf32> to vector<8xf32>
    %93 = vector.shape_cast %92 : vector<8xf32> to vector<8x1xf32>
    %c2_49 = arith.constant 2 : index
    %c0_50 = arith.constant 0 : index
    %c0_51 = arith.constant 0 : index
    %94 = vector.load %arg15[%c2_49, %c0_50, %c0_51] : memref<4x8x1xf32, #tpu.memory_space<vmem>>, vector<1x8x1xf32>
    %95 = vector.shape_cast %94 : vector<1x8x1xf32> to vector<8x1xf32>
    %96 = arith.mulf %87, %95 : vector<8x1xf32>
    %97 = arith.addf %96, %93 : vector<8x1xf32>
    %c2_52 = arith.constant 2 : index
    %c0_53 = arith.constant 0 : index
    %c0_54 = arith.constant 0 : index
    %98 = vector.load %arg15[%c2_52, %c0_53, %c0_54] : memref<4x8x1xf32, #tpu.memory_space<vmem>>, vector<1x8x1xf32>
    %99 = vector.shape_cast %98 : vector<1x8x1xf32> to vector<8x1xf32>
    %100 = vector.shape_cast %97 : vector<8x1xf32> to vector<1x8x1xf32>
    tpu.vector_store %arg15[%c2_52, %c0_53, %c0_54], %100 {strides = array<i32>} : memref<4x8x1xf32, #tpu.memory_space<vmem>>, vector<1x8x1xf32>,
    %cst_55 = arith.constant dense<0.000000e+00> : vector<8x8xf32>
    %101 = tpu.matmul %91, %79, %cst_55 {dimension_numbers = #tpu.dot_dimension_numbers<[1], [0], [0], [1], [0, 0, 1, 1], [], []>} : vector<8x8xbf16>, vector<8x8xbf16>, vector<8x8xf32> -> vector<8x8xf32>
    %c0_56 = arith.constant 0 : index
    %c16 = arith.constant 16 : index
    %102 = vector.load %arg16[%c0_56, %c16] : memref<8x32xf32, #tpu.memory_space<vmem>>, vector<8x8xf32>
    %103 = vector.broadcast %87 : vector<8x1xf32> to vector<8x8xf32>
    %104 = arith.mulf %103, %102 : vector<8x8xf32>
    %105 = arith.addf %104, %101 : vector<8x8xf32>
    %c0_57 = arith.constant 0 : index
    %c16_58 = arith.constant 16 : index
    %106 = vector.load %arg16[%c0_57, %c16_58] : memref<8x32xf32, #tpu.memory_space<vmem>>, vector<8x8xf32>
    tpu.vector_store %arg16[%c0_57, %c16_58], %105 {strides = array<i32>} : memref<8x32xf32, #tpu.memory_space<vmem>>, vector<8x8xf32>,
    %c2_59 = arith.constant 2 : index
    %c0_60 = arith.constant 0 : index
    %c0_61 = arith.constant 0 : index
    %107 = vector.load %arg14[%c2_59, %c0_60, %c0_61] : memref<4x8x1xf32, #tpu.memory_space<vmem>>, vector<1x8x1xf32>
    %108 = vector.shape_cast %107 : vector<1x8x1xf32> to vector<8x1xf32>
    %109 = vector.shape_cast %85 : vector<8x1xf32> to vector<1x8x1xf32>
    tpu.vector_store %arg14[%c2_59, %c0_60, %c0_61], %109 {strides = array<i32>} : memref<4x8x1xf32, #tpu.memory_space<vmem>>, vector<1x8x1xf32>,
    %110 = vector.extract_strided_slice %8 {offsets = [0, 24], sizes = [8, 8], strides = [1, 1]} : vector<8x32xbf16> to vector<8x8xbf16>
    %111 = vector.extract_strided_slice %10 {offsets = [0, 24], sizes = [8, 8], strides = [1, 1]} : vector<8x64xbf16> to vector<8x8xbf16>
    %112 = vector.extract_strided_slice %10 {offsets = [0, 56], sizes = [8, 8], strides = [1, 1]} : vector<8x64xbf16> to vector<8x8xbf16>
    %cst_62 = arith.constant dense<0.000000e+00> : vector<8x8xf32>
    %113 = tpu.matmul %110, %111, %cst_62 {dimension_numbers = #tpu.dot_dimension_numbers<[1], [1], [0], [0], [0, 0, 1, 0], [], []>} : vector<8x8xbf16>, vector<8x8xbf16>, vector<8x8xf32> -> vector<8x8xf32>
    %c3 = arith.constant 3 : index
    %c0_63 = arith.constant 0 : index
    %c0_64 = arith.constant 0 : index
    %114 = vector.load %arg14[%c3, %c0_63, %c0_64] : memref<4x8x1xf32, #tpu.memory_space<vmem>>, vector<1x8x1xf32>
    %115 = vector.shape_cast %114 : vector<1x8x1xf32> to vector<8x1xf32>
    %cst_65 = arith.constant dense<0xFF800000> : vector<8xf32>
    %116 = vector.multi_reduction <maximumf>, %113, %cst_65 [1] : vector<8x8xf32> to vector<8xf32>
    %117 = vector.shape_cast %116 : vector<8xf32> to vector<8x1xf32>
    %118 = arith.maximumf %115, %117 : vector<8x1xf32>
    %119 = arith.subf %115, %118 : vector<8x1xf32>
    %120 = math.exp %119 : vector<8x1xf32>
    %121 = vector.broadcast %118 : vector<8x1xf32> to vector<8x8xf32>
    %122 = arith.subf %113, %121 : vector<8x8xf32>
    %123 = math.exp %122 : vector<8x8xf32>
    %124 = arith.truncf %123 : vector<8x8xf32> to vector<8x8xbf16>
    %cst_66 = arith.constant dense<0.000000e+00> : vector<8xf32>
    %125 = vector.multi_reduction <add>, %123, %cst_66 [1] : vector<8x8xf32> to vector<8xf32>
    %126 = vector.shape_cast %125 : vector<8xf32> to vector<8x1xf32>
    %c3_67 = arith.constant 3 : index
    %c0_68 = arith.constant 0 : index
    %c0_69 = arith.constant 0 : index
    %127 = vector.load %arg15[%c3_67, %c0_68, %c0_69] : memref<4x8x1xf32, #tpu.memory_space<vmem>>, vector<1x8x1xf32>
    %128 = vector.shape_cast %127 : vector<1x8x1xf32> to vector<8x1xf32>
    %129 = arith.mulf %120, %128 : vector<8x1xf32>
    %130 = arith.addf %129, %126 : vector<8x1xf32>
    %c3_70 = arith.constant 3 : index
    %c0_71 = arith.constant 0 : index
    %c0_72 = arith.constant 0 : index
    %131 = vector.load %arg15[%c3_70, %c0_71, %c0_72] : memref<4x8x1xf32, #tpu.memory_space<vmem>>, vector<1x8x1xf32>
    %132 = vector.shape_cast %131 : vector<1x8x1xf32> to vector<8x1xf32>
    %133 = vector.shape_cast %130 : vector<8x1xf32> to vector<1x8x1xf32>
    tpu.vector_store %arg15[%c3_70, %c0_71, %c0_72], %133 {strides = array<i32>} : memref<4x8x1xf32, #tpu.memory_space<vmem>>, vector<1x8x1xf32>,
    %cst_73 = arith.constant dense<0.000000e+00> : vector<8x8xf32>
    %134 = tpu.matmul %124, %112, %cst_73 {dimension_numbers = #tpu.dot_dimension_numbers<[1], [0], [0], [1], [0, 0, 1, 1], [], []>} : vector<8x8xbf16>, vector<8x8xbf16>, vector<8x8xf32> -> vector<8x8xf32>
    %c0_74 = arith.constant 0 : index
    %c24 = arith.constant 24 : index
    %135 = vector.load %arg16[%c0_74, %c24] : memref<8x32xf32, #tpu.memory_space<vmem>>, vector<8x8xf32>
    %136 = vector.broadcast %120 : vector<8x1xf32> to vector<8x8xf32>
    %137 = arith.mulf %136, %135 : vector<8x8xf32>
    %138 = arith.addf %137, %134 : vector<8x8xf32>
    %c0_75 = arith.constant 0 : index
    %c24_76 = arith.constant 24 : index
    %139 = vector.load %arg16[%c0_75, %c24_76] : memref<8x32xf32, #tpu.memory_space<vmem>>, vector<8x8xf32>
    tpu.vector_store %arg16[%c0_75, %c24_76], %138 {strides = array<i32>} : memref<8x32xf32, #tpu.memory_space<vmem>>, vector<8x8xf32>,
    %c3_77 = arith.constant 3 : index
    %c0_78 = arith.constant 0 : index
    %c0_79 = arith.constant 0 : index
    %140 = vector.load %arg14[%c3_77, %c0_78, %c0_79] : memref<4x8x1xf32, #tpu.memory_space<vmem>>, vector<1x8x1xf32>
    %141 = vector.shape_cast %140 : vector<1x8x1xf32> to vector<8x1xf32>
    %142 = vector.shape_cast %118 : vector<8x1xf32> to vector<1x8x1xf32>
    tpu.vector_store %arg14[%c3_77, %c0_78, %c0_79], %142 {strides = array<i32>} : memref<4x8x1xf32, #tpu.memory_space<vmem>>, vector<1x8x1xf32>,
    %c0_i32_80 = arith.constant 0 : i32
    %143 = arith.cmpi eq, %arg2, %c0_i32_80 : i32
    %144 = arith.extui %143 : i1 to i32
    %c0_i32_81 = arith.constant 0 : i32
    %145 = arith.cmpi ne, %144, %c0_i32_81 : i32
    scf.if %145 {
      %c0_82 = arith.constant 0 : index
      %c0_83 = arith.constant 0 : index
      %c0_84 = arith.constant 0 : index
      %146 = vector.load %arg6[%c0_82, %c0_83, %c0_84] : memref<1x1x128xf32, #tpu.memory_space<vmem>>, vector<1x1x128xf32>
      %147 = vector.shape_cast %146 : vector<1x1x128xf32> to vector<1x128xf32>
      %148 = vector.extract_strided_slice %147 {offsets = [0, 0], sizes = [1, 32], strides = [1, 1]} : vector<1x128xf32> to vector<1x32xf32>
      %149 = vector.extract_strided_slice %147 {offsets = [0, 32], sizes = [1, 32], strides = [1, 1]} : vector<1x128xf32> to vector<1x32xf32>
      %150 = vector.extract_strided_slice %147 {offsets = [0, 64], sizes = [1, 32], strides = [1, 1]} : vector<1x128xf32> to vector<1x32xf32>
      %151 = vector.extract_strided_slice %147 {offsets = [0, 96], sizes = [1, 32], strides = [1, 1]} : vector<1x128xf32> to vector<1x32xf32>
      %c0_85 = arith.constant 0 : index
      %c0_86 = arith.constant 0 : index
      %c0_87 = arith.constant 0 : index
      %152 = vector.load %arg15[%c0_85, %c0_86, %c0_87] : memref<4x8x1xf32, #tpu.memory_space<vmem>>, vector<1x8x1xf32>
      %153 = vector.shape_cast %152 : vector<1x8x1xf32> to vector<8x1xf32>
      %154 = tpu.reciprocal %153 {approx = true} : vector<8x1xf32> -> vector<8x1xf32>
      %c0_88 = arith.constant 0 : index
      %c0_89 = arith.constant 0 : index
      %155 = vector.load %arg16[%c0_88, %c0_89] : memref<8x32xf32, #tpu.memory_space<vmem>>, vector<8x8xf32>
      %156 = vector.broadcast %154 : vector<8x1xf32> to vector<8x8xf32>
      %157 = arith.mulf %155, %156 : vector<8x8xf32>
      %158 = arith.truncf %157 : vector<8x8xf32> to vector<8x8xbf16>
      %c0_90 = arith.constant 0 : index
      %c0_91 = arith.constant 0 : index
      %159 = vector.load %arg17[%c0_90, %c0_91] : memref<8x32xbf16, #tpu.memory_space<vmem>>, vector<8x8xbf16>
      tpu.vector_store %arg17[%c0_90, %c0_91], %158 {strides = array<i32>} : memref<8x32xbf16, #tpu.memory_space<vmem>>, vector<8x8xbf16>,
      %c1_92 = arith.constant 1 : index
      %c0_93 = arith.constant 0 : index
      %c0_94 = arith.constant 0 : index
      %160 = vector.load %arg15[%c1_92, %c0_93, %c0_94] : memref<4x8x1xf32, #tpu.memory_space<vmem>>, vector<1x8x1xf32>
      %161 = vector.shape_cast %160 : vector<1x8x1xf32> to vector<8x1xf32>
      %162 = tpu.reciprocal %161 {approx = true} : vector<8x1xf32> -> vector<8x1xf32>
      %c0_95 = arith.constant 0 : index
      %c8_96 = arith.constant 8 : index
      %163 = vector.load %arg16[%c0_95, %c8_96] : memref<8x32xf32, #tpu.memory_space<vmem>>, vector<8x8xf32>
      %164 = vector.broadcast %162 : vector<8x1xf32> to vector<8x8xf32>
      %165 = arith.mulf %163, %164 : vector<8x8xf32>
      %166 = arith.truncf %165 : vector<8x8xf32> to vector<8x8xbf16>
      %c0_97 = arith.constant 0 : index
      %c8_98 = arith.constant 8 : index
      %167 = vector.load %arg17[%c0_97, %c8_98] : memref<8x32xbf16, #tpu.memory_space<vmem>>, vector<8x8xbf16>
      tpu.vector_store %arg17[%c0_97, %c8_98], %166 {strides = array<i32>} : memref<8x32xbf16, #tpu.memory_space<vmem>>, vector<8x8xbf16>,
      %c2_99 = arith.constant 2 : index
      %c0_100 = arith.constant 0 : index
      %c0_101 = arith.constant 0 : index
      %168 = vector.load %arg15[%c2_99, %c0_100, %c0_101] : memref<4x8x1xf32, #tpu.memory_space<vmem>>, vector<1x8x1xf32>
      %169 = vector.shape_cast %168 : vector<1x8x1xf32> to vector<8x1xf32>
      %170 = tpu.reciprocal %169 {approx = true} : vector<8x1xf32> -> vector<8x1xf32>
      %c0_102 = arith.constant 0 : index
      %c16_103 = arith.constant 16 : index
      %171 = vector.load %arg16[%c0_102, %c16_103] : memref<8x32xf32, #tpu.memory_space<vmem>>, vector<8x8xf32>
      %172 = vector.broadcast %170 : vector<8x1xf32> to vector<8x8xf32>
      %173 = arith.mulf %171, %172 : vector<8x8xf32>
      %174 = arith.truncf %173 : vector<8x8xf32> to vector<8x8xbf16>
      %c0_104 = arith.constant 0 : index
      %c16_105 = arith.constant 16 : index
      %175 = vector.load %arg17[%c0_104, %c16_105] : memref<8x32xbf16, #tpu.memory_space<vmem>>, vector<8x8xbf16>
      tpu.vector_store %arg17[%c0_104, %c16_105], %174 {strides = array<i32>} : memref<8x32xbf16, #tpu.memory_space<vmem>>, vector<8x8xbf16>,
      %c3_106 = arith.constant 3 : index
      %c0_107 = arith.constant 0 : index
      %c0_108 = arith.constant 0 : index
      %176 = vector.load %arg15[%c3_106, %c0_107, %c0_108] : memref<4x8x1xf32, #tpu.memory_space<vmem>>, vector<1x8x1xf32>
      %177 = vector.shape_cast %176 : vector<1x8x1xf32> to vector<8x1xf32>
      %178 = tpu.reciprocal %177 {approx = true} : vector<8x1xf32> -> vector<8x1xf32>
      %c0_109 = arith.constant 0 : index
      %c24_110 = arith.constant 24 : index
      %179 = vector.load %arg16[%c0_109, %c24_110] : memref<8x32xf32, #tpu.memory_space<vmem>>, vector<8x8xf32>
      %180 = vector.broadcast %178 : vector<8x1xf32> to vector<8x8xf32>
      %181 = arith.mulf %179, %180 : vector<8x8xf32>
      %182 = arith.truncf %181 : vector<8x8xf32> to vector<8x8xbf16>
      %c0_111 = arith.constant 0 : index
      %c24_112 = arith.constant 24 : index
      %183 = vector.load %arg17[%c0_111, %c24_112] : memref<8x32xbf16, #tpu.memory_space<vmem>>, vector<8x8xbf16>
      tpu.vector_store %arg17[%c0_111, %c24_112], %182 {strides = array<i32>} : memref<8x32xbf16, #tpu.memory_space<vmem>>, vector<8x8xbf16>,
      %c0_113 = arith.constant 0 : index
      %c0_114 = arith.constant 0 : index
      %184 = vector.load %arg17[%c0_113, %c0_114] : memref<8x32xbf16, #tpu.memory_space<vmem>>, vector<8x32xbf16>
      %c0_115 = arith.constant 0 : index
      %c0_116 = arith.constant 0 : index
      %185 = vector.load %arg7[%c0_115, %c0_116] : memref<32x32xbf16, #tpu.memory_space<vmem>>, vector<32x32xbf16>
      %cst_117 = arith.constant dense<0.000000e+00> : vector<8x32xf32>
      %186 = tpu.matmul %184, %185, %cst_117 {dimension_numbers = #tpu.dot_dimension_numbers<[1], [0], [0], [1], [0, 0, 1, 1], [], []>} : vector<8x32xbf16>, vector<32x32xbf16>, vector<8x32xf32> -> vector<8x32xf32>
      %c0_118 = arith.constant 0 : index
      %c0_119 = arith.constant 0 : index
      %187 = vector.load %arg8[%c0_118, %c0_119] : memref<1x32xf32, #tpu.memory_space<vmem>>, vector<1x32xf32>
      %188 = vector.broadcast %187 : vector<1x32xf32> to vector<8x32xf32>
      %189 = arith.addf %186, %188 : vector<8x32xf32>
      %c0_120 = arith.constant 0 : index
      %c0_121 = arith.constant 0 : index
      %c0_122 = arith.constant 0 : index
      %190 = vector.load %arg3[%c0_120, %c0_121, %c0_122] : memref<1x8x32xf32, #tpu.memory_space<vmem>>, vector<1x8x32xf32>
      %191 = vector.shape_cast %190 : vector<1x8x32xf32> to vector<8x32xf32>
      %192 = vector.broadcast %148 : vector<1x32xf32> to vector<8x32xf32>
      %193 = arith.mulf %189, %192 : vector<8x32xf32>
      %194 = arith.addf %191, %193 : vector<8x32xf32>
      %cst_123 = arith.constant dense<0.000000e+00> : vector<8xf32>
      %195 = vector.multi_reduction <add>, %194, %cst_123 [1] : vector<8x32xf32> to vector<8xf32>
      %196 = vector.shape_cast %195 : vector<8xf32> to vector<8x1xf32>
      %cst_124 = arith.constant 3.200000e+01 : f32
      %197 = vector.broadcast %cst_124 : f32 to vector<8x1xf32>
      %198 = arith.divf %196, %197 : vector<8x1xf32>
      %199 = vector.broadcast %198 : vector<8x1xf32> to vector<8x32xf32>
      %200 = arith.subf %194, %199 : vector<8x32xf32>
      %201 = arith.mulf %200, %200 : vector<8x32xf32>
      %cst_125 = arith.constant dense<0.000000e+00> : vector<8xf32>
      %202 = vector.multi_reduction <add>, %201, %cst_125 [1] : vector<8x32xf32> to vector<8xf32>
      %203 = vector.shape_cast %202 : vector<8xf32> to vector<8x1xf32>
      %cst_126 = arith.constant 3.200000e+01 : f32
      %204 = vector.broadcast %cst_126 : f32 to vector<8x1xf32>
      %205 = arith.divf %203, %204 : vector<8x1xf32>
      %206 = vector.broadcast %198 : vector<8x1xf32> to vector<8x32xf32>
      %207 = arith.subf %194, %206 : vector<8x32xf32>
      %cst_127 = arith.constant 9.99999997E-7 : f32
      %208 = vector.broadcast %cst_127 : f32 to vector<8x1xf32>
      %209 = arith.addf %205, %208 : vector<8x1xf32>
      %210 = math.rsqrt %209 : vector<8x1xf32>
      %211 = vector.broadcast %210 : vector<8x1xf32> to vector<8x32xf32>
      %212 = arith.mulf %207, %211 : vector<8x32xf32>
      %cst_128 = arith.constant 1.000000e+00 : f32
      %213 = vector.broadcast %cst_128 : f32 to vector<1x32xf32>
      %214 = arith.addf %213, %150 : vector<1x32xf32>
      %215 = vector.broadcast %214 : vector<1x32xf32> to vector<8x32xf32>
      %216 = arith.mulf %212, %215 : vector<8x32xf32>
      %217 = vector.broadcast %149 : vector<1x32xf32> to vector<8x32xf32>
      %218 = arith.addf %216, %217 : vector<8x32xf32>
      %219 = arith.truncf %218 : vector<8x32xf32> to vector<8x32xbf16>
      %cst_129 = arith.constant 0.000000e+00 : f32
      %220 = vector.broadcast %cst_129 : f32 to vector<8x32xf32>
      %c0_130 = arith.constant 0 : index
      %c0_131 = arith.constant 0 : index
      %221 = vector.load %arg9[%c0_130, %c0_131] : memref<32x128xbf16, #tpu.memory_space<vmem>>, vector<32x128xbf16>
      %cst_132 = arith.constant dense<0.000000e+00> : vector<8x128xf32>
      %222 = tpu.matmul %219, %221, %cst_132 {dimension_numbers = #tpu.dot_dimension_numbers<[1], [0], [0], [1], [0, 0, 1, 1], [], []>} : vector<8x32xbf16>, vector<32x128xbf16>, vector<8x128xf32> -> vector<8x128xf32>
      %c0_133 = arith.constant 0 : index
      %c0_134 = arith.constant 0 : index
      %223 = vector.load %arg10[%c0_133, %c0_134] : memref<1x128xf32, #tpu.memory_space<vmem>>, vector<1x128xf32>
      %224 = vector.broadcast %223 : vector<1x128xf32> to vector<8x128xf32>
      %225 = arith.addf %222, %224 : vector<8x128xf32>
      %cst_135 = arith.constant 5.000000e-01 : f32
      %226 = vector.broadcast %cst_135 : f32 to vector<8x128xf32>
      %227 = arith.mulf %226, %225 : vector<8x128xf32>
      %cst_136 = arith.constant 4.471500e-02 : f32
      %228 = vector.broadcast %cst_136 : f32 to vector<8x128xf32>
      %229 = arith.mulf %228, %225 : vector<8x128xf32>
      %230 = arith.mulf %229, %225 : vector<8x128xf32>
      %231 = arith.mulf %230, %225 : vector<8x128xf32>
      %232 = arith.addf %225, %231 : vector<8x128xf32>
      %cst_137 = arith.constant 0.797884583 : f32
      %233 = vector.broadcast %cst_137 : f32 to vector<8x128xf32>
      %234 = arith.mulf %233, %232 : vector<8x128xf32>
      %235 = math.tanh %234 : vector<8x128xf32>
      %cst_138 = arith.constant 1.000000e+00 : f32
      %236 = vector.broadcast %cst_138 : f32 to vector<8x128xf32>
      %237 = arith.addf %236, %235 : vector<8x128xf32>
      %238 = arith.mulf %227, %237 : vector<8x128xf32>
      %239 = arith.truncf %238 : vector<8x128xf32> to vector<8x128xbf16>
      %c0_139 = arith.constant 0 : index
      %c0_140 = arith.constant 0 : index
      %240 = vector.load %arg11[%c0_139, %c0_140] : memref<128x32xbf16, #tpu.memory_space<vmem>>, vector<128x32xbf16>
      %cst_141 = arith.constant dense<0.000000e+00> : vector<8x32xf32>
      %241 = tpu.matmul %239, %240, %cst_141 {dimension_numbers = #tpu.dot_dimension_numbers<[1], [0], [0], [1], [0, 0, 1, 1], [], []>} : vector<8x128xbf16>, vector<128x32xbf16>, vector<8x32xf32> -> vector<8x32xf32>
      %242 = arith.addf %220, %241 : vector<8x32xf32>
      %c0_142 = arith.constant 0 : index
      %c0_143 = arith.constant 0 : index
      %243 = vector.load %arg12[%c0_142, %c0_143] : memref<1x32xf32, #tpu.memory_space<vmem>>, vector<1x32xf32>
      %244 = vector.broadcast %243 : vector<1x32xf32> to vector<8x32xf32>
      %245 = arith.addf %242, %244 : vector<8x32xf32>
      %246 = vector.broadcast %151 : vector<1x32xf32> to vector<8x32xf32>
      %247 = arith.mulf %245, %246 : vector<8x32xf32>
      %248 = arith.addf %194, %247 : vector<8x32xf32>
      %c0_144 = arith.constant 0 : index
      %c0_145 = arith.constant 0 : index
      %c0_146 = arith.constant 0 : index
      %249 = vector.load %arg13[%c0_144, %c0_145, %c0_146] : memref<1x8x32xf32, #tpu.memory_space<vmem>>, vector<1x8x32xf32>
      %250 = vector.shape_cast %249 : vector<1x8x32xf32> to vector<8x32xf32>
      %251 = vector.shape_cast %248 : vector<8x32xf32> to vector<1x8x32xf32>
      tpu.vector_store %arg13[%c0_144, %c0_145, %c0_146], %251 {strides = array<i32>} : memref<1x8x32xf32, #tpu.memory_space<vmem>>, vector<1x8x32xf32>,
    } else {
    }
    return
  }
  func.func @transform_0(%arg0: i32, %arg1: i32, %arg2: i32) -> (i32, i32, i32) {
    %c0_i32 = arith.constant 0 : i32
    %c0_i32_0 = arith.constant 0 : i32
    return %arg0, %arg1, %c0_i32 : i32, i32, i32
  }
  func.func @transform_1(%arg0: i32, %arg1: i32, %arg2: i32) -> (i32, i32, i32) {
    %c0_i32 = arith.constant 0 : i32
    %c0_i32_0 = arith.constant 0 : i32
    return %arg0, %arg1, %c0_i32 : i32, i32, i32
  }
  func.func @transform_2(%arg0: i32, %arg1: i32, %arg2: i32) -> (i32, i32, i32) {
    %c0_i32 = arith.constant 0 : i32
    %c0_i32_0 = arith.constant 0 : i32
    return %arg0, %arg2, %c0_i32 : i32, i32, i32
  }
  func.func @transform_3(%arg0: i32, %arg1: i32, %arg2: i32) -> (i32, i32, i32) {
    %c0_i32 = arith.constant 0 : i32
    %c0_i32_0 = arith.constant 0 : i32
    %c0_i32_1 = arith.constant 0 : i32
    return %arg0, %c0_i32, %c0_i32_0 : i32, i32, i32
  }
  func.func @transform_4(%arg0: i32, %arg1: i32, %arg2: i32) -> (i32, i32) {
    %c0_i32 = arith.constant 0 : i32
    %c0_i32_0 = arith.constant 0 : i32
    %c0_i32_1 = arith.constant 0 : i32
    return %c0_i32, %c0_i32_0 : i32, i32
  }
  func.func @transform_5(%arg0: i32, %arg1: i32, %arg2: i32) -> (i32, i32) {
    %c0_i32 = arith.constant 0 : i32
    %c0_i32_0 = arith.constant 0 : i32
    %c0_i32_1 = arith.constant 0 : i32
    return %c0_i32, %c0_i32_0 : i32, i32
  }
  func.func @transform_6(%arg0: i32, %arg1: i32, %arg2: i32) -> (i32, i32) {
    %c0_i32 = arith.constant 0 : i32
    %c0_i32_0 = arith.constant 0 : i32
    %c0_i32_1 = arith.constant 0 : i32
    return %c0_i32, %c0_i32_0 : i32, i32
  }
  func.func @transform_7(%arg0: i32, %arg1: i32, %arg2: i32) -> (i32, i32) {
    %c0_i32 = arith.constant 0 : i32
    %c0_i32_0 = arith.constant 0 : i32
    %c0_i32_1 = arith.constant 0 : i32
    return %c0_i32, %c0_i32_0 : i32, i32
  }
  func.func @transform_8(%arg0: i32, %arg1: i32, %arg2: i32) -> (i32, i32) {
    %c0_i32 = arith.constant 0 : i32
    %c0_i32_0 = arith.constant 0 : i32
    %c0_i32_1 = arith.constant 0 : i32
    return %c0_i32, %c0_i32_0 : i32, i32
  }
  func.func @transform_9(%arg0: i32, %arg1: i32, %arg2: i32) -> (i32, i32) {
    %c0_i32 = arith.constant 0 : i32
    %c0_i32_0 = arith.constant 0 : i32
    %c0_i32_1 = arith.constant 0 : i32
    return %c0_i32, %c0_i32_0 : i32, i32
  }
  func.func @transform_10(%arg0: i32, %arg1: i32, %arg2: i32) -> (i32, i32, i32) {
    %c0_i32 = arith.constant 0 : i32
    %c0_i32_0 = arith.constant 0 : i32
    return %arg0, %arg1, %c0_i32 : i32, i32, i32
  }
}

</mosaic_0001>

<bundles_post_ra>
// kernel: tpu_custom_call.1
= control target key start
LH: loop header
LB: loop body
LE: loop exit
PB: predicated region body
PF: predicated region fallthrough
CT: control target
= control target key end

     0   :  { %s2221_s0 = inlined_call_operand.vmem [shape: f32[2,8,32], index: 0, kind: input, shape index: {}]   ;;  %s2222_s1 = inlined_call_operand.vmem [shape: bf16[2,8,32], index: 1, kind: input, shape index: {}]   ;;  %s2223_s2 = inlined_call_operand.vmem [shape: bf16[2,8,64], index: 2, kind: input, shape index: {}]   ;;  %s2224_s3 = inlined_call_operand.vmem [shape: f32[2,1,128], index: 3, kind: input, shape index: {}]   ;;  %s2225_s4 = inlined_call_operand.vmem [shape: bf16[32,32], index: 4, kind: input, shape index: {}]   ;;  %s2226_s5 = inlined_call_operand.vmem [shape: f32[1,32], index: 5, kind: input, shape index: {}]   ;;  %s2227_s6 = inlined_call_operand.vmem [shape: bf16[32,128], index: 6, kind: input, shape index: {}]   ;;  %s2228_s7 = inlined_call_operand.vmem [shape: f32[1,128], index: 7, kind: input, shape index: {}]   ;;  %s2229_s8 = inlined_call_operand.vmem [shape: bf16[128,32], index: 8, kind: input, shape index: {}]   ;;  %s2230_s9 = inlined_call_operand.vmem [shape: f32[1,32], index: 9, kind: input, shape index: {}]   ;;  %s2231_s10 = inlined_call_operand.hbm [shape: f32[2,8,32], index: 10, kind: output, shape index: {}]  }
   0x1   :  { %2233 = sst [smem:[#allocation9_spill]] %s2221_s0 }
   0x2   :  { %15 = vsyncpa [#allocation7], 0 }
   0x3   :  { %17 = vsyncpa [#allocation7 + $0x1], 0  ;;  %s1927_s13 = smov 0   ;;  %s1929_s14 = smov 0  }
   0x4   :  { %s1931_s15 = smov 0   ;;  %s1933_s16 = smov 0  }
   0x5   :  { %s1935_s17 = smov 0   ;;  %s1937_s18 = smov 0  }
   0x6 LB: > { %s1509_s19 = sadd.s32 4294967295, %s1853_s18   ;;  %s1510_s20 = sadd.s32 4294967294, %s1853_s18   ;;  %s1853_s18 = sphi %s1937_s18, %s23_s18   ;;  %s1849_s17 = sphi %s1935_s17, %s2242_s17   ;;  %s1845_s16 = sphi %s1933_s16, %s2241_s16   ;;  %s1841_s15 = sphi %s1931_s15, %s2240_s15   ;;  %s1837_s14 = sphi %s1929_s14, %s2239_s14   ;;  %s1833_s13 = sphi %s1927_s13, %s2238_s13  }
   0x7   : > { %s42_s21 = sadd.s32 1, %s1849_s17  ;;  %s287_s22 = sadd.s32 1, %s1841_s15 }
   0x8   : > { %p44_p0 = scmp.ge.s32.totalorder %s42_s21, 2  ;;  %p297_p1 = scmp.ne.s32.totalorder %s1841_s15, %s1837_s14 }
   0x9   : > { %p298_p2 = scmp.eq.s32.totalorder %s1509_s19, 1  ;;  %p303_p3 = scmp.ne.s32.totalorder %s1837_s14, %s1833_s13 }
   0xa   : > { %s2244_s21 = smov (%p44_p0, %s42_s21), 0  ;;  %p304_p5 = scmp.eq.s32.totalorder %s1510_s20, 1 }
   0xb   : > { %p1967_p4 = por %p298_p2, %p297_p1  ;;  %s282_s24 = ssub.s32 %s1849_s17, %s2244_s21 }
   0xc   : > { %p1513_p6 = scmp.ge.s32.totalorder %s1853_s18, 1  ;;  %p285_p7 = scmp.eq.s32.totalorder %s282_s24, 0 }
   0xd   : > { %p1974_p8 = por %p304_p5, %p303_p3  ;;  %p376_p9 = scmp.lt.s32.totalorder %s1853_s18, 3 }
   0xe   : > { %s1980_s26 = scalar_select %p285_p7, %s1841_s15, %s287_s22  }
   0xf   : > { %p377_p10 = pnand %p1513_p6, %p376_p9 }
  0x10   : > { %p433_p11 = scmp.lt.s32.totalorder (!%p377_p10), %s1845_s16, 1  ;;  %s2232_s22 = smov (!%p377_p10), 96  }
  0x11   : > { %380 = sbr.rel (%p377_p10) target bundleno = 2306 (0x902), region = 60  ;;  %s1858_s24 = smov (!%p377_p10), 120  }
  0x12   : > { %s1862_s29 = smov (!%p377_p10), 104   ;;  %s1863_s30 = smov (!%p377_p10), 88  }
  0x13   : > { %s1865_s12 = smov (!%p377_p10), 72   ;;  %s1866_s19 = smov (!%p377_p10), 8  }
  0x14   : > { %s2236_s0 = sld [smem:[#allocation9_spill]] (!%p377_p10) }
  0x16   : > { %v1855_v0 = vmov 0.0   ;;  %vm1856_vm0 = vmmov 0   ;;  %s1987_s27 = scalar_select %p433_p11, %s1845_s16, 1  ;;  %vm478_vm1 = vcmask 64512   ;;  %vm462_vm2 = vcmask 7168  }
  0x17   : > { %1579 = vmatprep.subr.bf16.mxu0 %v1855_v0  ;;  %1581 = vmatprep.mubr.msk.bf16.mxu0 %vm1856_vm0, %v1855_v0  ;;  %v1860_v8 = vmov -inf   ;;  %467 = vst.msk [vmem:[#allocation3] sm:$0xff] %vm462_vm2, %v1855_v0  ;;  %468 = vst.msk [vmem:[#allocation3 + $0x8] sm:$0xff] %vm462_vm2, %v1855_v0  ;;  %vm558_vm3 = vcmask 1043456   ;;  %v1861_v21 = vmov 0   ;;  %vm471_vm4 = vcmask 261120  }
  0x18   : > { %1603 = vmatprep.subr.bf16.mxu1 %v1855_v0  ;;  %1605 = vmatprep.mubr.msk.bf16.mxu1 %vm1856_vm0, %v1855_v0  ;;  %s1516_s28 = sshll.u32 %s1987_s27, 2  ;;  %463 = vst.msk [vmem:[#allocation2] sm:$0xff] %vm462_vm2, %v1860_v8  ;;  %464 = vst.msk [vmem:[#allocation2 + $0x8] sm:$0xff] %vm462_vm2, %v1860_v8  ;;  %vm749_vm5 = vcmask 130112   ;;  %vm888_vm6 = vcmask 195712   ;;  %vm1027_vm7 = vcmask 261312  }
  0x19   : > { %s446_s11 = scalar_lea.vmem %s2222_s1, %s1516_s28  ;;  %s453_s20 = scalar_lea.vmem %s2223_s2, %s1516_s28  ;;  %465 = vst.msk [vmem:[#allocation2 + $0x10] sm:$0xff] %vm462_vm2, %v1860_v8  ;;  %466 = vst.msk [vmem:[#allocation2 + $0x18] sm:$0xff] %vm462_vm2, %v1860_v8  ;;  %1734 = vset.pattern.permute.xlu0 %v1861_v21  ;;  %1735 = vset.pattern.permute.xlu1 %v1861_v21  ;;  %vm1044_vm8 = vcmask 60416   ;;  %vm1056_vm9 = vcmask 126016   ;;  %vm1068_vm10 = vcmask 191616   ;;  %vm1080_vm11 = vcmask 257216  }
  0x1a   : > { %v473_v1 = vld [vmem:[%s446_s11] sm:$0xf]  ;;  %s1859_s28 = smov 112   ;;  %469 = vst.msk [vmem:[#allocation3 + $0x10] sm:$0xff] %vm462_vm2, %v1855_v0  ;;  %470 = vst.msk [vmem:[#allocation3 + $0x18] sm:$0xff] %vm462_vm2, %v1855_v0  ;;  %s1864_s11 = smov 80  }
  0x1b   : > { %v477_v2 = vld [vmem:[%s453_s20] sm:$0xf]  ;;  %v474_v3 = vunpack.c.l.bf16 %v473_v1  ;;  %472 = vst.msk [vmem:[#allocation4] sm:$0xff] %vm471_vm4, %v1855_v0  ;;  %s1867_s20 = smov 16  }
  0x1c   : > { %v483_v4 = vsel %vm478_vm1, %v477_v2, 0  ;;  %v2000_v5 = vcombine.low %v477_v2, %v477_v2 }
  0x1d   : > { %1580 = vmatpush3.bf16.xpose.msra.mxu0 %v483_v4  ;;  %v475_v6 = vmul.f32 0.35355338, %v474_v3 }
  0x1e   : > { %553 = vrot.lane.b32.xlu1 %v2000_v5, %s2232_s22  ;;  %1585 = vmatprep.subr.bf16.mxu0 %v1855_v0  ;;  %v545_v56 = vld [vmem:[#allocation3] sm:$0xff] }
  0x1f   : > { %v476_v7 = vpack.c.bf16 %v475_v6, %v475_v6  ;;  %v525_v26 = vld [vmem:[#allocation2] sm:$0xff] }
  0x20   : > { %v803_v40 = vld [vmem:[#allocation2 + $0x10] sm:$0xff] }
  0x22   : > { %615 = vrot.lane.b32.xlu1 %v2000_v5, %s1858_s24 }
  0x24   : > { %1582 = vmatmul.mubr.msk.bf16.vlgmr.msra.gmra.mxu0 %vm478_vm1, %v476_v7 }
  0x25   : > { %1587 = vmatprep.mubr.msk.bf16.mxu0 %vm1856_vm0, %v1855_v0 }
  0x26   : > { %613 = vrot.lane.b32.xlu1 %v476_v7, %s1858_s24  ;;  %s1868_s24 = smov 24  }
  0x2a   : > { %754 = vrot.lane.b32.xlu1 %v2000_v5, %s1859_s28 }
  0x2e   : > { %752 = vrot.lane.b32.xlu1 %v476_v7, %s1859_s28 }
  0x32   : > { %893 = vrot.lane.b32.xlu1 %v2000_v5, %s1862_s29 }
  0x36   : > { %891 = vrot.lane.b32.xlu1 %v476_v7, %s1862_s29 }
  0x90   : > { %v554_v9 = vpop.permute.xlu1 %553 }
  0x91   : > { %v560_v10 = vsel %vm558_vm3, %v554_v9, 0 }
  0x92   : > { %1586 = vmatpush3.bf16.msra.mxu0 %v560_v10  ;;  %v824_v10 = vld [vmem:[#allocation3 + $0x10] sm:$0xff] }
  0x93   : > { %1591 = vmatprep.subr.bf16.mxu0 %v1855_v0 }
  0x94   : > { %v616_v11 = vpop.permute.xlu1 %615 }
  0x95   : > { %v621_v38 = vsel %vm478_vm1, %v616_v11, 0 }
  0x98   : > { %v614_v12 = vpop.permute.xlu1 %613 }
  0x9c   : > { %v755_v13 = vpop.permute.xlu1 %754 }
  0x9d   : > { %v760_v14 = vsel %vm478_vm1, %v755_v13, 0 }
  0x9e   : > { %1604 = vmatpush3.bf16.xpose.msra.mxu1 %v760_v14  ;;  %v664_v14 = vld [vmem:[#allocation2 + $0x8] sm:$0xff] }
  0x9f   : > { %1615 = vmatprep.subr.bf16.mxu1 %v1855_v0 }
  0xa0   : > { %v753_v15 = vpop.permute.xlu1 %752 }
  0xa4   : > { %v894_v30 = vpop.permute.xlu1 %893 }
  0xa5   : > { %1606 = vmatmul.mubr.msk.bf16.vlgmr.msra.gmra.mxu1 %vm478_vm1, %v753_v15  ;;  %v899_v31 = vsel %vm478_vm1, %v894_v30, 0 }
  0xa6   : > { %1617 = vmatprep.mubr.msk.bf16.mxu1 %vm1856_vm0, %v1855_v0  ;;  %1616 = vmatpush3.bf16.xpose.msra.mxu1 %v899_v31 }
  0xa7   : > { %1627 = vmatprep.subr.bf16.mxu1 %v1855_v0 }
  0xa8   : > { %v892_v32 = vpop.permute.xlu1 %891 }
  0xad   : > { %1618 = vmatmul.mubr.msk.bf16.vlgmr.msra.gmra.mxu1 %vm478_vm1, %v892_v32 }
  0xae   : > { %1631 = vmatprep.mubr.msk.bf16.mxu1 %vm1856_vm0, %v1855_v0 }
  0xe4   : > { %v519_v16 = vpop.f32.mrf.mxu0 }
  0xe5   : > { %v526_v17 = vsel %vm478_vm1, %v519_v16, -inf }
  0xe6   : > { %527 = vmax.xlane.f32.xlu0 %v526_v17  ;;  %v1583_v18 = vpop.f32.mrf.mxu0  ;;  %v942_v17 = vld [vmem:[#allocation2 + $0x18] sm:$0xff] }
  0xe8   : > { %v522_v19 = vpop.f32.mrf.mxu0 }
  0xea   : > { %v1584_v20 = vpop.f32.mrf.mxu0 }
 0x165   : > { %v796_v22 = vpop.f32.mrf.mxu1 }
 0x166   : > { %v804_v33 = vsel %vm478_vm1, %v796_v22, -inf }
 0x167   : > { %v1607_v23 = vpop.f32.mrf.mxu1 }
 0x169   : > { %v799_v24 = vpop.f32.mrf.mxu1 }
 0x16b   : > { %v1608_v25 = vpop.f32.mrf.mxu1 }
 0x16d   : > { %v2048_v45 = vpop.f32.mrf.mxu1 }
 0x16e   : > { %v943_v4 = vsel %vm478_vm1, %v2048_v45, -inf }
 0x16f   : > { %v528_v27 = vpop.xlane.xlu0 %527  ;;  %v1619_v46 = vpop.f32.mrf.mxu1 }
 0x170   : > { %v529_v28 = vmax.f32 %v525_v26, %v528_v27 }
 0x171   : > { %v938_v47 = vpop.f32.mrf.mxu1 }
 0x172   : > { %v530_v29 = vsub.f32 %v525_v26, %v529_v28  ;;  %611 = vst.msk [vmem:[#allocation2] sm:$0xff] %vm462_vm2, %v529_v28  ;;  %535 = vperm.xlu0 %1734, %v529_v28   ;;  %v602_v47 = vld [vmem:[#allocation4] sm:$0xff] }
 0x173   : > { %v1620_v48 = vpop.f32.mrf.mxu1 }
 0x174   : > { %v531_v54 = vmul.f32 1.442695, %v530_v29 }
 0x191   : > { %805 = vmax.xlane.f32.xlu0 %v804_v33 }
 0x1ed   : > { %v536_v34 = vpop.permute.xlu0 %535 }
 0x1ee   : > { %v538_v35 = vsub.f32 %v519_v16, %v536_v34 }
 0x1f0   : > { %v539_v36 = vmul.f32 1.442695, %v538_v35 }
 0x1f2   : > { %1749 = vpow2.f32 %v539_v36 }
 0x1ff   : > { %v1750_v37 = vpop.eup %1749 }
 0x200   : > { %v541_v39 = vpack.c.bf16 %v1750_v37, %v1750_v37  ;;  %v542_v44 = vsel %vm478_vm1, %v1750_v37, 0.0 }
 0x202   : > { %1588 = vmatmul.mubr.msk.bf16.vlgmr.msra.gmra.mxu0 %vm478_vm1, %v541_v39 }
 0x203   : > { %1592 = vmatpush3.bf16.xpose.msra.mxu0 %v621_v38  ;;  %1593 = vmatprep.mubr.msk.bf16.mxu0 %vm1856_vm0, %v1855_v0 }
 0x204   : > { %1597 = vmatprep.subr.bf16.mxu0 %v1855_v0 }
 0x20a   : > { %1594 = vmatmul.mubr.msk.bf16.vlgmr.msra.gmra.mxu0 %vm478_vm1, %v614_v12 }
 0x20b   : > { %1599 = vmatprep.mubr.msk.bf16.mxu0 %vm1856_vm0, %v1855_v0 }
 0x21a   : > { %v806_v41 = vpop.xlane.xlu0 %805 }
 0x21b   : > { %v807_v42 = vmax.f32 %v803_v40, %v806_v41 }
 0x21d   : > { %v808_v43 = vsub.f32 %v803_v40, %v807_v42  ;;  %890 = vst.msk [vmem:[#allocation2 + $0x10] sm:$0xff] %vm462_vm2, %v807_v42  ;;  %813 = vperm.xlu0 %1734, %v807_v42  }
 0x21f   : > { %v809_v8 = vmul.f32 1.442695, %v808_v43  ;;  %v685_v43 = vld [vmem:[#allocation3 + $0x8] sm:$0xff] }
 0x23c   : > { %543 = vadd.xlane.f32.xlu0 %v542_v44 }
 0x298   : > { %v814_v49 = vpop.permute.xlu0 %813 }
 0x299   : > { %v816_v50 = vsub.f32 %v796_v22, %v814_v49 }
 0x29b   : > { %v817_v51 = vmul.f32 1.442695, %v816_v50  ;;  %v963_v50 = vld [vmem:[#allocation3 + $0x18] sm:$0xff] }
 0x29d   : > { %1751 = vpow2.f32 %v817_v51 }
 0x29e   : > { %1753 = vpow2.f32 %v531_v54 }
 0x29f   : > { %1755 = vpow2.f32 %v809_v8 }
 0x2aa   : > { %v2050_v52 = vpop.eup %1751 }
 0x2ab   : > { %v820_v53 = vsel %vm478_vm1, %v2050_v52, 0.0  ;;  %v2054_v55 = vpop.eup %1753  ;;  %v819_v37 = vpack.c.bf16 %v2050_v52, %v2050_v52 }
 0x2ac   : > { %821 = vadd.xlane.f32.xlu0 %v820_v53  ;;  %v546_v59 = vmul.f32 %v2054_v55, %v545_v56  ;;  %v2063_v9 = vpop.eup %1755 }
 0x2ad   : > { %v825_v11 = vmul.f32 %v2063_v9, %v824_v10 }
 0x2c2   : > { %v2056_v57 = vpop.f32.mrf.mxu0 }
 0x2c4   : > { %v1589_v58 = vpop.f32.mrf.mxu0 }
 0x2c5   : > { %v544_v60 = vpop.xlane.xlu0 %543 }
 0x2c6   : > { %v547_v61 = vadd.f32 %v546_v59, %v544_v60  ;;  %v599_v62 = vpop.f32.mrf.mxu0 }
 0x2c8   : > { %549 = vst.msk [vmem:[#allocation3] sm:$0xff] %vm462_vm2, %v547_v61  ;;  %v1590_v63 = vpop.f32.mrf.mxu0 }
 0x2ca   : > { %v657_v1 = vpop.f32.mrf.mxu0 }
 0x2cb   : > { %v665_v2 = vsel %vm478_vm1, %v657_v1, -inf }
 0x2cc   : > { %666 = vmax.xlane.f32.xlu1 %v665_v2  ;;  %v1595_v3 = vpop.f32.mrf.mxu0 }
 0x2ce   : > { %v660_v6 = vpop.f32.mrf.mxu0 }
 0x2cf   : > { %v1034_v56 = vld [vmem:[#allocation3] sm:$0xff] }
 0x2d0   : > { %v1596_v7 = vpop.f32.mrf.mxu0  ;;  %944 = vmax.xlane.f32.xlu1 %v943_v4 }
 0x335   : > { %v822_v12 = vpop.xlane.xlu0 %821 }
 0x336   : > { %v826_v13 = vadd.f32 %v825_v11, %v822_v12 }
 0x338   : > { %827 = vst.msk [vmem:[#allocation3 + $0x10] sm:$0xff] %vm462_vm2, %v826_v13 }
 0x33f   : > { %v1058_v59 = vld [vmem:[#allocation3 + $0x10] sm:$0xff] }
 0x355   : > { %v667_v15 = vpop.xlane.xlu1 %666 }
 0x356   : > { %v668_v16 = vmax.f32 %v664_v14, %v667_v15  ;;  %v1738_v15 = vld [vmem:[%s2225_s4] sm:$0xff]  }
 0x358   : > { %v669_v18 = vsub.f32 %v664_v14, %v668_v16  ;;  %751 = vst.msk [vmem:[#allocation2 + $0x8] sm:$0xff] %vm462_vm2, %v668_v16  ;;  %674 = vperm.xlu1 %1735, %v668_v16   ;;  %v1737_v14 = vld [vmem:[%s2225_s4 + $0x8] sm:$0xff]  }
 0x359   : > { %v945_v19 = vpop.xlane.xlu1 %944  ;;  %1628 = vmatpush3.bf16.msra.mxu1 %v1737_v14 }
 0x35a   : > { %v946_v20 = vmax.f32 %v942_v17, %v945_v19  ;;  %v670_v39 = vmul.f32 1.442695, %v669_v18  ;;  %1629 = vmatprep.subr.bf16.mxu1 %v1855_v0 }
 0x35c   : > { %689 = vrot.lane.b32.xlu1 %v2000_v5, %s1863_s30  ;;  %v947_v21 = vsub.f32 %v942_v17, %v946_v20  ;;  %1029 = vst.msk [vmem:[#allocation2 + $0x18] sm:$0xff] %vm462_vm2, %v946_v20 }
 0x35d   : > { %1630 = vmatpush3.bf16.msra.mxu1 %v1738_v15 }
 0x35e   : > { %v948_v42 = vmul.f32 1.442695, %v947_v21  ;;  %1643 = vmatprep.subr.bf16.mxu1 %v1855_v0 }
 0x360   : > { %952 = vperm.xlu1 %1735, %v946_v20  }
 0x364   : > { %828 = vrot.lane.b32.xlu1 %v2000_v5, %s1864_s11  ;;  %s1545_s11 = sshll.u32 %s1845_s16, 7  ;;  %s1871_s16 = smov [#allocation6]  }
 0x368   : > { %967 = vrot.lane.b32.xlu1 %v2000_v5, %s1865_s12  ;;  %s1870_s12 = smov 32  }
 0x3d3   : > { %v675_v22 = vpop.permute.xlu1 %674 }
 0x3d4   : > { %v677_v23 = vsub.f32 %v657_v1, %v675_v22 }
 0x3d6   : > { %v678_v24 = vmul.f32 1.442695, %v677_v23 }
 0x3d7   : > { %v690_v25 = vpop.permute.xlu1 %689 }
 0x3d8   : > { %1757 = vpow2.f32 %v678_v24  ;;  %v695_v26 = vsel %vm558_vm3, %v690_v25, 0 }
 0x3d9   : > { %1598 = vmatpush3.bf16.msra.mxu0 %v695_v26 }
 0x3da   : > { %1609 = vmatprep.subr.bf16.mxu0 %v1855_v0 }
 0x3db   : > { %v953_v27 = vpop.permute.xlu1 %952 }
 0x3dc   : > { %v955_v28 = vsub.f32 %v2048_v45, %v953_v27 }
 0x3de   : > { %v956_v29 = vmul.f32 1.442695, %v955_v28 }
 0x3df   : > { %v829_v30 = vpop.permute.xlu1 %828 }
 0x3e0   : > { %1759 = vpow2.f32 %v956_v29  ;;  %v834_v33 = vsel %vm558_vm3, %v829_v30, 0 }
 0x3e1   : > { %1761 = vpow2.f32 %v670_v39 }
 0x3e2   : > { %1763 = vpow2.f32 %v948_v42 }
 0x3e3   : > { %v968_v34 = vpop.permute.xlu1 %967  ;;  %1765 = vrcp.f32 %v1034_v56 }
 0x3e4   : > { %v973_v38 = vsel %vm558_vm3, %v968_v34, 0  ;;  %1767 = vrcp.f32 %v1058_v59 }
 0x3e5   : > { %v1758_v31 = vpop.eup %1757 }
 0x3e6   : > { %v681_v32 = vsel %vm478_vm1, %v1758_v31, 0.0  ;;  %v680_v5 = vpack.c.bf16 %v1758_v31, %v1758_v31 }
 0x3e7   : > { %682 = vadd.xlane.f32.xlu1 %v681_v32 }
 0x3e8   : > { %1600 = vmatmul.mubr.msk.bf16.vlgmr.msra.gmra.mxu0 %vm478_vm1, %v680_v5 }
 0x3e9   : > { %1610 = vmatpush3.bf16.msra.mxu0 %v834_v33  ;;  %1611 = vmatprep.mubr.msk.bf16.mxu0 %vm1856_vm0, %v1855_v0 }
 0x3ea   : > { %1621 = vmatprep.subr.bf16.mxu0 %v1855_v0 }
 0x3ed   : > { %v1760_v35 = vpop.eup %1759 }
 0x3ee   : > { %v959_v36 = vsel %vm478_vm1, %v1760_v35, 0.0  ;;  %v958_v40 = vpack.c.bf16 %v1760_v35, %v1760_v35  ;;  %v1762_v41 = vpop.eup %1761 }
 0x3ef   : > { %960 = vadd.xlane.f32.xlu0 %v959_v36  ;;  %v686_v44 = vmul.f32 %v1762_v41, %v685_v43  ;;  %v1764_v48 = vpop.eup %1763 }
 0x3f0   : > { %1612 = vmatmul.mubr.msk.bf16.vlgmr.msra.gmra.mxu0 %vm478_vm1, %v819_v37  ;;  %v964_v53 = vmul.f32 %v1764_v48, %v963_v50  ;;  %v1766_v3 = vpop.eup %1765 }
 0x3f1   : > { %1622 = vmatpush3.bf16.msra.mxu0 %v973_v38  ;;  %1623 = vmatprep.mubr.msk.bf16.mxu0 %vm1856_vm0, %v1855_v0  ;;  %v1768_v7 = vpop.eup %1767 }
 0x3f2   : > { %1635 = vmatprep.subr.bf16.mxu0 %v1855_v0 }
 0x3f8   : > { %605 = vperm.xlu1 %1735, %v2054_v55   ;;  %1624 = vmatmul.mubr.msk.bf16.vlgmr.msra.gmra.mxu0 %vm478_vm1, %v958_v40 }
 0x3f9   : > { %1639 = vmatprep.mubr.msk.bf16.mxu0 %vm1856_vm0, %v1855_v0 }
 0x405   : > { %740 = vperm.xlu0 %1734, %v1762_v41  }
 0x470   : > { %v683_v45 = vpop.xlane.xlu1 %682 }
 0x471   : > { %v687_v46 = vadd.f32 %v686_v44, %v683_v45  ;;  %v1152_v44 = vlaneseq }
 0x473   : > { %688 = vst.msk [vmem:[#allocation3 + $0x8] sm:$0xff] %vm462_vm2, %v687_v46  ;;  %v1153_v45 = vshrl.u32 %v1152_v44, 7 }
 0x474   : > { %v606_v49 = vpop.permute.xlu1 %605 }
 0x475   : > { %v608_v51 = vmul.f32 %v606_v49, %v602_v47  ;;  %v1154_v46 = vsub.s32 0, %v1153_v45 }
 0x477   : > { %v609_v52 = vadd.f32 %v608_v51, %v2056_v57 }
 0x478   : > { %v961_v54 = vpop.xlane.xlu0 %960 }
 0x479   : > { %610 = vst.msk [vmem:[#allocation4] sm:$0xff] %vm478_vm1, %v609_v52  ;;  %v965_v55 = vadd.f32 %v964_v53, %v961_v54 }
 0x47a   : > { %v1046_v62 = vld [vmem:[#allocation3 + $0x8] sm:$0xff] }
 0x47b   : > { %966 = vst.msk [vmem:[#allocation3 + $0x18] sm:$0xff] %vm462_vm2, %v965_v55  ;;  %1769 = vrcp.f32 %v1046_v62 }
 0x480   : > { %v741_v16 = vpop.permute.xlu0 %740  ;;  %v737_v17 = vld [vmem:[#allocation4] sm:$0xff] }
 0x481   : > { %v743_v18 = vmul.f32 %v741_v16, %v737_v17  ;;  %v1741_v16 = vld [vmem:[%s2229_s8 + $0x38] sm:$0xff]   ;;  %v1742_v17 = vld [vmem:[%s2229_s8 + $0x30] sm:$0xff]  }
 0x482   : > { %v1070_v1 = vld [vmem:[#allocation3 + $0x18] sm:$0xff] }
 0x483   : > { %1771 = vrcp.f32 %v1070_v1 }
 0x4a8   : > { %v731_v58 = vpop.f32.mrf.mxu0 }
 0x4a9   : > { %745 = vrot.lane.b32.xlu1 %v731_v58, %s1866_s19  ;;  %s1869_s19 = smov 64  }
 0x4aa   : > { %v1601_v60 = vpop.f32.mrf.mxu0 }
 0x4ac   : > { %v734_v61 = vpop.f32.mrf.mxu0 }
 0x4ad   : > { %879 = vperm.xlu1 %1735, %v2063_v9   ;;  %v1770_v9 = vpop.eup %1769 }
 0x4ae   : > { %v1602_v57 = vpop.f32.mrf.mxu0  ;;  %v1772_v13 = vpop.eup %1771 }
 0x4b0   : > { %v870_v63 = vpop.f32.mrf.mxu0 }
 0x4b1   : > { %1018 = vperm.xlu1 %1735, %v1764_v48   ;;  %884 = vrot.lane.b32.xlu0 %v870_v63, %s1867_s20  ;;  %s456_s20 = scalar_lea.vmem %s2224_s3, %s1987_s27  ;;  %v1527_v48 = vld [vmem:[%s2226_s5] ss:$0 sm:$0xff] }
 0x4b2   : > { %v1613_v2 = vpop.f32.mrf.mxu0  ;;  %v1033_v47 = vld [vmem:[%s456_s20] sm:$0x1]  ;;  %s2180_s20 = scalar_lea.hbm %s2231_s10, %s1545_s11 }
 0x4b3   : > { %v1155_v49 = vrot.slane %v1033_v47, %v1154_v46  ;;  %v1173_v1 = vadd.f32 1.0, %v1033_v47  ;;  %v1739_v2 = vld [vmem:[%s2227_s6 + $0x8] sm:$0xff]  }
 0x4b4   : > { %v873_v4 = vpop.f32.mrf.mxu0  ;;  %1636 = vmatpush3.bf16.msra.mxu0 %v1739_v2 }
 0x4b5   : > { %1039 = vperm.xlu1 %1735, %v1766_v3   ;;  %1637 = vmatprep.subr.bf16.mxu0 %v1855_v0  ;;  %v1178_v3 = vrot.slane %v1173_v1, %v1154_v46  ;;  %v1740_v4 = vld [vmem:[%s2227_s6] sm:$0xff]  }
 0x4b6   : > { %v1614_v6 = vpop.f32.mrf.mxu0 }
 0x4b8   : > { %v1009_v8 = vpop.f32.mrf.mxu0  ;;  %1638 = vmatpush3.bf16.msra.mxu0 %v1740_v4 }
 0x4b9   : > { %1063 = vperm.xlu1 %1735, %v1768_v7   ;;  %1023 = vrot.lane.b32.xlu0 %v1009_v8, %s1868_s24  ;;  %s1515_s24 = sshll.u32 %s1987_s27, 3  ;;  %s2237_s27 = smov 96  }
 0x4ba   : > { %v1625_v10 = vpop.f32.mrf.mxu0  ;;  %s439_s22 = scalar_lea.vmem %s2236_s0, %s1515_s24  ;;  %s430_s24 = sand.u32 1, %s1837_s14  }
 0x4bb   : > { %v1150_v52 = vld [vmem:[%s439_s22] sm:$0xff]  ;;  %s1514_s28 = sshll.u32 %s430_s24, 3  ;;  %s1382_s29 = scalar_lea.sflag [#allocation7], %s430_s24 }
 0x4bc   : > { %v1012_v11 = vpop.f32.mrf.mxu0 }
 0x4bd   : > { %1051 = vperm.xlu0 %1734, %v1770_v9  }
 0x4be   : > { %v1626_v12 = vpop.f32.mrf.mxu0 }
 0x4c1   : > { %1075 = vperm.xlu0 %1734, %v1772_v13  }
 0x51b   : > { %v746_v19 = vpop.permute.xlu1 %745 }
 0x51c   : > { %v748_v20 = vadd.f32 %v746_v19, %v743_v18  ;;  %v1743_v18 = vld [vmem:[%s2229_s8 + $0x28] sm:$0xff]   ;;  %v1744_v19 = vld [vmem:[%s2229_s8 + $0x20] sm:$0xff]  }
 0x51e   : > { %750 = vst.msk [vmem:[#allocation4] sm:$0xff] %vm749_vm5, %v748_v20  ;;  %v1745_v20 = vld [vmem:[%s2229_s8 + $0x18] sm:$0xff]  }
 0x523   : > { %v885_v24 = vpop.permute.xlu0 %884 }
 0x525   : > { %v876_v21 = vld [vmem:[#allocation4] sm:$0xff] }
 0x528   : > { %v880_v22 = vpop.permute.xlu1 %879 }
 0x529   : > { %v882_v23 = vmul.f32 %v880_v22, %v876_v21  ;;  %v1746_v21 = vld [vmem:[%s2229_s8 + $0x10] sm:$0xff]   ;;  %v1747_v22 = vld [vmem:[%s2229_s8 + $0x8] sm:$0xff]  }
 0x52b   : > { %v887_v25 = vadd.f32 %v885_v24, %v882_v23  ;;  %v1024_v29 = vpop.permute.xlu0 %1023  ;;  %v1748_v23 = vld [vmem:[%s2229_s8] sm:$0xff]  }
 0x52c   : > { %v1019_v26 = vpop.permute.xlu1 %1018  ;;  %v1531_v24 = vld [vmem:[%s2228_s7] ss:$0 sm:$0xff] }
 0x52d   : > { %889 = vst.msk [vmem:[#allocation4] sm:$0xff] %vm888_vm6, %v887_v25 }
 0x530   : > { %v1040_v31 = vpop.permute.xlu1 %1039 }
 0x534   : > { %v1015_v27 = vld [vmem:[#allocation4] sm:$0xff]  ;;  %v1064_v33 = vpop.permute.xlu1 %1063 }
 0x535   : > { %v1021_v28 = vmul.f32 %v1019_v26, %v1015_v27 }
 0x537   : > { %v1026_v30 = vadd.f32 %v1024_v29, %v1021_v28 }
 0x538   : > { %v1052_v32 = vpop.permute.xlu0 %1051 }
 0x539   : > { %1028 = vst.msk [vmem:[#allocation4] sm:$0xff] %vm1027_vm7, %v1026_v30 }
 0x53c   : > { %v1076_v37 = vpop.permute.xlu0 %1075 }
 0x540   : > { %v1036_v5 = vld [vmem:[#allocation4] sm:$0xff] }
 0x541   : > { %v1042_v34 = vmul.f32 %v1040_v31, %v1036_v5  ;;  %v1066_v35 = vmul.f32 %v1064_v33, %v1036_v5  ;;  %v1054_v36 = vmul.f32 %v1052_v32, %v1036_v5  ;;  %v1078_v38 = vmul.f32 %v1076_v37, %v1036_v5 }
 0x543   : > { %v1043_v39 = vpack.c.bf16 %v1042_v34, %v1042_v34  ;;  %v1055_v40 = vpack.c.bf16 %v1054_v36, %v1054_v36  ;;  %v1067_v41 = vpack.c.bf16 %v1066_v35, %v1066_v35  ;;  %v1079_v42 = vpack.c.bf16 %v1078_v38, %v1078_v38  ;;  %v1535_v38 = vld [vmem:[%s2230_s9] ss:$0 sm:$0xff] }
 0x545   : > { %1045 = vst.msk [vmem:[#allocation5] sm:$0xf] %vm1044_vm8, %v1043_v39 }
 0x546   : > { %1057 = vst.msk [vmem:[#allocation5] sm:$0xf] %vm1056_vm9, %v1055_v40 }
 0x547   : > { %1069 = vst.msk [vmem:[#allocation5] sm:$0xf] %vm1068_vm10, %v1067_v41 }
 0x548   : > { %1081 = vst.msk [vmem:[#allocation5] sm:$0xf] %vm1080_vm11, %v1079_v42 }
 0x54f   : > { %v1082_v43 = vld [vmem:[#allocation5] sm:$0xf] }
 0x550   : > { %1632 = vmatmul.mubr.msk.bf16.vlgmr.msra.gmra.mxu1 %vm471_vm4, %v1082_v43 }
 0x551   : > { %1659 = vmatprep.mubr.msk.bf16.mxu1 %vm1856_vm0, %v1855_v0  ;;  %1644 = vmatpush3.bf16.msra.mxu1 %v1741_v16 }
 0x552   : > { %1645 = vmatprep.subr.bf16.mxu1 %v1855_v0 }
 0x555   : > { %1646 = vmatpush3.bf16.msra.mxu1 %v1742_v17 }
 0x556   : > { %1647 = vmatprep.subr.bf16.mxu1 %v1855_v0 }
 0x559   : > { %1648 = vmatpush3.bf16.msra.mxu1 %v1743_v18 }
 0x55a   : > { %1649 = vmatprep.subr.bf16.mxu1 %v1855_v0 }
 0x55d   : > { %1650 = vmatpush3.bf16.msra.mxu1 %v1744_v19 }
 0x55e   : > { %1651 = vmatprep.subr.bf16.mxu1 %v1855_v0 }
 0x561   : > { %1652 = vmatpush3.bf16.msra.mxu1 %v1745_v20 }
 0x562   : > { %1653 = vmatprep.subr.bf16.mxu1 %v1855_v0 }
 0x565   : > { %1654 = vmatpush3.bf16.msra.mxu1 %v1746_v21 }
 0x566   : > { %1655 = vmatprep.subr.bf16.mxu1 %v1855_v0 }
 0x569   : > { %1656 = vmatpush3.bf16.msra.mxu1 %v1747_v22 }
 0x56a   : > { %1657 = vmatprep.subr.bf16.mxu1 %v1855_v0 }
 0x56d   : > { %1658 = vmatpush3.bf16.msra.mxu1 %v1748_v23 }
 0x610   : > { %v1144_v50 = vpop.f32.mrf.mxu1 }
 0x611   : > { %v1145_v51 = vadd.f32 %v1527_v48, %v1144_v50 }
 0x612   : > { %v1633_v53 = vpop.f32.mrf.mxu1 }
 0x613   : > { %v1157_v54 = vmul.f32 %v1155_v49, %v1145_v51 }
 0x614   : > { %v1147_v55 = vpop.f32.mrf.mxu1 }
 0x615   : > { %v2122_v56 = vadd.f32 %v1157_v54, %v1150_v52 }
 0x616   : > { %v1634_v58 = vpop.f32.mrf.mxu1 }
 0x617   : > { %v1159_v59 = vsel %vm471_vm4, %v2122_v56, 0.0 }
 0x618   : > { %1160 = vadd.xlane.f32.xlu1 %v1159_v59 }
 0x629   : > { %1183 = vrot.lane.b32.xlu1 %v1155_v49, %s2237_s27  ;;  %s432_s27 = scalar_lea.vmem [#allocation6], %s1514_s28  ;;  %s1781_s28 = sshll.u32 %s1871_s16, 4  ;;  %s1782_s28 = int_to_ptr.vmem [resolvable:$false] %s1781_s28 }
 0x62a   : > { %s1396_s22 = sshll.u32 %s432_s27, 4  ;;  %s1783_s0 = scalar_lea.vmem %s1782_s28, 256  ;;  %s1397_s22 = int_to_ptr.vmem [resolvable:$true] %s1396_s22 }
 0x62b   : > { %s1777_s30 = scalar_lea.vmem %s1397_s22, 128  ;;  %p1784_p1 = scmp.lt.s32.totalorder %s1397_s22, %s1782_s28 }
 0x62c   : > { %p1778_p12 = scmp.ne.s32.totalorder %s1397_s22, %s1777_s30  ;;  %p1785_p2 = scmp.lt.s32.totalorder %s1783_s0, %s1777_s30 }
 0x62d   : > { %1375 = vrot.lane.b32.xlu1 %v1155_v49, %s1870_s12 }
 0x62e   : > { %p1779_p13 = pnand %p1778_p12, %p1967_p4  ;;  %p1786_p3 = por %p1785_p2, %p1784_p1 }
 0x630   : > { %p1780_p0 = pneg %p1779_p13 }
 0x632   : > { %p1787_p5 = pnand %p1786_p3, %p1780_p0 }
 0x6a1   : > { %v1161_v60 = vpop.xlane.xlu1 %1160 }
 0x6a2   : > { %v1163_v61 = vmul.f32 0.03125, %v1161_v60 }
 0x6a4   : > { %v1164_v62 = vsub.f32 %v2122_v56, %v1163_v61 }
 0x6a5   : > { %v1184_v12 = vpop.permute.xlu1 %1183 }
 0x6a6   : > { %v1165_v57 = vmul.f32 %v1164_v62, %v1164_v62 }
 0x6a8   : > { %v1166_v63 = vsel %vm471_vm4, %v1165_v57, 0.0 }
 0x6a9   : > { %1167 = vadd.xlane.f32.xlu0 %v1166_v63  ;;  %v1376_v40 = vpop.permute.xlu1 %1375 }
 0x6bf   : > { %1179 = vrot.lane.b32.xlu0 %v1178_v3, %s1869_s19 }
 0x732   : > { %v1168_v6 = vpop.xlane.xlu0 %1167 }
 0x733   : > { %v1169_v7 = vmul.f32 0.03125, %v1168_v6 }
 0x735   : > { %v1170_v8 = vadd.f32 1e-06, %v1169_v7 }
 0x736   : > { %v1180_v9 = vpop.permute.xlu0 %1179 }
 0x737   : > { %1773 = vrsqrt.f32 %v1170_v8 }
 0x744   : > { %v1774_v10 = vpop.eup %1773 }
 0x745   : > { %v1172_v11 = vmul.f32 %v1774_v10, %v1164_v62 }
 0x747   : > { %v1182_v13 = vmul.f32 %v1180_v9, %v1172_v11 }
 0x749   : > { %v1186_v14 = vadd.f32 %v1184_v12, %v1182_v13 }
 0x74b   : > { %v1187_v15 = vpack.c.bf16 %v1186_v14, %v1186_v14 }
 0x74d   : > { %1640 = vmatmul.mubr.msk.bf16.vlgmr.msra.gmra.mxu0 %vm471_vm4, %v1187_v15 }
 0x80d   : > { %v1248_v25 = vpop.f32.mrf.mxu0 }
 0x80e   : > { %v1249_v26 = vadd.f32 %v1531_v24, %v1248_v25 }
 0x80f   : > { %v1641_v27 = vpop.f32.mrf.mxu0 }
 0x810   : > { %v1255_v28 = vmul.f32 0.044715, %v1249_v26  ;;  %v1254_v34 = vmul.f32 0.5, %v1249_v26 }
 0x811   : > { %v1251_v29 = vpop.f32.mrf.mxu0 }
 0x812   : > { %v1256_v30 = vmul.f32 %v1255_v28, %v1249_v26 }
 0x813   : > { %v1642_v31 = vpop.f32.mrf.mxu0 }
 0x814   : > { %v1257_v32 = vmul.f32 %v1256_v30, %v1249_v26 }
 0x816   : > { %v1258_v5 = vadd.f32 %v1257_v32, %v1249_v26 }
 0x818   : > { %v1259_v33 = vmul.f32 0.7978846, %v1258_v5 }
 0x81a   : > { %1775 = vtanh.f32 %v1259_v33 }
 0x827   : > { %v1776_v0 = vpop.eup %1775 }
 0x828   : > { %v1261_v35 = vadd.f32 1.0, %v1776_v0 }
 0x82a   : > { %v1262_v36 = vmul.f32 %v1261_v35, %v1254_v34 }
 0x82c   : > { %v1263_v37 = vpack.c.bf16 %v1262_v36, %v1262_v36 }
 0x82e   : > { %1660 = vmatmul.mubr.bf16.vlgmr.msra.gmra.mxu1 %v1263_v37 }
 0x8ee   : > { %v1369_v39 = vpop.f32.mrf.mxu1 }
 0x8ef   : > { %v1370_v41 = vadd.f32 %v1535_v38, %v1369_v39 }
 0x8f0   : > { %v1661_v42 = vpop.f32.mrf.mxu1 }
 0x8f1   : > { %v1378_v43 = vmul.f32 %v1376_v40, %v1370_v41 }
 0x8f2   : > { %v1372_v44 = vpop.f32.mrf.mxu1 }
 0x8f3   : > { %v1379_v45 = vadd.f32 %v1378_v43, %v2122_v56 }
 0x8f4   : > { %v1662_v46 = vpop.f32.mrf.mxu1 }
 0x8f5   : > { %1380 = vst.msk [vmem:[%s432_s27] sm:$0xff] %vm471_vm4, %v1379_v45 }
 0x8f6   : > { %1790 = shalt.err (!%p1787_p5)
}
 0x8f7   : > { %s1791_s11 = scalar_lea.hbm %s2180_s20, 128  ;;  %s1795_s12 = scalar_lea.hbm %s2231_s10, 256 }
 0x8f8   : > { %p1792_p6 = scmp.ne.s32.totalorder %s2180_s20, %s1791_s11  ;;  %p1796_p10 = scmp.lt.s32.totalorder %s2180_s20, %s2231_s10 }
 0x8f9   : > { %p1797_p11 = scmp.lt.s32.totalorder %s1795_s12, %s1791_s11 }
 0x8fa   : > { %p1793_p7 = pnand %p1792_p6, %p1967_p4 }
 0x8fb   : > { %p1798_p12 = por %p1797_p11, %p1796_p10 }
 0x8fc   : > { %p1794_p9 = pneg %p1793_p7 }
 0x8fe   : > { %p1799_p13 = pnand %p1798_p12, %p1794_p9 }
 0x900   : > { %1802 = shalt.err (!%p1799_p13)
}
 0x901   : > { %1663 = dma.vmem_to_hbm [thread:$0]  (%p1967_p4), %s1397_s22, 128, %s2180_s20, %s1382_s29  }
 0x902 PF: > { %p1669_p0 = scmp.ge.s32.totalorder %s1853_s18, 2  ;;  %s1408_s0 = sand.u32 1, %s1833_s13  }
 0x903   : > { %s1409_s30 = scalar_lea.sflag [#allocation7], %s1408_s0 }
 0x904   : > { %p1666_p1 = pnand %p1669_p0, %p1974_p8 }
 0x906   : > { %p1667_p2 = pneg %p1666_p1 }
 0x908   : > { %1828 = dma.done.wait (%p1667_p2), %s1409_s30, 128  }
 0x909   : > { %1830 = vsyncadd (%p1667_p2), %s1409_s30, 4294967168  ;;  %s23_s18 = sadd.s32 1, %s1853_s18   ;;  %s2238_s13 = smov %s1837_s14 }
 0x90a   : > { %p20_p3 = scmp.ge.s32.totalorder %s23_s18, 4   ;;  %s2239_s14 = smov %s1841_s15 }
 0x90b   : > { %s2240_s15 = smov %s1980_s26  ;;  %s2241_s16 = smov %s1849_s17 }
 0x90c   : > { %s2242_s17 = smov %s2244_s21  ;;  %22 = sbr.rel (!%p20_p3) target bundleno = 6 (0x6), region = 118 }
 0x911   :  { %1414 = vsyncpa [#allocation7], 1 }
 0x912   :  { %1416 = vsyncpa [#allocation7 + $0x1], 1 }

// kernel: tpu_custom_call.1
= control target key start
LH: loop header
LB: loop body
LE: loop exit
PB: predicated region body
PF: predicated region fallthrough
CT: control target
= control target key end

     0   :  { %s2221_s0 = inlined_call_operand.vmem [shape: f32[2,8,32], index: 0, kind: input, shape index: {}]   ;;  %s2222_s1 = inlined_call_operand.vmem [shape: bf16[2,8,32], index: 1, kind: input, shape index: {}]   ;;  %s2223_s2 = inlined_call_operand.vmem [shape: bf16[2,8,64], index: 2, kind: input, shape index: {}]   ;;  %s2224_s3 = inlined_call_operand.vmem [shape: f32[2,1,128], index: 3, kind: input, shape index: {}]   ;;  %s2225_s4 = inlined_call_operand.vmem [shape: bf16[32,32], index: 4, kind: input, shape index: {}]   ;;  %s2226_s5 = inlined_call_operand.vmem [shape: f32[1,32], index: 5, kind: input, shape index: {}]   ;;  %s2227_s6 = inlined_call_operand.vmem [shape: bf16[32,128], index: 6, kind: input, shape index: {}]   ;;  %s2228_s7 = inlined_call_operand.vmem [shape: f32[1,128], index: 7, kind: input, shape index: {}]   ;;  %s2229_s8 = inlined_call_operand.vmem [shape: bf16[128,32], index: 8, kind: input, shape index: {}]   ;;  %s2230_s9 = inlined_call_operand.vmem [shape: f32[1,32], index: 9, kind: input, shape index: {}]   ;;  %s2231_s10 = inlined_call_operand.hbm [shape: f32[2,8,32], index: 10, kind: output, shape index: {}]  }
   0x1   :  { %2233 = sst [smem:[#allocation9_spill]] %s2221_s0 }
   0x2   :  { %15 = vsyncpa [#allocation7], 0 }
   0x3   :  { %17 = vsyncpa [#allocation7 + $0x1], 0  ;;  %s1927_s13 = smov 0   ;;  %s1929_s14 = smov 0  }
   0x4   :  { %s1931_s15 = smov 0   ;;  %s1933_s16 = smov 0  }
   0x5   :  { %s1935_s17 = smov 0   ;;  %s1937_s18 = smov 0  }
   0x6 LB: > { %s1509_s19 = sadd.s32 4294967295, %s1853_s18   ;;  %s1510_s20 = sadd.s32 4294967294, %s1853_s18   ;;  %s1853_s18 = sphi %s1937_s18, %s23_s18   ;;  %s1849_s17 = sphi %s1935_s17, %s2242_s17   ;;  %s1845_s16 = sphi %s1933_s16, %s2241_s16   ;;  %s1841_s15 = sphi %s1931_s15, %s2240_s15   ;;  %s1837_s14 = sphi %s1929_s14, %s2239_s14   ;;  %s1833_s13 = sphi %s1927_s13, %s2238_s13  }
   0x7   : > { %s42_s21 = sadd.s32 1, %s1849_s17  ;;  %s287_s22 = sadd.s32 1, %s1841_s15 }
   0x8   : > { %p44_p0 = scmp.ge.s32.totalorder %s42_s21, 2  ;;  %p297_p1 = scmp.ne.s32.totalorder %s1841_s15, %s1837_s14 }
   0x9   : > { %p298_p2 = scmp.eq.s32.totalorder %s1509_s19, 1  ;;  %p303_p3 = scmp.ne.s32.totalorder %s1837_s14, %s1833_s13 }
   0xa   : > { %s2244_s21 = smov (%p44_p0, %s42_s21), 0  ;;  %p304_p5 = scmp.eq.s32.totalorder %s1510_s20, 1 }
   0xb   : > { %p1967_p4 = por %p298_p2, %p297_p1  ;;  %s282_s24 = ssub.s32 %s1849_s17, %s2244_s21 }
   0xc   : > { %p1513_p6 = scmp.ge.s32.totalorder %s1853_s18, 1  ;;  %p285_p7 = scmp.eq.s32.totalorder %s282_s24, 0 }
   0xd   : > { %p1974_p8 = por %p304_p5, %p303_p3  ;;  %p376_p9 = scmp.lt.s32.totalorder %s1853_s18, 3 }
   0xe   : > { %s1980_s26 = scalar_select %p285_p7, %s1841_s15, %s287_s22  }
   0xf   : > { %p377_p10 = pnand %p1513_p6, %p376_p9 }
  0x10   : > { %p433_p11 = scmp.lt.s32.totalorder (!%p377_p10), %s1845_s16, 1  ;;  %s2232_s22 = smov (!%p377_p10), 96  }
  0x11   : > { %380 = sbr.rel (%p377_p10) target bundleno = 2306 (0x902), region = 60  ;;  %s1858_s24 = smov (!%p377_p10), 120  }
  0x12   : > { %s1862_s29 = smov (!%p377_p10), 104   ;;  %s1863_s30 = smov (!%p377_p10), 88  }
  0x13   : > { %s1865_s12 = smov (!%p377_p10), 72   ;;  %s1866_s19 = smov (!%p377_p10), 8  }
  0x14   : > { %s2236_s0 = sld [smem:[#allocation9_spill]] (!%p377_p10) }
  0x16   : > { %v1855_v0 = vmov 0.0   ;;  %vm1856_vm0 = vmmov 0   ;;  %s1987_s27 = scalar_select %p433_p11, %s1845_s16, 1  ;;  %vm478_vm1 = vcmask 64512   ;;  %vm462_vm2 = vcmask 7168  }
  0x17   : > { %1579 = vmatprep.subr.bf16.mxu0 %v1855_v0  ;;  %1581 = vmatprep.mubr.msk.bf16.mxu0 %vm1856_vm0, %v1855_v0  ;;  %v1860_v8 = vmov -inf   ;;  %467 = vst.msk [vmem:[#allocation3] sm:$0xff] %vm462_vm2, %v1855_v0  ;;  %468 = vst.msk [vmem:[#allocation3 + $0x8] sm:$0xff] %vm462_vm2, %v1855_v0  ;;  %vm558_vm3 = vcmask 1043456   ;;  %v1861_v21 = vmov 0   ;;  %vm471_vm4 = vcmask 261120  }
  0x18   : > { %1603 = vmatprep.subr.bf16.mxu1 %v1855_v0  ;;  %1605 = vmatprep.mubr.msk.bf16.mxu1 %vm1856_vm0, %v1855_v0  ;;  %s1516_s28 = sshll.u32 %s1987_s27, 2  ;;  %463 = vst.msk [vmem:[#allocation2] sm:$0xff] %vm462_vm2, %v1860_v8  ;;  %464 = vst.msk [vmem:[#allocation2 + $0x8] sm:$0xff] %vm462_vm2, %v1860_v8  ;;  %vm749_vm5 = vcmask 130112   ;;  %vm888_vm6 = vcmask 195712   ;;  %vm1027_vm7 = vcmask 261312  }
  0x19   : > { %s446_s11 = scalar_lea.vmem %s2222_s1, %s1516_s28  ;;  %s453_s20 = scalar_lea.vmem %s2223_s2, %s1516_s28  ;;  %465 = vst.msk [vmem:[#allocation2 + $0x10] sm:$0xff] %vm462_vm2, %v1860_v8  ;;  %466 = vst.msk [vmem:[#allocation2 + $0x18] sm:$0xff] %vm462_vm2, %v1860_v8  ;;  %1734 = vset.pattern.permute.xlu0 %v1861_v21  ;;  %1735 = vset.pattern.permute.xlu1 %v1861_v21  ;;  %vm1044_vm8 = vcmask 60416   ;;  %vm1056_vm9 = vcmask 126016   ;;  %vm1068_vm10 = vcmask 191616   ;;  %vm1080_vm11 = vcmask 257216  }
  0x1a   : > { %v473_v1 = vld [vmem:[%s446_s11] sm:$0xf]  ;;  %s1859_s28 = smov 112   ;;  %469 = vst.msk [vmem:[#allocation3 + $0x10] sm:$0xff] %vm462_vm2, %v1855_v0  ;;  %470 = vst.msk [vmem:[#allocation3 + $0x18] sm:$0xff] %vm462_vm2, %v1855_v0  ;;  %s1864_s11 = smov 80  }
  0x1b   : > { %v477_v2 = vld [vmem:[%s453_s20] sm:$0xf]  ;;  %v474_v3 = vunpack.c.l.bf16 %v473_v1  ;;  %472 = vst.msk [vmem:[#allocation4] sm:$0xff] %vm471_vm4, %v1855_v0  ;;  %s1867_s20 = smov 16  }
  0x1c   : > { %v483_v4 = vsel %vm478_vm1, %v477_v2, 0  ;;  %v2000_v5 = vcombine.low %v477_v2, %v477_v2 }
  0x1d   : > { %1580 = vmatpush3.bf16.xpose.msra.mxu0 %v483_v4  ;;  %v475_v6 = vmul.f32 0.35355338, %v474_v3 }
  0x1e   : > { %553 = vrot.lane.b32.xlu1 %v2000_v5, %s2232_s22  ;;  %1585 = vmatprep.subr.bf16.mxu0 %v1855_v0  ;;  %v545_v56 = vld [vmem:[#allocation3] sm:$0xff] }
  0x1f   : > { %v476_v7 = vpack.c.bf16 %v475_v6, %v475_v6  ;;  %v525_v26 = vld [vmem:[#allocation2] sm:$0xff] }
  0x20   : > { %v803_v40 = vld [vmem:[#allocation2 + $0x10] sm:$0xff] }
  0x22   : > { %615 = vrot.lane.b32.xlu1 %v2000_v5, %s1858_s24 }
  0x24   : > { %1582 = vmatmul.mubr.msk.bf16.vlgmr.msra.gmra.mxu0 %vm478_vm1, %v476_v7 }
  0x25   : > { %1587 = vmatprep.mubr.msk.bf16.mxu0 %vm1856_vm0, %v1855_v0 }
  0x26   : > { %613 = vrot.lane.b32.xlu1 %v476_v7, %s1858_s24  ;;  %s1868_s24 = smov 24  }
  0x2a   : > { %754 = vrot.lane.b32.xlu1 %v2000_v5, %s1859_s28 }
  0x2e   : > { %752 = vrot.lane.b32.xlu1 %v476_v7, %s1859_s28 }
  0x32   : > { %893 = vrot.lane.b32.xlu1 %v2000_v5, %s1862_s29 }
  0x36   : > { %891 = vrot.lane.b32.xlu1 %v476_v7, %s1862_s29 }
  0x90   : > { %v554_v9 = vpop.permute.xlu1 %553 }
  0x91   : > { %v560_v10 = vsel %vm558_vm3, %v554_v9, 0 }
  0x92   : > { %1586 = vmatpush3.bf16.msra.mxu0 %v560_v10  ;;  %v824_v10 = vld [vmem:[#allocation3 + $0x10] sm:$0xff] }
  0x93   : > { %1591 = vmatprep.subr.bf16.mxu0 %v1855_v0 }
  0x94   : > { %v616_v11 = vpop.permute.xlu1 %615 }
  0x95   : > { %v621_v38 = vsel %vm478_vm1, %v616_v11, 0 }
  0x98   : > { %v614_v12 = vpop.permute.xlu1 %613 }
  0x9c   : > { %v755_v13 = vpop.permute.xlu1 %754 }
  0x9d   : > { %v760_v14 = vsel %vm478_vm1, %v755_v13, 0 }
  0x9e   : > { %1604 = vmatpush3.bf16.xpose.msra.mxu1 %v760_v14  ;;  %v664_v14 = vld [vmem:[#allocation2 + $0x8] sm:$0xff] }
  0x9f   : > { %1615 = vmatprep.subr.bf16.mxu1 %v1855_v0 }
  0xa0   : > { %v753_v15 = vpop.permute.xlu1 %752 }
  0xa4   : > { %v894_v30 = vpop.permute.xlu1 %893 }
  0xa5   : > { %1606 = vmatmul.mubr.msk.bf16.vlgmr.msra.gmra.mxu1 %vm478_vm1, %v753_v15  ;;  %v899_v31 = vsel %vm478_vm1, %v894_v30, 0 }
  0xa6   : > { %1617 = vmatprep.mubr.msk.bf16.mxu1 %vm1856_vm0, %v1855_v0  ;;  %1616 = vmatpush3.bf16.xpose.msra.mxu1 %v899_v31 }
  0xa7   : > { %1627 = vmatprep.subr.bf16.mxu1 %v1855_v0 }
  0xa8   : > { %v892_v32 = vpop.permute.xlu1 %891 }
  0xad   : > { %1618 = vmatmul.mubr.msk.bf16.vlgmr.msra.gmra.mxu1 %vm478_vm1, %v892_v32 }
  0xae   : > { %1631 = vmatprep.mubr.msk.bf16.mxu1 %vm1856_vm0, %v1855_v0 }
  0xe4   : > { %v519_v16 = vpop.f32.mrf.mxu0 }
  0xe5   : > { %v526_v17 = vsel %vm478_vm1, %v519_v16, -inf }
  0xe6   : > { %527 = vmax.xlane.f32.xlu0 %v526_v17  ;;  %v1583_v18 = vpop.f32.mrf.mxu0  ;;  %v942_v17 = vld [vmem:[#allocation2 + $0x18] sm:$0xff] }
  0xe8   : > { %v522_v19 = vpop.f32.mrf.mxu0 }
  0xea   : > { %v1584_v20 = vpop.f32.mrf.mxu0 }
 0x165   : > { %v796_v22 = vpop.f32.mrf.mxu1 }
 0x166   : > { %v804_v33 = vsel %vm478_vm1, %v796_v22, -inf }
 0x167   : > { %v1607_v23 = vpop.f32.mrf.mxu1 }
 0x169   : > { %v799_v24 = vpop.f32.mrf.mxu1 }
 0x16b   : > { %v1608_v25 = vpop.f32.mrf.mxu1 }
 0x16d   : > { %v2048_v45 = vpop.f32.mrf.mxu1 }
 0x16e   : > { %v943_v4 = vsel %vm478_vm1, %v2048_v45, -inf }
 0x16f   : > { %v528_v27 = vpop.xlane.xlu0 %527  ;;  %v1619_v46 = vpop.f32.mrf.mxu1 }
 0x170   : > { %v529_v28 = vmax.f32 %v525_v26, %v528_v27 }
 0x171   : > { %v938_v47 = vpop.f32.mrf.mxu1 }
 0x172   : > { %v530_v29 = vsub.f32 %v525_v26, %v529_v28  ;;  %611 = vst.msk [vmem:[#allocation2] sm:$0xff] %vm462_vm2, %v529_v28  ;;  %535 = vperm.xlu0 %1734, %v529_v28   ;;  %v602_v47 = vld [vmem:[#allocation4] sm:$0xff] }
 0x173   : > { %v1620_v48 = vpop.f32.mrf.mxu1 }
 0x174   : > { %v531_v54 = vmul.f32 1.442695, %v530_v29 }
 0x191   : > { %805 = vmax.xlane.f32.xlu0 %v804_v33 }
 0x1ed   : > { %v536_v34 = vpop.permute.xlu0 %535 }
 0x1ee   : > { %v538_v35 = vsub.f32 %v519_v16, %v536_v34 }
 0x1f0   : > { %v539_v36 = vmul.f32 1.442695, %v538_v35 }
 0x1f2   : > { %1749 = vpow2.f32 %v539_v36 }
 0x1ff   : > { %v1750_v37 = vpop.eup %1749 }
 0x200   : > { %v541_v39 = vpack.c.bf16 %v1750_v37, %v1750_v37  ;;  %v542_v44 = vsel %vm478_vm1, %v1750_v37, 0.0 }
 0x202   : > { %1588 = vmatmul.mubr.msk.bf16.vlgmr.msra.gmra.mxu0 %vm478_vm1, %v541_v39 }
 0x203   : > { %1592 = vmatpush3.bf16.xpose.msra.mxu0 %v621_v38  ;;  %1593 = vmatprep.mubr.msk.bf16.mxu0 %vm1856_vm0, %v1855_v0 }
 0x204   : > { %1597 = vmatprep.subr.bf16.mxu0 %v1855_v0 }
 0x20a   : > { %1594 = vmatmul.mubr.msk.bf16.vlgmr.msra.gmra.mxu0 %vm478_vm1, %v614_v12 }
 0x20b   : > { %1599 = vmatprep.mubr.msk.bf16.mxu0 %vm1856_vm0, %v1855_v0 }
 0x21a   : > { %v806_v41 = vpop.xlane.xlu0 %805 }
 0x21b   : > { %v807_v42 = vmax.f32 %v803_v40, %v806_v41 }
 0x21d   : > { %v808_v43 = vsub.f32 %v803_v40, %v807_v42  ;;  %890 = vst.msk [vmem:[#allocation2 + $0x10] sm:$0xff] %vm462_vm2, %v807_v42  ;;  %813 = vperm.xlu0 %1734, %v807_v42  }
 0x21f   : > { %v809_v8 = vmul.f32 1.442695, %v808_v43  ;;  %v685_v43 = vld [vmem:[#allocation3 + $0x8] sm:$0xff] }
 0x23c   : > { %543 = vadd.xlane.f32.xlu0 %v542_v44 }
 0x298   : > { %v814_v49 = vpop.permute.xlu0 %813 }
 0x299   : > { %v816_v50 = vsub.f32 %v796_v22, %v814_v49 }
 0x29b   : > { %v817_v51 = vmul.f32 1.442695, %v816_v50  ;;  %v963_v50 = vld [vmem:[#allocation3 + $0x18] sm:$0xff] }
 0x29d   : > { %1751 = vpow2.f32 %v817_v51 }
 0x29e   : > { %1753 = vpow2.f32 %v531_v54 }
 0x29f   : > { %1755 = vpow2.f32 %v809_v8 }
 0x2aa   : > { %v2050_v52 = vpop.eup %1751 }
 0x2ab   : > { %v820_v53 = vsel %vm478_vm1, %v2050_v52, 0.0  ;;  %v2054_v55 = vpop.eup %1753  ;;  %v819_v37 = vpack.c.bf16 %v2050_v52, %v2050_v52 }
 0x2ac   : > { %821 = vadd.xlane.f32.xlu0 %v820_v53  ;;  %v546_v59 = vmul.f32 %v2054_v55, %v545_v56  ;;  %v2063_v9 = vpop.eup %1755 }
 0x2ad   : > { %v825_v11 = vmul.f32 %v2063_v9, %v824_v10 }
 0x2c2   : > { %v2056_v57 = vpop.f32.mrf.mxu0 }
 0x2c4   : > { %v1589_v58 = vpop.f32.mrf.mxu0 }
 0x2c5   : > { %v544_v60 = vpop.xlane.xlu0 %543 }
 0x2c6   : > { %v547_v61 = vadd.f32 %v546_v59, %v544_v60  ;;  %v599_v62 = vpop.f32.mrf.mxu0 }
 0x2c8   : > { %549 = vst.msk [vmem:[#allocation3] sm:$0xff] %vm462_vm2, %v547_v61  ;;  %v1590_v63 = vpop.f32.mrf.mxu0 }
 0x2ca   : > { %v657_v1 = vpop.f32.mrf.mxu0 }
 0x2cb   : > { %v665_v2 = vsel %vm478_vm1, %v657_v1, -inf }
 0x2cc   : > { %666 = vmax.xlane.f32.xlu1 %v665_v2  ;;  %v1595_v3 = vpop.f32.mrf.mxu0 }
 0x2ce   : > { %v660_v6 = vpop.f32.mrf.mxu0 }
 0x2cf   : > { %v1034_v56 = vld [vmem:[#allocation3] sm:$0xff] }
 0x2d0   : > { %v1596_v7 = vpop.f32.mrf.mxu0  ;;  %944 = vmax.xlane.f32.xlu1 %v943_v4 }
 0x335   : > { %v822_v12 = vpop.xlane.xlu0 %821 }
 0x336   : > { %v826_v13 = vadd.f32 %v825_v11, %v822_v12 }
 0x338   : > { %827 = vst.msk [vmem:[#allocation3 + $0x10] sm:$0xff] %vm462_vm2, %v826_v13 }
 0x33f   : > { %v1058_v59 = vld [vmem:[#allocation3 + $0x10] sm:$0xff] }
 0x355   : > { %v667_v15 = vpop.xlane.xlu1 %666 }
 0x356   : > { %v668_v16 = vmax.f32 %v664_v14, %v667_v15  ;;  %v1738_v15 = vld [vmem:[%s2225_s4] sm:$0xff]  }
 0x358   : > { %v669_v18 = vsub.f32 %v664_v14, %v668_v16  ;;  %751 = vst.msk [vmem:[#allocation2 + $0x8] sm:$0xff] %vm462_vm2, %v668_v16  ;;  %674 = vperm.xlu1 %1735, %v668_v16   ;;  %v1737_v14 = vld [vmem:[%s2225_s4 + $0x8] sm:$0xff]  }
 0x359   : > { %v945_v19 = vpop.xlane.xlu1 %944  ;;  %1628 = vmatpush3.bf16.msra.mxu1 %v1737_v14 }
 0x35a   : > { %v946_v20 = vmax.f32 %v942_v17, %v945_v19  ;;  %v670_v39 = vmul.f32 1.442695, %v669_v18  ;;  %1629 = vmatprep.subr.bf16.mxu1 %v1855_v0 }
 0x35c   : > { %689 = vrot.lane.b32.xlu1 %v2000_v5, %s1863_s30  ;;  %v947_v21 = vsub.f32 %v942_v17, %v946_v20  ;;  %1029 = vst.msk [vmem:[#allocation2 + $0x18] sm:$0xff] %vm462_vm2, %v946_v20 }
 0x35d   : > { %1630 = vmatpush3.bf16.msra.mxu1 %v1738_v15 }
 0x35e   : > { %v948_v42 = vmul.f32 1.442695, %v947_v21  ;;  %1643 = vmatprep.subr.bf16.mxu1 %v1855_v0 }
 0x360   : > { %952 = vperm.xlu1 %1735, %v946_v20  }
 0x364   : > { %828 = vrot.lane.b32.xlu1 %v2000_v5, %s1864_s11  ;;  %s1545_s11 = sshll.u32 %s1845_s16, 7  ;;  %s1871_s16 = smov [#allocation6]  }
 0x368   : > { %967 = vrot.lane.b32.xlu1 %v2000_v5, %s1865_s12  ;;  %s1870_s12 = smov 32  }
 0x3d3   : > { %v675_v22 = vpop.permute.xlu1 %674 }
 0x3d4   : > { %v677_v23 = vsub.f32 %v657_v1, %v675_v22 }
 0x3d6   : > { %v678_v24 = vmul.f32 1.442695, %v677_v23 }
 0x3d7   : > { %v690_v25 = vpop.permute.xlu1 %689 }
 0x3d8   : > { %1757 = vpow2.f32 %v678_v24  ;;  %v695_v26 = vsel %vm558_vm3, %v690_v25, 0 }
 0x3d9   : > { %1598 = vmatpush3.bf16.msra.mxu0 %v695_v26 }
 0x3da   : > { %1609 = vmatprep.subr.bf16.mxu0 %v1855_v0 }
 0x3db   : > { %v953_v27 = vpop.permute.xlu1 %952 }
 0x3dc   : > { %v955_v28 = vsub.f32 %v2048_v45, %v953_v27 }
 0x3de   : > { %v956_v29 = vmul.f32 1.442695, %v955_v28 }
 0x3df   : > { %v829_v30 = vpop.permute.xlu1 %828 }
 0x3e0   : > { %1759 = vpow2.f32 %v956_v29  ;;  %v834_v33 = vsel %vm558_vm3, %v829_v30, 0 }
 0x3e1   : > { %1761 = vpow2.f32 %v670_v39 }
 0x3e2   : > { %1763 = vpow2.f32 %v948_v42 }
 0x3e3   : > { %v968_v34 = vpop.permute.xlu1 %967  ;;  %1765 = vrcp.f32 %v1034_v56 }
 0x3e4   : > { %v973_v38 = vsel %vm558_vm3, %v968_v34, 0  ;;  %1767 = vrcp.f32 %v1058_v59 }
 0x3e5   : > { %v1758_v31 = vpop.eup %1757 }
 0x3e6   : > { %v681_v32 = vsel %vm478_vm1, %v1758_v31, 0.0  ;;  %v680_v5 = vpack.c.bf16 %v1758_v31, %v1758_v31 }
 0x3e7   : > { %682 = vadd.xlane.f32.xlu1 %v681_v32 }
 0x3e8   : > { %1600 = vmatmul.mubr.msk.bf16.vlgmr.msra.gmra.mxu0 %vm478_vm1, %v680_v5 }
 0x3e9   : > { %1610 = vmatpush3.bf16.msra.mxu0 %v834_v33  ;;  %1611 = vmatprep.mubr.msk.bf16.mxu0 %vm1856_vm0, %v1855_v0 }
 0x3ea   : > { %1621 = vmatprep.subr.bf16.mxu0 %v1855_v0 }
 0x3ed   : > { %v1760_v35 = vpop.eup %1759 }
 0x3ee   : > { %v959_v36 = vsel %vm478_vm1, %v1760_v35, 0.0  ;;  %v958_v40 = vpack.c.bf16 %v1760_v35, %v1760_v35  ;;  %v1762_v41 = vpop.eup %1761 }
 0x3ef   : > { %960 = vadd.xlane.f32.xlu0 %v959_v36  ;;  %v686_v44 = vmul.f32 %v1762_v41, %v685_v43  ;;  %v1764_v48 = vpop.eup %1763 }
 0x3f0   : > { %1612 = vmatmul.mubr.msk.bf16.vlgmr.msra.gmra.mxu0 %vm478_vm1, %v819_v37  ;;  %v964_v53 = vmul.f32 %v1764_v48, %v963_v50  ;;  %v1766_v3 = vpop.eup %1765 }
 0x3f1   : > { %1622 = vmatpush3.bf16.msra.mxu0 %v973_v38  ;;  %1623 = vmatprep.mubr.msk.bf16.mxu0 %vm1856_vm0, %v1855_v0  ;;  %v1768_v7 = vpop.eup %1767 }
 0x3f2   : > { %1635 = vmatprep.subr.bf16.mxu0 %v1855_v0 }
 0x3f8   : > { %605 = vperm.xlu1 %1735, %v2054_v55   ;;  %1624 = vmatmul.mubr.msk.bf16.vlgmr.msra.gmra.mxu0 %vm478_vm1, %v958_v40 }
 0x3f9   : > { %1639 = vmatprep.mubr.msk.bf16.mxu0 %vm1856_vm0, %v1855_v0 }
 0x405   : > { %740 = vperm.xlu0 %1734, %v1762_v41  }
 0x470   : > { %v683_v45 = vpop.xlane.xlu1 %682 }
 0x471   : > { %v687_v46 = vadd.f32 %v686_v44, %v683_v45  ;;  %v1152_v44 = vlaneseq }
 0x473   : > { %688 = vst.msk [vmem:[#allocation3 + $0x8] sm:$0xff] %vm462_vm2, %v687_v46  ;;  %v1153_v45 = vshrl.u32 %v1152_v44, 7 }
 0x474   : > { %v606_v49 = vpop.permute.xlu1 %605 }
 0x475   : > { %v608_v51 = vmul.f32 %v606_v49, %v602_v47  ;;  %v1154_v46 = vsub.s32 0, %v1153_v45 }
 0x477   : > { %v609_v52 = vadd.f32 %v608_v51, %v2056_v57 }
 0x478   : > { %v961_v54 = vpop.xlane.xlu0 %960 }
 0x479   : > { %610 = vst.msk [vmem:[#allocation4] sm:$0xff] %vm478_vm1, %v609_v52  ;;  %v965_v55 = vadd.f32 %v964_v53, %v961_v54 }
 0x47a   : > { %v1046_v62 = vld [vmem:[#allocation3 + $0x8] sm:$0xff] }
 0x47b   : > { %966 = vst.msk [vmem:[#allocation3 + $0x18] sm:$0xff] %vm462_vm2, %v965_v55  ;;  %1769 = vrcp.f32 %v1046_v62 }
 0x480   : > { %v741_v16 = vpop.permute.xlu0 %740  ;;  %v737_v17 = vld [vmem:[#allocation4] sm:$0xff] }
 0x481   : > { %v743_v18 = vmul.f32 %v741_v16, %v737_v17  ;;  %v1741_v16 = vld [vmem:[%s2229_s8 + $0x38] sm:$0xff]   ;;  %v1742_v17 = vld [vmem:[%s2229_s8 + $0x30] sm:$0xff]  }
 0x482   : > { %v1070_v1 = vld [vmem:[#allocation3 + $0x18] sm:$0xff] }
 0x483   : > { %1771 = vrcp.f32 %v1070_v1 }
 0x4a8   : > { %v731_v58 = vpop.f32.mrf.mxu0 }
 0x4a9   : > { %745 = vrot.lane.b32.xlu1 %v731_v58, %s1866_s19  ;;  %s1869_s19 = smov 64  }
 0x4aa   : > { %v1601_v60 = vpop.f32.mrf.mxu0 }
 0x4ac   : > { %v734_v61 = vpop.f32.mrf.mxu0 }
 0x4ad   : > { %879 = vperm.xlu1 %1735, %v2063_v9   ;;  %v1770_v9 = vpop.eup %1769 }
 0x4ae   : > { %v1602_v57 = vpop.f32.mrf.mxu0  ;;  %v1772_v13 = vpop.eup %1771 }
 0x4b0   : > { %v870_v63 = vpop.f32.mrf.mxu0 }
 0x4b1   : > { %1018 = vperm.xlu1 %1735, %v1764_v48   ;;  %884 = vrot.lane.b32.xlu0 %v870_v63, %s1867_s20  ;;  %s456_s20 = scalar_lea.vmem %s2224_s3, %s1987_s27  ;;  %v1527_v48 = vld [vmem:[%s2226_s5] ss:$0 sm:$0xff] }
 0x4b2   : > { %v1613_v2 = vpop.f32.mrf.mxu0  ;;  %v1033_v47 = vld [vmem:[%s456_s20] sm:$0x1]  ;;  %s2180_s20 = scalar_lea.hbm %s2231_s10, %s1545_s11 }
 0x4b3   : > { %v1155_v49 = vrot.slane %v1033_v47, %v1154_v46  ;;  %v1173_v1 = vadd.f32 1.0, %v1033_v47  ;;  %v1739_v2 = vld [vmem:[%s2227_s6 + $0x8] sm:$0xff]  }
 0x4b4   : > { %v873_v4 = vpop.f32.mrf.mxu0  ;;  %1636 = vmatpush3.bf16.msra.mxu0 %v1739_v2 }
 0x4b5   : > { %1039 = vperm.xlu1 %1735, %v1766_v3   ;;  %1637 = vmatprep.subr.bf16.mxu0 %v1855_v0  ;;  %v1178_v3 = vrot.slane %v1173_v1, %v1154_v46  ;;  %v1740_v4 = vld [vmem:[%s2227_s6] sm:$0xff]  }
 0x4b6   : > { %v1614_v6 = vpop.f32.mrf.mxu0 }
 0x4b8   : > { %v1009_v8 = vpop.f32.mrf.mxu0  ;;  %1638 = vmatpush3.bf16.msra.mxu0 %v1740_v4 }
 0x4b9   : > { %1063 = vperm.xlu1 %1735, %v1768_v7   ;;  %1023 = vrot.lane.b32.xlu0 %v1009_v8, %s1868_s24  ;;  %s1515_s24 = sshll.u32 %s1987_s27, 3  ;;  %s2237_s27 = smov 96  }
 0x4ba   : > { %v1625_v10 = vpop.f32.mrf.mxu0  ;;  %s439_s22 = scalar_lea.vmem %s2236_s0, %s1515_s24  ;;  %s430_s24 = sand.u32 1, %s1837_s14  }
 0x4bb   : > { %v1150_v52 = vld [vmem:[%s439_s22] sm:$0xff]  ;;  %s1514_s28 = sshll.u32 %s430_s24, 3  ;;  %s1382_s29 = scalar_lea.sflag [#allocation7], %s430_s24 }
 0x4bc   : > { %v1012_v11 = vpop.f32.mrf.mxu0 }
 0x4bd   : > { %1051 = vperm.xlu0 %1734, %v1770_v9  }
 0x4be   : > { %v1626_v12 = vpop.f32.mrf.mxu0 }
 0x4c1   : > { %1075 = vperm.xlu0 %1734, %v1772_v13  }
 0x51b   : > { %v746_v19 = vpop.permute.xlu1 %745 }
 0x51c   : > { %v748_v20 = vadd.f32 %v746_v19, %v743_v18  ;;  %v1743_v18 = vld [vmem:[%s2229_s8 + $0x28] sm:$0xff]   ;;  %v1744_v19 = vld [vmem:[%s2229_s8 + $0x20] sm:$0xff]  }
 0x51e   : > { %750 = vst.msk [vmem:[#allocation4] sm:$0xff] %vm749_vm5, %v748_v20  ;;  %v1745_v20 = vld [vmem:[%s2229_s8 + $0x18] sm:$0xff]  }
 0x523   : > { %v885_v24 = vpop.permute.xlu0 %884 }
 0x525   : > { %v876_v21 = vld [vmem:[#allocation4] sm:$0xff] }
 0x528   : > { %v880_v22 = vpop.permute.xlu1 %879 }
 0x529   : > { %v882_v23 = vmul.f32 %v880_v22, %v876_v21  ;;  %v1746_v21 = vld [vmem:[%s2229_s8 + $0x10] sm:$0xff]   ;;  %v1747_v22 = vld [vmem:[%s2229_s8 + $0x8] sm:$0xff]  }
 0x52b   : > { %v887_v25 = vadd.f32 %v885_v24, %v882_v23  ;;  %v1024_v29 = vpop.permute.xlu0 %1023  ;;  %v1748_v23 = vld [vmem:[%s2229_s8] sm:$0xff]  }
 0x52c   : > { %v1019_v26 = vpop.permute.xlu1 %1018  ;;  %v1531_v24 = vld [vmem:[%s2228_s7] ss:$0 sm:$0xff] }
 0x52d   : > { %889 = vst.msk [vmem:[#allocation4] sm:$0xff] %vm888_vm6, %v887_v25 }
 0x530   : > { %v1040_v31 = vpop.permute.xlu1 %1039 }
 0x534   : > { %v1015_v27 = vld [vmem:[#allocation4] sm:$0xff]  ;;  %v1064_v33 = vpop.permute.xlu1 %1063 }
 0x535   : > { %v1021_v28 = vmul.f32 %v1019_v26, %v1015_v27 }
 0x537   : > { %v1026_v30 = vadd.f32 %v1024_v29, %v1021_v28 }
 0x538   : > { %v1052_v32 = vpop.permute.xlu0 %1051 }
 0x539   : > { %1028 = vst.msk [vmem:[#allocation4] sm:$0xff] %vm1027_vm7, %v1026_v30 }
 0x53c   : > { %v1076_v37 = vpop.permute.xlu0 %1075 }
 0x540   : > { %v1036_v5 = vld [vmem:[#allocation4] sm:$0xff] }
 0x541   : > { %v1042_v34 = vmul.f32 %v1040_v31, %v1036_v5  ;;  %v1066_v35 = vmul.f32 %v1064_v33, %v1036_v5  ;;  %v1054_v36 = vmul.f32 %v1052_v32, %v1036_v5  ;;  %v1078_v38 = vmul.f32 %v1076_v37, %v1036_v5 }
 0x543   : > { %v1043_v39 = vpack.c.bf16 %v1042_v34, %v1042_v34  ;;  %v1055_v40 = vpack.c.bf16 %v1054_v36, %v1054_v36  ;;  %v1067_v41 = vpack.c.bf16 %v1066_v35, %v1066_v35  ;;  %v1079_v42 = vpack.c.bf16 %v1078_v38, %v1078_v38  ;;  %v1535_v38 = vld [vmem:[%s2230_s9] ss:$0 sm:$0xff] }
 0x545   : > { %1045 = vst.msk [vmem:[#allocation5] sm:$0xf] %vm1044_vm8, %v1043_v39 }
 0x546   : > { %1057 = vst.msk [vmem:[#allocation5] sm:$0xf] %vm1056_vm9, %v1055_v40 }
 0x547   : > { %1069 = vst.msk [vmem:[#allocation5] sm:$0xf] %vm1068_vm10, %v1067_v41 }
 0x548   : > { %1081 = vst.msk [vmem:[#allocation5] sm:$0xf] %vm1080_vm11, %v1079_v42 }
 0x54f   : > { %v1082_v43 = vld [vmem:[#allocation5] sm:$0xf] }
 0x550   : > { %1632 = vmatmul.mubr.msk.bf16.vlgmr.msra.gmra.mxu1 %vm471_vm4, %v1082_v43 }
 0x551   : > { %1659 = vmatprep.mubr.msk.bf16.mxu1 %vm1856_vm0, %v1855_v0  ;;  %1644 = vmatpush3.bf16.msra.mxu1 %v1741_v16 }
 0x552   : > { %1645 = vmatprep.subr.bf16.mxu1 %v1855_v0 }
 0x555   : > { %1646 = vmatpush3.bf16.msra.mxu1 %v1742_v17 }
 0x556   : > { %1647 = vmatprep.subr.bf16.mxu1 %v1855_v0 }
 0x559   : > { %1648 = vmatpush3.bf16.msra.mxu1 %v1743_v18 }
 0x55a   : > { %1649 = vmatprep.subr.bf16.mxu1 %v1855_v0 }
 0x55d   : > { %1650 = vmatpush3.bf16.msra.mxu1 %v1744_v19 }
 0x55e   : > { %1651 = vmatprep.subr.bf16.mxu1 %v1855_v0 }
 0x561   : > { %1652 = vmatpush3.bf16.msra.mxu1 %v1745_v20 }
 0x562   : > { %1653 = vmatprep.subr.bf16.mxu1 %v1855_v0 }
 0x565   : > { %1654 = vmatpush3.bf16.msra.mxu1 %v1746_v21 }
 0x566   : > { %1655 = vmatprep.subr.bf16.mxu1 %v1855_v0 }
 0x569   : > { %1656 = vmatpush3.bf16.msra.mxu1 %v1747_v22 }
 0x56a   : > { %1657 = vmatprep.subr.bf16.mxu1 %v1855_v0 }
 0x56d   : > { %1658 = vmatpush3.bf16.msra.mxu1 %v1748_v23 }
 0x610   : > { %v1144_v50 = vpop.f32.mrf.mxu1 }
 0x611   : > { %v1145_v51 = vadd.f32 %v1527_v48, %v1144_v50 }
 0x612   : > { %v1633_v53 = vpop.f32.mrf.mxu1 }
 0x613   : > { %v1157_v54 = vmul.f32 %v1155_v49, %v1145_v51 }
 0x614   : > { %v1147_v55 = vpop.f32.mrf.mxu1 }
 0x615   : > { %v2122_v56 = vadd.f32 %v1157_v54, %v1150_v52 }
 0x616   : > { %v1634_v58 = vpop.f32.mrf.mxu1 }
 0x617   : > { %v1159_v59 = vsel %vm471_vm4, %v2122_v56, 0.0 }
 0x618   : > { %1160 = vadd.xlane.f32.xlu1 %v1159_v59 }
 0x629   : > { %1183 = vrot.lane.b32.xlu1 %v1155_v49, %s2237_s27  ;;  %s432_s27 = scalar_lea.vmem [#allocation6], %s1514_s28  ;;  %s1781_s28 = sshll.u32 %s1871_s16, 4  ;;  %s1782_s28 = int_to_ptr.vmem [resolvable:$false] %s1781_s28 }
 0x62a   : > { %s1396_s22 = sshll.u32 %s432_s27, 4  ;;  %s1783_s0 = scalar_lea.vmem %s1782_s28, 256  ;;  %s1397_s22 = int_to_ptr.vmem [resolvable:$true] %s1396_s22 }
 0x62b   : > { %s1777_s30 = scalar_lea.vmem %s1397_s22, 128  ;;  %p1784_p1 = scmp.lt.s32.totalorder %s1397_s22, %s1782_s28 }
 0x62c   : > { %p1778_p12 = scmp.ne.s32.totalorder %s1397_s22, %s1777_s30  ;;  %p1785_p2 = scmp.lt.s32.totalorder %s1783_s0, %s1777_s30 }
 0x62d   : > { %1375 = vrot.lane.b32.xlu1 %v1155_v49, %s1870_s12 }
 0x62e   : > { %p1779_p13 = pnand %p1778_p12, %p1967_p4  ;;  %p1786_p3 = por %p1785_p2, %p1784_p1 }
 0x630   : > { %p1780_p0 = pneg %p1779_p13 }
 0x632   : > { %p1787_p5 = pnand %p1786_p3, %p1780_p0 }
 0x6a1   : > { %v1161_v60 = vpop.xlane.xlu1 %1160 }
 0x6a2   : > { %v1163_v61 = vmul.f32 0.03125, %v1161_v60 }
 0x6a4   : > { %v1164_v62 = vsub.f32 %v2122_v56, %v1163_v61 }
 0x6a5   : > { %v1184_v12 = vpop.permute.xlu1 %1183 }
 0x6a6   : > { %v1165_v57 = vmul.f32 %v1164_v62, %v1164_v62 }
 0x6a8   : > { %v1166_v63 = vsel %vm471_vm4, %v1165_v57, 0.0 }
 0x6a9   : > { %1167 = vadd.xlane.f32.xlu0 %v1166_v63  ;;  %v1376_v40 = vpop.permute.xlu1 %1375 }
 0x6bf   : > { %1179 = vrot.lane.b32.xlu0 %v1178_v3, %s1869_s19 }
 0x732   : > { %v1168_v6 = vpop.xlane.xlu0 %1167 }
 0x733   : > { %v1169_v7 = vmul.f32 0.03125, %v1168_v6 }
 0x735   : > { %v1170_v8 = vadd.f32 1e-06, %v1169_v7 }
 0x736   : > { %v1180_v9 = vpop.permute.xlu0 %1179 }
 0x737   : > { %1773 = vrsqrt.f32 %v1170_v8 }
 0x744   : > { %v1774_v10 = vpop.eup %1773 }
 0x745   : > { %v1172_v11 = vmul.f32 %v1774_v10, %v1164_v62 }
 0x747   : > { %v1182_v13 = vmul.f32 %v1180_v9, %v1172_v11 }
 0x749   : > { %v1186_v14 = vadd.f32 %v1184_v12, %v1182_v13 }
 0x74b   : > { %v1187_v15 = vpack.c.bf16 %v1186_v14, %v1186_v14 }
 0x74d   : > { %1640 = vmatmul.mubr.msk.bf16.vlgmr.msra.gmra.mxu0 %vm471_vm4, %v1187_v15 }
 0x80d   : > { %v1248_v25 = vpop.f32.mrf.mxu0 }
 0x80e   : > { %v1249_v26 = vadd.f32 %v1531_v24, %v1248_v25 }
 0x80f   : > { %v1641_v27 = vpop.f32.mrf.mxu0 }
 0x810   : > { %v1255_v28 = vmul.f32 0.044715, %v1249_v26  ;;  %v1254_v34 = vmul.f32 0.5, %v1249_v26 }
 0x811   : > { %v1251_v29 = vpop.f32.mrf.mxu0 }
 0x812   : > { %v1256_v30 = vmul.f32 %v1255_v28, %v1249_v26 }
 0x813   : > { %v1642_v31 = vpop.f32.mrf.mxu0 }
 0x814   : > { %v1257_v32 = vmul.f32 %v1256_v30, %v1249_v26 }
 0x816   : > { %v1258_v5 = vadd.f32 %v1257_v32, %v1249_v26 }
 0x818   : > { %v1259_v33 = vmul.f32 0.7978846, %v1258_v5 }
 0x81a   : > { %1775 = vtanh.f32 %v1259_v33 }
 0x827   : > { %v1776_v0 = vpop.eup %1775 }
 0x828   : > { %v1261_v35 = vadd.f32 1.0, %v1776_v0 }
 0x82a   : > { %v1262_v36 = vmul.f32 %v1261_v35, %v1254_v34 }
 0x82c   : > { %v1263_v37 = vpack.c.bf16 %v1262_v36, %v1262_v36 }
 0x82e   : > { %1660 = vmatmul.mubr.bf16.vlgmr.msra.gmra.mxu1 %v1263_v37 }
 0x8ee   : > { %v1369_v39 = vpop.f32.mrf.mxu1 }
 0x8ef   : > { %v1370_v41 = vadd.f32 %v1535_v38, %v1369_v39 }
 0x8f0   : > { %v1661_v42 = vpop.f32.mrf.mxu1 }
 0x8f1   : > { %v1378_v43 = vmul.f32 %v1376_v40, %v1370_v41 }
 0x8f2   : > { %v1372_v44 = vpop.f32.mrf.mxu1 }
 0x8f3   : > { %v1379_v45 = vadd.f32 %v1378_v43, %v2122_v56 }
 0x8f4   : > { %v1662_v46 = vpop.f32.mrf.mxu1 }
 0x8f5   : > { %1380 = vst.msk [vmem:[%s432_s27] sm:$0xff] %vm471_vm4, %v1379_v45 }
 0x8f6   : > { %1790 = shalt.err (!%p1787_p5)
}
 0x8f7   : > { %s1791_s11 = scalar_lea.hbm %s2180_s20, 128  ;;  %s1795_s12 = scalar_lea.hbm %s2231_s10, 256 }
 0x8f8   : > { %p1792_p6 = scmp.ne.s32.totalorder %s2180_s20, %s1791_s11  ;;  %p1796_p10 = scmp.lt.s32.totalorder %s2180_s20, %s2231_s10 }
 0x8f9   : > { %p1797_p11 = scmp.lt.s32.totalorder %s1795_s12, %s1791_s11 }
 0x8fa   : > { %p1793_p7 = pnand %p1792_p6, %p1967_p4 }
 0x8fb   : > { %p1798_p12 = por %p1797_p11, %p1796_p10 }
 0x8fc   : > { %p1794_p9 = pneg %p1793_p7 }
 0x8fe   : > { %p1799_p13 = pnand %p1798_p12, %p1794_p9 }
 0x900   : > { %1802 = shalt.err (!%p1799_p13)
}
 0x901   : > { %1663 = dma.vmem_to_hbm [thread:$0]  (%p1967_p4), %s1397_s22, 128, %s2180_s20, %s1382_s29  }
 0x902 PF: > { %p1669_p0 = scmp.ge.s32.totalorder %s1853_s18, 2  ;;  %s1408_s0 = sand.u32 1, %s1833_s13  }
 0x903   : > { %s1409_s30 = scalar_lea.sflag [#allocation7], %s1408_s0 }
 0x904   : > { %p1666_p1 = pnand %p1669_p0, %p1974_p8 }
 0x906   : > { %p1667_p2 = pneg %p1666_p1 }
 0x908   : > { %1828 = dma.done.wait (%p1667_p2), %s1409_s30, 128  }
 0x909   : > { %1830 = vsyncadd (%p1667_p2), %s1409_s30, 4294967168  ;;  %s23_s18 = sadd.s32 1, %s1853_s18   ;;  %s2238_s13 = smov %s1837_s14 }
 0x90a   : > { %p20_p3 = scmp.ge.s32.totalorder %s23_s18, 4   ;;  %s2239_s14 = smov %s1841_s15 }
 0x90b   : > { %s2240_s15 = smov %s1980_s26  ;;  %s2241_s16 = smov %s1849_s17 }
 0x90c   : > { %s2242_s17 = smov %s2244_s21  ;;  %22 = sbr.rel (!%p20_p3) target bundleno = 6 (0x6), region = 118 }
 0x911   :  { %1414 = vsyncpa [#allocation7], 1 }
 0x912   :  { %1416 = vsyncpa [#allocation7 + $0x1], 1 }

</bundles_post_ra>
